<compile_context>
chip_gen: v7x
topology: tpu7x:2x2x1
jax: 0.10.0
libtpu: 0.0.40
codegen_flags: <defaults>
</compile_context>

<pallas_src>
import functools

import jax
import jax.numpy as jnp
from jax import lax
from jax.experimental import pallas as pl
from jax.experimental.pallas import tpu as pltpu

EPS = 1e-5
LRELU_SLOPE = 0.1
DOT_DTYPE = jnp.bfloat16      # MXU-native operand dtype on v5e/v6e/v7x


def _dot(a, b):
    # bf16 operands, f32 accumulate: native MXU rate on every generation.
    return jnp.dot(a.astype(DOT_DTYPE), b.astype(DOT_DTYPE),
                   preferred_element_type=jnp.float32)


# ------------------------- fused full-decoder kernel -------------------------

def _make_decoder_kernel(meta):
    """meta: per-stage static ints (shapes, lane widths, bias row indices)."""
    n_stages = len(meta)

    def kernel(*refs):
        x_ref = refs[0]
        skip_refs = refs[1:1 + n_stages]
        bias_ref = refs[1 + n_stages]
        w_refs = refs[2 + n_stages:-1]
        o_ref = refs[-1]

        def bias(row, width):
            return bias_ref[row:row + 1, :width]           # (1, width) f32

        def shift_rows_down(t):                            # out[y]=t[y-1]; out[0]=0
            rows = lax.broadcasted_iota(jnp.int32, t.shape, 0)
            return jnp.where(rows == 0, 0.0, pltpu.roll(t, 1, axis=0))

        def shift_rows_up(t):                              # out[y]=t[y+1]; out[H-1]=0
            h = t.shape[0]
            rows = lax.broadcasted_iota(jnp.int32, t.shape, 0)
            return jnp.where(rows == h - 1, 0.0, pltpu.roll(t, h - 1, axis=0))

        def conv3x3(slab, band_ref, bias_row):
            # x-taps + x zero-padding are baked into the banded weights; the
            # y shift is a sublane roll (XLU) + boundary mask (VPU), so it
            # rides in otherwise-idle slots instead of extra MXU passes.
            t0 = _dot(slab, band_ref[0])
            t1 = _dot(slab, band_ref[1])
            t2 = _dot(slab, band_ref[2])
            return shift_rows_down(t0) + t1 + shift_rows_up(t2) + bias_row

        x = x_ref[0]                                       # (Hin, G*Win*Cin) f32
        for s in range(n_stages):
            m = meta[s]
            (upw_ref, rowsel_ref, wxg_ref, wpsi_ref, expand_ref,
             band1_ref, band2_ref) = w_refs[7 * s: 7 * s + 7]
            skip = skip_refs[s][0]                         # (H, L) f32
            L = m["lanes"]

            # --- ConvTranspose2d(2, stride=2): both output-row parities in one
            # dot; the 2x pixel shuffle is two tiny row-selection matmuls.
            r = _dot(x, upw_ref[...])                      # (Hin, 2L)
            up = (_dot(rowsel_ref[0], r[:, :L]) +
                  _dot(rowsel_ref[1], r[:, L:]) +
                  bias(m["b_up"], L))                      # (H, L)

            # --- additive attention gate: [skip | up] -> one K=2L dot,
            # pre-summed BN shifts; 1x1 convs are block-diagonal weights.
            su = jnp.concatenate([skip, up], axis=-1)
            a = jnp.maximum(
                _dot(su, wxg_ref[...]) + bias(m["b_xg"], m["fint_w"]), 0.0)
            psi = jax.nn.sigmoid(
                _dot(a, wpsi_ref[...]) + bias(m["b_psi"], m["psi_w"]))
            gated = skip * _dot(psi, expand_ref[...])      # (H, L)

            # --- ConvBlock: torch.cat([up, gated]) eliminated via a K=2L
            # banded conv1 weight; BN folded into weights/shifts.
            cat = jnp.concatenate([up, gated], axis=-1)
            y1 = conv3x3(cat, band1_ref, bias(m["b1"], L))
            y1 = jnp.where(y1 >= 0, y1, LRELU_SLOPE * y1)
            # TODO(synk): Dropout2d is identity in eval mode; training-mode
            # channel dropout is not implemented.
            y2 = conv3x3(y1, band2_ref, bias(m["b2"], L))
            y2 = jnp.where(y2 >= 0, y2, LRELU_SLOPE * y2)
            x = y2

        o_ref[0] = x                                       # (H_out, L_out) f32

    return kernel


# ----------------------------- forward wrapper -----------------------------

def decoder_forward_pallas(prepared, x_nchw, encoder_features_nchw):
    G = prepared["group"]
    stages = prepared["stages"]
    meta = prepared["meta"]
    n_stages = len(stages)
    n = x_nchw.shape[0]
    assert n % G == 0, "batch must be divisible by the lane batch-group"
    ng = n // G

    # Boundary glue only: NCHW -> lane-dense (ng, H, G*W*C) slabs (batch-major
    # within the lane axis).
    def to_slab(t):
        nb, c, h, w = t.shape
        t = jnp.transpose(t, (0, 2, 3, 1)).reshape(ng, G, h, w * c)
        return jnp.transpose(t, (0, 2, 1, 3)).reshape(
            ng, h, G * w * c).astype(jnp.float32)

    x = to_slab(x_nchw)
    feats = encoder_features_nchw[::-1]
    skips = [to_slab(feats[s + 1]) for s in range(n_stages)]

    weights = []
    for st in stages:
        weights += [st["upw"], st["rowsel"], st["wxg"], st["wpsi"],
                    st["expand"], st["band1"], st["band2"]]

    def batched_spec(shape):
        return pl.BlockSpec((1,) + tuple(shape[1:]), lambda i: (i, 0, 0))

    def full_spec(shape):
        nd = len(shape)
        return pl.BlockSpec(tuple(shape), lambda i, nd=nd: (0,) * nd)

    in_specs = ([batched_spec(x.shape)]
                + [batched_spec(s.shape) for s in skips]
                + [full_spec(prepared["bias"].shape)]
                + [full_spec(w.shape) for w in weights])

    h_out = meta[-1]["h"]
    l_out = meta[-1]["lanes"]
    out = pl.pallas_call(
        _make_decoder_kernel(meta),
        grid=(ng,),
        in_specs=in_specs,
        out_specs=pl.BlockSpec((1, h_out, l_out), lambda i: (i, 0, 0)),
        out_shape=jax.ShapeDtypeStruct((ng, h_out, l_out), jnp.float32),
        compiler_params=pltpu.CompilerParams(
            dimension_semantics=("parallel",)),
    )(x, *skips, prepared["bias"], *weights)

    w_out = meta[-1]["w"]
    c_out = meta[-1]["cout"]
    out = out.reshape(ng, h_out, G, w_out, c_out)
    return jnp.transpose(out, (0, 2, 4, 1, 3)).reshape(ng * G, c_out, h_out, w_out)


# ----------------------------- parameters -----------------------------

def _fold_bn(conv_bias, gamma, beta, mean, var):
    scale = gamma / jnp.sqrt(var + EPS)
    shift = beta + (conv_bias - mean) * scale
    return scale, shift


def make_decoder_params(key, channels, attention_channels=32):
    """Raw parameters in PyTorch layouts, BatchNorm folded to scale/shift."""
    ch = channels[::-1]
    params = []
    for i in range(len(ch) - 1):
        cin, cout = ch[i], ch[i + 1]
        assert cin == 2 * cout, "U-Net decoder assumes channel halving"
        keys = jax.random.split(key, 41)
        key = keys[0]
        kit = iter(keys[1:])

        def nrm(shape, s=0.1):
            return s * jax.random.normal(next(kit), shape, jnp.float32)

        def bn(c):
            gamma = 1.0 + 0.1 * jax.random.normal(next(kit), (c,), jnp.float32)
            beta = 0.1 * jax.random.normal(next(kit), (c,), jnp.float32)
            mean = 0.1 * jax.random.normal(next(kit), (c,), jnp.float32)
            var = 1.0 + 0.1 * jax.random.uniform(next(kit), (c,), jnp.float32)
            return gamma, beta, mean, var

        fint = attention_channels
        up_w, up_b = nrm((cin, cout, 2, 2)), nrm((cout,))

        wx, wx_b = nrm((cout, fint)), nrm((fint,))
        wg, wg_b = nrm((cout, fint)), nrm((fint,))
        wpsi, wpsi_b = nrm((fint, 1)), nrm((1,))
        x_scale, x_shift = _fold_bn(wx_b, *bn(fint))
        g_scale, g_shift = _fold_bn(wg_b, *bn(fint))
        psi_scale, psi_shift = _fold_bn(wpsi_b, *bn(1))

        c1_w, c1_b = nrm((cout, cin, 3, 3)), nrm((cout,))
        bn1_scale, bn1_shift = _fold_bn(c1_b, *bn(cout))
        c2_w, c2_b = nrm((cout, cout, 3, 3)), nrm((cout,))
        bn2_scale, bn2_shift = _fold_bn(c2_b, *bn(cout))

        params.append(dict(
            up_w=up_w, up_b=up_b,
            wx=wx, wg=wg, wpsi=wpsi,
            x_scale=x_scale, x_shift=x_shift,
            g_scale=g_scale, g_shift=g_shift,
            psi_scale=psi_scale, psi_shift=psi_shift,
            c1_w=c1_w, bn1_scale=bn1_scale, bn1_shift=bn1_shift,
            c2_w=c2_w, bn2_scale=bn2_scale, bn2_shift=bn2_shift,
        ))
    return params


def prepare_decoder_params(raw_params, bottleneck_hw, batch_group=2):
    """Restructure PyTorch-layout weights into block-diagonal / banded bf16
    matrices over the lane-dense (rows=H, lanes=G*W*C) slab layout (G = batch
    group packed into lanes).  Runs once at init, never in the forward path."""
    hin, win = bottleneck_hw
    G = batch_group
    stages, meta, bias_rows = [], [], []
    for p in raw_params:
        h, w = 2 * hin, 2 * win
        cin, cout = p["up_w"].shape[0], p["up_w"].shape[1]
        fint = p["wx"].shape[1]
        eye_g = jnp.eye(G, dtype=jnp.float32)
        eye_w = jnp.eye(w, dtype=jnp.float32)
        L = G * w * cout

        def gkron(m):                    # replicate block-diag over batch lanes
            return jnp.kron(eye_g, m)

        # ConvTranspose2d(2, stride=2): both row parities side by side (2L).
        up_par = []
        for ky in range(2):
            u = jnp.zeros((win * cin, w * cout), jnp.float32)
            for kx in range(2):
                sel = jnp.zeros((win, w), jnp.float32)
                sel = sel.at[jnp.arange(win), 2 * jnp.arange(win) + kx].set(1.0)
                u = u + jnp.kron(sel, p["up_w"][:, :, ky, kx])
            up_par.append(gkron(u))
        upw = jnp.concatenate(up_par, axis=1)              # (G*Win*Cin, 2L)

        rowsel = jnp.zeros((2, h, hin), jnp.float32)       # 2x row interleave
        for ky in range(2):
            rowsel = rowsel.at[
                ky, 2 * jnp.arange(hin) + ky, jnp.arange(hin)].set(1.0)

        # Attention gate 1x1 convs (BN scale folded) -> single [skip|up] weight.
        wx_blk = gkron(jnp.kron(eye_w, p["wx"] * p["x_scale"][None, :]))
        wg_blk = gkron(jnp.kron(eye_w, p["wg"] * p["g_scale"][None, :]))
        wxg = jnp.concatenate([wx_blk, wg_blk], axis=0)    # (2L, G*W*Fint)
        wpsi = gkron(jnp.kron(eye_w, p["wpsi"] * p["psi_scale"][0]))
        expand = jnp.kron(jnp.eye(G * w, dtype=jnp.float32),
                          jnp.ones((1, cout), jnp.float32))   # (G*W, L)

        # 3x3 convs -> banded matmuls (x shift + zero padding baked into the
        # weights); BN scale folded.  The y shift is done in-kernel via rolls.
        def bands(w_part, scale):
            w_part = w_part * scale[:, None, None, None]
            co, ci = w_part.shape[0], w_part.shape[1]
            out = []
            for dy in range(3):
                b = jnp.zeros((w * ci, w * co), jnp.float32)
                for dx in range(3):
                    sel = jnp.eye(w, k=1 - dx, dtype=jnp.float32)
                    b = b + jnp.kron(sel, w_part[:, :, dy, dx].T)
                out.append(gkron(b))
            return jnp.stack(out)                          # (3, G*W*ci, G*W*co)

        band1 = jnp.concatenate(
            [bands(p["c1_w"][:, :cout], p["bn1_scale"]),   # `up` half of cat
             bands(p["c1_w"][:, cout:], p["bn1_scale"])],  # `gated` half
            axis=1)                                        # (3, 2L, L)
        band2 = bands(p["c2_w"], p["bn2_scale"])           # (3, L, L)

        b_up = jnp.tile(p["up_b"], G * w)
        b_xg = jnp.tile(p["x_shift"] + p["g_shift"], G * w)
        b_psi = jnp.full((G * w,), p["psi_shift"][0], jnp.float32)
        b1 = jnp.tile(p["bn1_shift"], G * w)
        b2 = jnp.tile(p["bn2_shift"], G * w)
        row0 = len(bias_rows)
        bias_rows += [b_up, b_xg, b_psi, b1, b2]

        stages.append(dict(
            upw=upw.astype(DOT_DTYPE), rowsel=rowsel.astype(DOT_DTYPE),
            wxg=wxg.astype(DOT_DTYPE), wpsi=wpsi.astype(DOT_DTYPE),
            expand=expand.astype(DOT_DTYPE),
            band1=band1.astype(DOT_DTYPE), band2=band2.astype(DOT_DTYPE)))
        meta.append(dict(h=h, hin=hin, w=w, cout=cout, lanes=L,
                         fint_w=G * w * fint, psi_w=G * w,
                         b_up=row0, b_xg=row0 + 1, b_psi=row0 + 2,
                         b1=row0 + 3, b2=row0 + 4))
        hin, win = h, w

    maxw = max(int(b.shape[0]) for b in bias_rows)
    bias = jnp.zeros((len(bias_rows), maxw), jnp.float32)
    for i, b in enumerate(bias_rows):
        bias = bias.at[i, :b.shape[0]].set(b)

    return dict(group=G, stages=stages, meta=meta, bias=bias)


# ----------------------------- pure-JAX reference -----------------------------

def decoder_forward_reference(raw_params, x_nchw, encoder_features_nchw):
    """Pure-JAX (XLA) reference with identical semantics."""
    hp = jax.lax.Precision.HIGHEST
    x = jnp.transpose(x_nchw, (0, 2, 3, 1)).astype(jnp.float32)
    feats = [jnp.transpose(f, (0, 2, 3, 1)).astype(jnp.float32)
             for f in encoder_features_nchw][::-1]

    def conv_bn_lrelu(t, w_pt, scale, shift):
        w = jnp.transpose(w_pt, (2, 3, 1, 0))                    # HWIO
        y = jax.lax.conv_general_dilated(
            t, w, (1, 1), "SAME",
            dimension_numbers=("NHWC", "HWIO", "NHWC"), precision=hp)
        y = y * scale + shift
        return jnp.where(y >= 0, y, LRELU_SLOPE * y)

    for i, p in enumerate(raw_params):
        n, hin, win, _ = x.shape
        cout = p["up_w"].shape[1]
        t = jnp.einsum("nyxi,iokl->nyxklo", x, p["up_w"], precision=hp)
        t = jnp.transpose(t, (0, 1, 3, 2, 4, 5)).reshape(
            n, 2 * hin, 2 * win, cout)
        up = t + p["up_b"]

        skip = feats[i + 1]
        x1 = (jnp.einsum("nhwc,cf->nhwf", skip, p["wx"], precision=hp)
              * p["x_scale"] + p["x_shift"])
        g1 = (jnp.einsum("nhwc,cf->nhwf", up, p["wg"], precision=hp)
              * p["g_scale"] + p["g_shift"])
        a = jnp.maximum(x1 + g1, 0.0)
        psi = (jnp.einsum("nhwf,fk->nhwk", a, p["wpsi"], precision=hp)
               * p["psi_scale"] + p["psi_shift"])
        gated = skip * jax.nn.sigmoid(psi)

        cat = jnp.concatenate([up, gated], axis=-1)
        x = conv_bn_lrelu(cat, p["c1_w"], p["bn1_scale"], p["bn1_shift"])
        x = conv_bn_lrelu(x, p["c2_w"], p["bn2_scale"], p["bn2_shift"])
    return jnp.transpose(x, (0, 3, 1, 2))


# ----------------------------- main -----------------------------

if __name__ == "__main__":
    key = jax.random.PRNGKey(0)
    channels = [4, 8, 16]          # encoder channel progression
    attention_channels = 32
    N = 2

    k0, k1, k2, k3, kp = jax.random.split(key, 5)
    # bottleneck feature (deepest): 16 channels at 4x4
    x = jax.random.normal(k0, (N, 16, 4, 4), jnp.float32)
    # encoder features shallow -> deep (NCHW)
    encoder_features = [
        jax.random.normal(k1, (N, 4, 16, 16), jnp.float32),
        jax.random.normal(k2, (N, 8, 8, 8), jnp.float32),
        jax.random.normal(k3, (N, 16, 4, 4), jnp.float32),
    ]

    raw_params = make_decoder_params(kp, channels, attention_channels)
    prepared = prepare_decoder_params(raw_params, bottleneck_hw=(4, 4),
                                      batch_group=2)

    fwd = jax.jit(functools.partial(decoder_forward_pallas, prepared))
    out = jax.block_until_ready(fwd(x, encoder_features))
    assert out.shape == (N, 4, 16, 16), out.shape
    assert bool(jnp.all(jnp.isfinite(out)))

    # Validate the fused kernel against a pure-JAX HIGHEST-precision reference.
    # Tolerance accounts for bf16 MXU operands (vs f32 HIGHEST) through the
    # chained per-stage matmuls; genuine restructuring bugs give O(1) errors.
    ref = decoder_forward_reference(raw_params, x, encoder_features)
    max_err = float(jnp.max(jnp.abs(out - ref)))
    assert max_err < 2e-1, f"Pallas vs reference mismatch: {max_err}"
    print("KERNEL_OK")
</pallas_src>

<mosaic_0001>
module attributes {stable_mosaic.version = 11 : i64} {
  func.func @kernel(%arg0: i32, %arg1: memref<1x4x128xf32, #tpu.memory_space<vmem>>, %arg2: memref<1x8x128xf32, #tpu.memory_space<vmem>>, %arg3: memref<1x16x128xf32, #tpu.memory_space<vmem>>, %arg4: memref<10x1024xf32, #tpu.memory_space<vmem>>, %arg5: memref<128x256xbf16, #tpu.memory_space<vmem>>, %arg6: memref<2x8x4xbf16, #tpu.memory_space<vmem>>, %arg7: memref<256x512xbf16, #tpu.memory_space<vmem>>, %arg8: memref<512x16xbf16, #tpu.memory_space<vmem>>, %arg9: memref<16x128xbf16, #tpu.memory_space<vmem>>, %arg10: memref<3x256x128xbf16, #tpu.memory_space<vmem>>, %arg11: memref<3x128x128xbf16, #tpu.memory_space<vmem>>, %arg12: memref<128x256xbf16, #tpu.memory_space<vmem>>, %arg13: memref<2x16x8xbf16, #tpu.memory_space<vmem>>, %arg14: memref<256x1024xbf16, #tpu.memory_space<vmem>>, %arg15: memref<1024x32xbf16, #tpu.memory_space<vmem>>, %arg16: memref<32x128xbf16, #tpu.memory_space<vmem>>, %arg17: memref<3x256x128xbf16, #tpu.memory_space<vmem>>, %arg18: memref<3x128x128xbf16, #tpu.memory_space<vmem>>, %arg19: memref<1x16x128xf32, #tpu.memory_space<vmem>>) attributes {dimension_semantics = [#tpu.dimension_semantics<parallel>], iteration_bounds = array<i64: 1>, scalar_prefetch = 0 : i64, scratch_operands = 0 : i64, tpu.core_type = #tpu.core_type<tc>, window_params = [{transform_indices = @transform_0, window_bounds = array<i64: 1, 4, 128>}, {transform_indices = @transform_1, window_bounds = array<i64: 1, 8, 128>}, {transform_indices = @transform_2, window_bounds = array<i64: 1, 16, 128>}, {pipeline_mode = #tpu.pipeline_mode<synchronous>, transform_indices = @transform_3, window_bounds = array<i64: 10, 1024>}, {pipeline_mode = #tpu.pipeline_mode<synchronous>, transform_indices = @transform_4, window_bounds = array<i64: 128, 256>}, {pipeline_mode = #tpu.pipeline_mode<synchronous>, transform_indices = @transform_5, window_bounds = array<i64: 2, 8, 4>}, {pipeline_mode = #tpu.pipeline_mode<synchronous>, transform_indices = @transform_6, window_bounds = array<i64: 256, 512>}, {pipeline_mode = #tpu.pipeline_mode<synchronous>, transform_indices = @transform_7, window_bounds = array<i64: 512, 16>}, {pipeline_mode = #tpu.pipeline_mode<synchronous>, transform_indices = @transform_8, window_bounds = array<i64: 16, 128>}, {pipeline_mode = #tpu.pipeline_mode<synchronous>, transform_indices = @transform_9, window_bounds = array<i64: 3, 256, 128>}, {pipeline_mode = #tpu.pipeline_mode<synchronous>, transform_indices = @transform_10, window_bounds = array<i64: 3, 128, 128>}, {pipeline_mode = #tpu.pipeline_mode<synchronous>, transform_indices = @transform_11, window_bounds = array<i64: 128, 256>}, {pipeline_mode = #tpu.pipeline_mode<synchronous>, transform_indices = @transform_12, window_bounds = array<i64: 2, 16, 8>}, {pipeline_mode = #tpu.pipeline_mode<synchronous>, transform_indices = @transform_13, window_bounds = array<i64: 256, 1024>}, {pipeline_mode = #tpu.pipeline_mode<synchronous>, transform_indices = @transform_14, window_bounds = array<i64: 1024, 32>}, {pipeline_mode = #tpu.pipeline_mode<synchronous>, transform_indices = @transform_15, window_bounds = array<i64: 32, 128>}, {pipeline_mode = #tpu.pipeline_mode<synchronous>, transform_indices = @transform_16, window_bounds = array<i64: 3, 256, 128>}, {pipeline_mode = #tpu.pipeline_mode<synchronous>, transform_indices = @transform_17, window_bounds = array<i64: 3, 128, 128>}, {transform_indices = @transform_18, window_bounds = array<i64: 1, 16, 128>}]} {
    %c0 = arith.constant 0 : index
    %c0_0 = arith.constant 0 : index
    %c0_1 = arith.constant 0 : index
    %0 = vector.load %arg1[%c0, %c0_0, %c0_1] : memref<1x4x128xf32, #tpu.memory_space<vmem>>, vector<1x4x128xf32>
    %1 = vector.shape_cast %0 : vector<1x4x128xf32> to vector<4x128xf32>
    %c0_2 = arith.constant 0 : index
    %c0_3 = arith.constant 0 : index
    %c0_4 = arith.constant 0 : index
    %2 = vector.load %arg2[%c0_2, %c0_3, %c0_4] : memref<1x8x128xf32, #tpu.memory_space<vmem>>, vector<1x8x128xf32>
    %3 = vector.shape_cast %2 : vector<1x8x128xf32> to vector<8x128xf32>
    %c0_5 = arith.constant 0 : index
    %c0_6 = arith.constant 0 : index
    %4 = vector.load %arg5[%c0_5, %c0_6] : memref<128x256xbf16, #tpu.memory_space<vmem>>, vector<128x256xbf16>
    %5 = arith.truncf %1 : vector<4x128xf32> to vector<4x128xbf16>
    %cst = arith.constant dense<0.000000e+00> : vector<4x256xf32>
    %6 = tpu.matmul %5, %4, %cst {dimension_numbers = #tpu.dot_dimension_numbers<[1], [0], [0], [1], [0, 0, 1, 1], [], []>} : vector<4x128xbf16>, vector<128x256xbf16>, vector<4x256xf32> -> vector<4x256xf32>
    %c0_7 = arith.constant 0 : index
    %c0_8 = arith.constant 0 : index
    %c0_9 = arith.constant 0 : index
    %7 = vector.load %arg6[%c0_7, %c0_8, %c0_9] : memref<2x8x4xbf16, #tpu.memory_space<vmem>>, vector<1x8x4xbf16>
    %8 = vector.shape_cast %7 : vector<1x8x4xbf16> to vector<8x4xbf16>
    %9 = vector.extract_strided_slice %6 {offsets = [0, 0], sizes = [4, 128], strides = [1, 1]} : vector<4x256xf32> to vector<4x128xf32>
    %10 = arith.truncf %9 : vector<4x128xf32> to vector<4x128xbf16>
    %cst_10 = arith.constant dense<0.000000e+00> : vector<8x128xf32>
    %11 = tpu.matmul %8, %10, %cst_10 {dimension_numbers = #tpu.dot_dimension_numbers<[1], [0], [0], [1], [0, 0, 1, 1], [], []>} : vector<8x4xbf16>, vector<4x128xbf16>, vector<8x128xf32> -> vector<8x128xf32>
    %c1 = arith.constant 1 : index
    %c0_11 = arith.constant 0 : index
    %c0_12 = arith.constant 0 : index
    %12 = vector.load %arg6[%c1, %c0_11, %c0_12] : memref<2x8x4xbf16, #tpu.memory_space<vmem>>, vector<1x8x4xbf16>
    %13 = vector.shape_cast %12 : vector<1x8x4xbf16> to vector<8x4xbf16>
    %14 = vector.extract_strided_slice %6 {offsets = [0, 128], sizes = [4, 128], strides = [1, 1]} : vector<4x256xf32> to vector<4x128xf32>
    %15 = arith.truncf %14 : vector<4x128xf32> to vector<4x128xbf16>
    %cst_13 = arith.constant dense<0.000000e+00> : vector<8x128xf32>
    %16 = tpu.matmul %13, %15, %cst_13 {dimension_numbers = #tpu.dot_dimension_numbers<[1], [0], [0], [1], [0, 0, 1, 1], [], []>} : vector<8x4xbf16>, vector<4x128xbf16>, vector<8x128xf32> -> vector<8x128xf32>
    %17 = arith.addf %11, %16 : vector<8x128xf32>
    %c0_14 = arith.constant 0 : index
    %c0_15 = arith.constant 0 : index
    %18 = vector.load %arg4[%c0_14, %c0_15] : memref<10x1024xf32, #tpu.memory_space<vmem>>, vector<1x128xf32>
    %19 = vector.broadcast %18 : vector<1x128xf32> to vector<8x128xf32>
    %20 = arith.addf %17, %19 : vector<8x128xf32>
    %21 = tpu.concatenate %3, %20 in 1 : vector<8x128xf32>, vector<8x128xf32> -> vector<8x256xf32>
    %c0_16 = arith.constant 0 : index
    %c0_17 = arith.constant 0 : index
    %22 = vector.load %arg7[%c0_16, %c0_17] : memref<256x512xbf16, #tpu.memory_space<vmem>>, vector<256x512xbf16>
    %23 = arith.truncf %21 : vector<8x256xf32> to vector<8x256xbf16>
    %cst_18 = arith.constant dense<0.000000e+00> : vector<8x512xf32>
    %24 = tpu.matmul %23, %22, %cst_18 {dimension_numbers = #tpu.dot_dimension_numbers<[1], [0], [0], [1], [0, 0, 1, 1], [], []>} : vector<8x256xbf16>, vector<256x512xbf16>, vector<8x512xf32> -> vector<8x512xf32>
    %c1_19 = arith.constant 1 : index
    %c0_20 = arith.constant 0 : index
    %25 = vector.load %arg4[%c1_19, %c0_20] : memref<10x1024xf32, #tpu.memory_space<vmem>>, vector<1x512xf32>
    %26 = vector.broadcast %25 : vector<1x512xf32> to vector<8x512xf32>
    %27 = arith.addf %24, %26 : vector<8x512xf32>
    %cst_21 = arith.constant 0.000000e+00 : f32
    %28 = vector.broadcast %cst_21 : f32 to vector<8x512xf32>
    %29 = arith.maximumf %27, %28 : vector<8x512xf32>
    %c0_22 = arith.constant 0 : index
    %c0_23 = arith.constant 0 : index
    %30 = vector.load %arg8[%c0_22, %c0_23] : memref<512x16xbf16, #tpu.memory_space<vmem>>, vector<512x16xbf16>
    %31 = arith.truncf %29 : vector<8x512xf32> to vector<8x512xbf16>
    %cst_24 = arith.constant dense<0.000000e+00> : vector<8x16xf32>
    %32 = tpu.matmul %31, %30, %cst_24 {dimension_numbers = #tpu.dot_dimension_numbers<[1], [0], [0], [1], [0, 0, 1, 1], [], []>} : vector<8x512xbf16>, vector<512x16xbf16>, vector<8x16xf32> -> vector<8x16xf32>
    %c2 = arith.constant 2 : index
    %c0_25 = arith.constant 0 : index
    %33 = vector.load %arg4[%c2, %c0_25] : memref<10x1024xf32, #tpu.memory_space<vmem>>, vector<1x16xf32>
    %34 = vector.broadcast %33 : vector<1x16xf32> to vector<8x16xf32>
    %35 = arith.addf %32, %34 : vector<8x16xf32>
    %36 = arith.negf %35 : vector<8x16xf32>
    %37 = math.exp %36 : vector<8x16xf32>
    %cst_26 = arith.constant 1.000000e+00 : f32
    %38 = vector.broadcast %cst_26 : f32 to vector<8x16xf32>
    %39 = arith.addf %38, %37 : vector<8x16xf32>
    %40 = arith.divf %38, %39 : vector<8x16xf32>
    %c0_27 = arith.constant 0 : index
    %c0_28 = arith.constant 0 : index
    %41 = vector.load %arg9[%c0_27, %c0_28] : memref<16x128xbf16, #tpu.memory_space<vmem>>, vector<16x128xbf16>
    %42 = arith.truncf %40 : vector<8x16xf32> to vector<8x16xbf16>
    %cst_29 = arith.constant dense<0.000000e+00> : vector<8x128xf32>
    %43 = tpu.matmul %42, %41, %cst_29 {dimension_numbers = #tpu.dot_dimension_numbers<[1], [0], [0], [1], [0, 0, 1, 1], [], []>} : vector<8x16xbf16>, vector<16x128xbf16>, vector<8x128xf32> -> vector<8x128xf32>
    %44 = arith.mulf %3, %43 : vector<8x128xf32>
    %45 = tpu.concatenate %20, %44 in 1 : vector<8x128xf32>, vector<8x128xf32> -> vector<8x256xf32>
    %c3 = arith.constant 3 : index
    %c0_30 = arith.constant 0 : index
    %46 = vector.load %arg4[%c3, %c0_30] : memref<10x1024xf32, #tpu.memory_space<vmem>>, vector<1x128xf32>
    %c0_31 = arith.constant 0 : index
    %c0_32 = arith.constant 0 : index
    %c0_33 = arith.constant 0 : index
    %47 = vector.load %arg10[%c0_31, %c0_32, %c0_33] : memref<3x256x128xbf16, #tpu.memory_space<vmem>>, vector<1x256x128xbf16>
    %48 = vector.shape_cast %47 : vector<1x256x128xbf16> to vector<256x128xbf16>
    %49 = arith.truncf %45 : vector<8x256xf32> to vector<8x256xbf16>
    %cst_34 = arith.constant dense<0.000000e+00> : vector<8x128xf32>
    %50 = tpu.matmul %49, %48, %cst_34 {dimension_numbers = #tpu.dot_dimension_numbers<[1], [0], [0], [1], [0, 0, 1, 1], [], []>} : vector<8x256xbf16>, vector<256x128xbf16>, vector<8x128xf32> -> vector<8x128xf32>
    %c1_35 = arith.constant 1 : index
    %c0_36 = arith.constant 0 : index
    %c0_37 = arith.constant 0 : index
    %51 = vector.load %arg10[%c1_35, %c0_36, %c0_37] : memref<3x256x128xbf16, #tpu.memory_space<vmem>>, vector<1x256x128xbf16>
    %52 = vector.shape_cast %51 : vector<1x256x128xbf16> to vector<256x128xbf16>
    %53 = arith.truncf %45 : vector<8x256xf32> to vector<8x256xbf16>
    %cst_38 = arith.constant dense<0.000000e+00> : vector<8x128xf32>
    %54 = tpu.matmul %53, %52, %cst_38 {dimension_numbers = #tpu.dot_dimension_numbers<[1], [0], [0], [1], [0, 0, 1, 1], [], []>} : vector<8x256xbf16>, vector<256x128xbf16>, vector<8x128xf32> -> vector<8x128xf32>
    %c2_39 = arith.constant 2 : index
    %c0_40 = arith.constant 0 : index
    %c0_41 = arith.constant 0 : index
    %55 = vector.load %arg10[%c2_39, %c0_40, %c0_41] : memref<3x256x128xbf16, #tpu.memory_space<vmem>>, vector<1x256x128xbf16>
    %56 = vector.shape_cast %55 : vector<1x256x128xbf16> to vector<256x128xbf16>
    %57 = arith.truncf %45 : vector<8x256xf32> to vector<8x256xbf16>
    %cst_42 = arith.constant dense<0.000000e+00> : vector<8x128xf32>
    %58 = tpu.matmul %57, %56, %cst_42 {dimension_numbers = #tpu.dot_dimension_numbers<[1], [0], [0], [1], [0, 0, 1, 1], [], []>} : vector<8x256xbf16>, vector<256x128xbf16>, vector<8x128xf32> -> vector<8x128xf32>
    %59 = tpu.iota {dimensions = array<i32: 0>} : vector<8x128xi32>
    %c0_i32 = arith.constant 0 : i32
    %60 = vector.broadcast %c0_i32 : i32 to vector<8x128xi32>
    %61 = arith.cmpi eq, %59, %60 : vector<8x128xi32>
    %c1_i32 = arith.constant 1 : i32
    %62 = tpu.dynamic_rotate %50 by %c1_i32 dim 0 : vector<8x128xf32>, i32 -> vector<8x128xf32>
    %cst_43 = arith.constant 0.000000e+00 : f32
    %63 = vector.broadcast %cst_43 : f32 to vector<8x128xf32>
    %64 = arith.select %61, %63, %62 : vector<8x128xi1>, vector<8x128xf32>
    %65 = arith.addf %64, %54 : vector<8x128xf32>
    %66 = tpu.iota {dimensions = array<i32: 0>} : vector<8x128xi32>
    %c7_i32 = arith.constant 7 : i32
    %67 = vector.broadcast %c7_i32 : i32 to vector<8x128xi32>
    %68 = arith.cmpi eq, %66, %67 : vector<8x128xi32>
    %c7_i32_44 = arith.constant 7 : i32
    %69 = tpu.dynamic_rotate %58 by %c7_i32_44 dim 0 : vector<8x128xf32>, i32 -> vector<8x128xf32>
    %cst_45 = arith.constant 0.000000e+00 : f32
    %70 = vector.broadcast %cst_45 : f32 to vector<8x128xf32>
    %71 = arith.select %68, %70, %69 : vector<8x128xi1>, vector<8x128xf32>
    %72 = arith.addf %65, %71 : vector<8x128xf32>
    %73 = vector.broadcast %46 : vector<1x128xf32> to vector<8x128xf32>
    %74 = arith.addf %72, %73 : vector<8x128xf32>
    %cst_46 = arith.constant 0.000000e+00 : f32
    %75 = vector.broadcast %cst_46 : f32 to vector<8x128xf32>
    %76 = arith.cmpf oge, %74, %75 : vector<8x128xf32>
    %cst_47 = arith.constant 1.000000e-01 : f32
    %77 = vector.broadcast %cst_47 : f32 to vector<8x128xf32>
    %78 = arith.mulf %77, %74 : vector<8x128xf32>
    %79 = arith.select %76, %74, %78 : vector<8x128xi1>, vector<8x128xf32>
    %c4 = arith.constant 4 : index
    %c0_48 = arith.constant 0 : index
    %80 = vector.load %arg4[%c4, %c0_48] : memref<10x1024xf32, #tpu.memory_space<vmem>>, vector<1x128xf32>
    %c0_49 = arith.constant 0 : index
    %c0_50 = arith.constant 0 : index
    %c0_51 = arith.constant 0 : index
    %81 = vector.load %arg11[%c0_49, %c0_50, %c0_51] : memref<3x128x128xbf16, #tpu.memory_space<vmem>>, vector<1x128x128xbf16>
    %82 = vector.shape_cast %81 : vector<1x128x128xbf16> to vector<128x128xbf16>
    %83 = arith.truncf %79 : vector<8x128xf32> to vector<8x128xbf16>
    %cst_52 = arith.constant dense<0.000000e+00> : vector<8x128xf32>
    %84 = tpu.matmul %83, %82, %cst_52 {dimension_numbers = #tpu.dot_dimension_numbers<[1], [0], [0], [1], [0, 0, 1, 1], [], []>} : vector<8x128xbf16>, vector<128x128xbf16>, vector<8x128xf32> -> vector<8x128xf32>
    %c1_53 = arith.constant 1 : index
    %c0_54 = arith.constant 0 : index
    %c0_55 = arith.constant 0 : index
    %85 = vector.load %arg11[%c1_53, %c0_54, %c0_55] : memref<3x128x128xbf16, #tpu.memory_space<vmem>>, vector<1x128x128xbf16>
    %86 = vector.shape_cast %85 : vector<1x128x128xbf16> to vector<128x128xbf16>
    %87 = arith.truncf %79 : vector<8x128xf32> to vector<8x128xbf16>
    %cst_56 = arith.constant dense<0.000000e+00> : vector<8x128xf32>
    %88 = tpu.matmul %87, %86, %cst_56 {dimension_numbers = #tpu.dot_dimension_numbers<[1], [0], [0], [1], [0, 0, 1, 1], [], []>} : vector<8x128xbf16>, vector<128x128xbf16>, vector<8x128xf32> -> vector<8x128xf32>
    %c2_57 = arith.constant 2 : index
    %c0_58 = arith.constant 0 : index
    %c0_59 = arith.constant 0 : index
    %89 = vector.load %arg11[%c2_57, %c0_58, %c0_59] : memref<3x128x128xbf16, #tpu.memory_space<vmem>>, vector<1x128x128xbf16>
    %90 = vector.shape_cast %89 : vector<1x128x128xbf16> to vector<128x128xbf16>
    %91 = arith.truncf %79 : vector<8x128xf32> to vector<8x128xbf16>
    %cst_60 = arith.constant dense<0.000000e+00> : vector<8x128xf32>
    %92 = tpu.matmul %91, %90, %cst_60 {dimension_numbers = #tpu.dot_dimension_numbers<[1], [0], [0], [1], [0, 0, 1, 1], [], []>} : vector<8x128xbf16>, vector<128x128xbf16>, vector<8x128xf32> -> vector<8x128xf32>
    %93 = tpu.iota {dimensions = array<i32: 0>} : vector<8x128xi32>
    %c0_i32_61 = arith.constant 0 : i32
    %94 = vector.broadcast %c0_i32_61 : i32 to vector<8x128xi32>
    %95 = arith.cmpi eq, %93, %94 : vector<8x128xi32>
    %c1_i32_62 = arith.constant 1 : i32
    %96 = tpu.dynamic_rotate %84 by %c1_i32_62 dim 0 : vector<8x128xf32>, i32 -> vector<8x128xf32>
    %cst_63 = arith.constant 0.000000e+00 : f32
    %97 = vector.broadcast %cst_63 : f32 to vector<8x128xf32>
    %98 = arith.select %95, %97, %96 : vector<8x128xi1>, vector<8x128xf32>
    %99 = arith.addf %98, %88 : vector<8x128xf32>
    %100 = tpu.iota {dimensions = array<i32: 0>} : vector<8x128xi32>
    %c7_i32_64 = arith.constant 7 : i32
    %101 = vector.broadcast %c7_i32_64 : i32 to vector<8x128xi32>
    %102 = arith.cmpi eq, %100, %101 : vector<8x128xi32>
    %c7_i32_65 = arith.constant 7 : i32
    %103 = tpu.dynamic_rotate %92 by %c7_i32_65 dim 0 : vector<8x128xf32>, i32 -> vector<8x128xf32>
    %cst_66 = arith.constant 0.000000e+00 : f32
    %104 = vector.broadcast %cst_66 : f32 to vector<8x128xf32>
    %105 = arith.select %102, %104, %103 : vector<8x128xi1>, vector<8x128xf32>
    %106 = arith.addf %99, %105 : vector<8x128xf32>
    %107 = vector.broadcast %80 : vector<1x128xf32> to vector<8x128xf32>
    %108 = arith.addf %106, %107 : vector<8x128xf32>
    %cst_67 = arith.constant 0.000000e+00 : f32
    %109 = vector.broadcast %cst_67 : f32 to vector<8x128xf32>
    %110 = arith.cmpf oge, %108, %109 : vector<8x128xf32>
    %cst_68 = arith.constant 1.000000e-01 : f32
    %111 = vector.broadcast %cst_68 : f32 to vector<8x128xf32>
    %112 = arith.mulf %111, %108 : vector<8x128xf32>
    %113 = arith.select %110, %108, %112 : vector<8x128xi1>, vector<8x128xf32>
    %c0_69 = arith.constant 0 : index
    %c0_70 = arith.constant 0 : index
    %c0_71 = arith.constant 0 : index
    %114 = vector.load %arg3[%c0_69, %c0_70, %c0_71] : memref<1x16x128xf32, #tpu.memory_space<vmem>>, vector<1x16x128xf32>
    %115 = vector.shape_cast %114 : vector<1x16x128xf32> to vector<16x128xf32>
    %c0_72 = arith.constant 0 : index
    %c0_73 = arith.constant 0 : index
    %116 = vector.load %arg12[%c0_72, %c0_73] : memref<128x256xbf16, #tpu.memory_space<vmem>>, vector<128x256xbf16>
    %117 = arith.truncf %113 : vector<8x128xf32> to vector<8x128xbf16>
    %cst_74 = arith.constant dense<0.000000e+00> : vector<8x256xf32>
    %118 = tpu.matmul %117, %116, %cst_74 {dimension_numbers = #tpu.dot_dimension_numbers<[1], [0], [0], [1], [0, 0, 1, 1], [], []>} : vector<8x128xbf16>, vector<128x256xbf16>, vector<8x256xf32> -> vector<8x256xf32>
    %c0_75 = arith.constant 0 : index
    %c0_76 = arith.constant 0 : index
    %c0_77 = arith.constant 0 : index
    %119 = vector.load %arg13[%c0_75, %c0_76, %c0_77] : memref<2x16x8xbf16, #tpu.memory_space<vmem>>, vector<1x16x8xbf16>
    %120 = vector.shape_cast %119 : vector<1x16x8xbf16> to vector<16x8xbf16>
    %121 = vector.extract_strided_slice %118 {offsets = [0, 0], sizes = [8, 128], strides = [1, 1]} : vector<8x256xf32> to vector<8x128xf32>
    %122 = arith.truncf %121 : vector<8x128xf32> to vector<8x128xbf16>
    %cst_78 = arith.constant dense<0.000000e+00> : vector<16x128xf32>
    %123 = tpu.matmul %120, %122, %cst_78 {dimension_numbers = #tpu.dot_dimension_numbers<[1], [0], [0], [1], [0, 0, 1, 1], [], []>} : vector<16x8xbf16>, vector<8x128xbf16>, vector<16x128xf32> -> vector<16x128xf32>
    %c1_79 = arith.constant 1 : index
    %c0_80 = arith.constant 0 : index
    %c0_81 = arith.constant 0 : index
    %124 = vector.load %arg13[%c1_79, %c0_80, %c0_81] : memref<2x16x8xbf16, #tpu.memory_space<vmem>>, vector<1x16x8xbf16>
    %125 = vector.shape_cast %124 : vector<1x16x8xbf16> to vector<16x8xbf16>
    %126 = vector.extract_strided_slice %118 {offsets = [0, 128], sizes = [8, 128], strides = [1, 1]} : vector<8x256xf32> to vector<8x128xf32>
    %127 = arith.truncf %126 : vector<8x128xf32> to vector<8x128xbf16>
    %cst_82 = arith.constant dense<0.000000e+00> : vector<16x128xf32>
    %128 = tpu.matmul %125, %127, %cst_82 {dimension_numbers = #tpu.dot_dimension_numbers<[1], [0], [0], [1], [0, 0, 1, 1], [], []>} : vector<16x8xbf16>, vector<8x128xbf16>, vector<16x128xf32> -> vector<16x128xf32>
    %129 = arith.addf %123, %128 : vector<16x128xf32>
    %c5 = arith.constant 5 : index
    %c0_83 = arith.constant 0 : index
    %130 = vector.load %arg4[%c5, %c0_83] : memref<10x1024xf32, #tpu.memory_space<vmem>>, vector<1x128xf32>
    %131 = vector.broadcast %130 : vector<1x128xf32> to vector<16x128xf32>
    %132 = arith.addf %129, %131 : vector<16x128xf32>
    %133 = tpu.concatenate %115, %132 in 1 : vector<16x128xf32>, vector<16x128xf32> -> vector<16x256xf32>
    %c0_84 = arith.constant 0 : index
    %c0_85 = arith.constant 0 : index
    %134 = vector.load %arg14[%c0_84, %c0_85] : memref<256x1024xbf16, #tpu.memory_space<vmem>>, vector<256x1024xbf16>
    %135 = arith.truncf %133 : vector<16x256xf32> to vector<16x256xbf16>
    %cst_86 = arith.constant dense<0.000000e+00> : vector<16x1024xf32>
    %136 = tpu.matmul %135, %134, %cst_86 {dimension_numbers = #tpu.dot_dimension_numbers<[1], [0], [0], [1], [0, 0, 1, 1], [], []>} : vector<16x256xbf16>, vector<256x1024xbf16>, vector<16x1024xf32> -> vector<16x1024xf32>
    %c6 = arith.constant 6 : index
    %c0_87 = arith.constant 0 : index
    %137 = vector.load %arg4[%c6, %c0_87] : memref<10x1024xf32, #tpu.memory_space<vmem>>, vector<1x1024xf32>
    %138 = vector.broadcast %137 : vector<1x1024xf32> to vector<16x1024xf32>
    %139 = arith.addf %136, %138 : vector<16x1024xf32>
    %cst_88 = arith.constant 0.000000e+00 : f32
    %140 = vector.broadcast %cst_88 : f32 to vector<16x1024xf32>
    %141 = arith.maximumf %139, %140 : vector<16x1024xf32>
    %c0_89 = arith.constant 0 : index
    %c0_90 = arith.constant 0 : index
    %142 = vector.load %arg15[%c0_89, %c0_90] : memref<1024x32xbf16, #tpu.memory_space<vmem>>, vector<1024x32xbf16>
    %143 = arith.truncf %141 : vector<16x1024xf32> to vector<16x1024xbf16>
    %cst_91 = arith.constant dense<0.000000e+00> : vector<16x32xf32>
    %144 = tpu.matmul %143, %142, %cst_91 {dimension_numbers = #tpu.dot_dimension_numbers<[1], [0], [0], [1], [0, 0, 1, 1], [], []>} : vector<16x1024xbf16>, vector<1024x32xbf16>, vector<16x32xf32> -> vector<16x32xf32>
    %c7 = arith.constant 7 : index
    %c0_92 = arith.constant 0 : index
    %145 = vector.load %arg4[%c7, %c0_92] : memref<10x1024xf32, #tpu.memory_space<vmem>>, vector<1x32xf32>
    %146 = vector.broadcast %145 : vector<1x32xf32> to vector<16x32xf32>
    %147 = arith.addf %144, %146 : vector<16x32xf32>
    %148 = arith.negf %147 : vector<16x32xf32>
    %149 = math.exp %148 : vector<16x32xf32>
    %cst_93 = arith.constant 1.000000e+00 : f32
    %150 = vector.broadcast %cst_93 : f32 to vector<16x32xf32>
    %151 = arith.addf %150, %149 : vector<16x32xf32>
    %152 = arith.divf %150, %151 : vector<16x32xf32>
    %c0_94 = arith.constant 0 : index
    %c0_95 = arith.constant 0 : index
    %153 = vector.load %arg16[%c0_94, %c0_95] : memref<32x128xbf16, #tpu.memory_space<vmem>>, vector<32x128xbf16>
    %154 = arith.truncf %152 : vector<16x32xf32> to vector<16x32xbf16>
    %cst_96 = arith.constant dense<0.000000e+00> : vector<16x128xf32>
    %155 = tpu.matmul %154, %153, %cst_96 {dimension_numbers = #tpu.dot_dimension_numbers<[1], [0], [0], [1], [0, 0, 1, 1], [], []>} : vector<16x32xbf16>, vector<32x128xbf16>, vector<16x128xf32> -> vector<16x128xf32>
    %156 = arith.mulf %115, %155 : vector<16x128xf32>
    %157 = tpu.concatenate %132, %156 in 1 : vector<16x128xf32>, vector<16x128xf32> -> vector<16x256xf32>
    %c8 = arith.constant 8 : index
    %c0_97 = arith.constant 0 : index
    %158 = vector.load %arg4[%c8, %c0_97] : memref<10x1024xf32, #tpu.memory_space<vmem>>, vector<1x128xf32>
    %c0_98 = arith.constant 0 : index
    %c0_99 = arith.constant 0 : index
    %c0_100 = arith.constant 0 : index
    %159 = vector.load %arg17[%c0_98, %c0_99, %c0_100] : memref<3x256x128xbf16, #tpu.memory_space<vmem>>, vector<1x256x128xbf16>
    %160 = vector.shape_cast %159 : vector<1x256x128xbf16> to vector<256x128xbf16>
    %161 = arith.truncf %157 : vector<16x256xf32> to vector<16x256xbf16>
    %cst_101 = arith.constant dense<0.000000e+00> : vector<16x128xf32>
    %162 = tpu.matmul %161, %160, %cst_101 {dimension_numbers = #tpu.dot_dimension_numbers<[1], [0], [0], [1], [0, 0, 1, 1], [], []>} : vector<16x256xbf16>, vector<256x128xbf16>, vector<16x128xf32> -> vector<16x128xf32>
    %c1_102 = arith.constant 1 : index
    %c0_103 = arith.constant 0 : index
    %c0_104 = arith.constant 0 : index
    %163 = vector.load %arg17[%c1_102, %c0_103, %c0_104] : memref<3x256x128xbf16, #tpu.memory_space<vmem>>, vector<1x256x128xbf16>
    %164 = vector.shape_cast %163 : vector<1x256x128xbf16> to vector<256x128xbf16>
    %165 = arith.truncf %157 : vector<16x256xf32> to vector<16x256xbf16>
    %cst_105 = arith.constant dense<0.000000e+00> : vector<16x128xf32>
    %166 = tpu.matmul %165, %164, %cst_105 {dimension_numbers = #tpu.dot_dimension_numbers<[1], [0], [0], [1], [0, 0, 1, 1], [], []>} : vector<16x256xbf16>, vector<256x128xbf16>, vector<16x128xf32> -> vector<16x128xf32>
    %c2_106 = arith.constant 2 : index
    %c0_107 = arith.constant 0 : index
    %c0_108 = arith.constant 0 : index
    %167 = vector.load %arg17[%c2_106, %c0_107, %c0_108] : memref<3x256x128xbf16, #tpu.memory_space<vmem>>, vector<1x256x128xbf16>
    %168 = vector.shape_cast %167 : vector<1x256x128xbf16> to vector<256x128xbf16>
    %169 = arith.truncf %157 : vector<16x256xf32> to vector<16x256xbf16>
    %cst_109 = arith.constant dense<0.000000e+00> : vector<16x128xf32>
    %170 = tpu.matmul %169, %168, %cst_109 {dimension_numbers = #tpu.dot_dimension_numbers<[1], [0], [0], [1], [0, 0, 1, 1], [], []>} : vector<16x256xbf16>, vector<256x128xbf16>, vector<16x128xf32> -> vector<16x128xf32>
    %171 = tpu.iota {dimensions = array<i32: 0>} : vector<16x128xi32>
    %c0_i32_110 = arith.constant 0 : i32
    %172 = vector.broadcast %c0_i32_110 : i32 to vector<16x128xi32>
    %173 = arith.cmpi eq, %171, %172 : vector<16x128xi32>
    %c1_i32_111 = arith.constant 1 : i32
    %174 = tpu.dynamic_rotate %162 by %c1_i32_111 dim 0 : vector<16x128xf32>, i32 -> vector<16x128xf32>
    %cst_112 = arith.constant 0.000000e+00 : f32
    %175 = vector.broadcast %cst_112 : f32 to vector<16x128xf32>
    %176 = arith.select %173, %175, %174 : vector<16x128xi1>, vector<16x128xf32>
    %177 = arith.addf %176, %166 : vector<16x128xf32>
    %178 = tpu.iota {dimensions = array<i32: 0>} : vector<16x128xi32>
    %c15_i32 = arith.constant 15 : i32
    %179 = vector.broadcast %c15_i32 : i32 to vector<16x128xi32>
    %180 = arith.cmpi eq, %178, %179 : vector<16x128xi32>
    %c15_i32_113 = arith.constant 15 : i32
    %181 = tpu.dynamic_rotate %170 by %c15_i32_113 dim 0 : vector<16x128xf32>, i32 -> vector<16x128xf32>
    %cst_114 = arith.constant 0.000000e+00 : f32
    %182 = vector.broadcast %cst_114 : f32 to vector<16x128xf32>
    %183 = arith.select %180, %182, %181 : vector<16x128xi1>, vector<16x128xf32>
    %184 = arith.addf %177, %183 : vector<16x128xf32>
    %185 = vector.broadcast %158 : vector<1x128xf32> to vector<16x128xf32>
    %186 = arith.addf %184, %185 : vector<16x128xf32>
    %cst_115 = arith.constant 0.000000e+00 : f32
    %187 = vector.broadcast %cst_115 : f32 to vector<16x128xf32>
    %188 = arith.cmpf oge, %186, %187 : vector<16x128xf32>
    %cst_116 = arith.constant 1.000000e-01 : f32
    %189 = vector.broadcast %cst_116 : f32 to vector<16x128xf32>
    %190 = arith.mulf %189, %186 : vector<16x128xf32>
    %191 = arith.select %188, %186, %190 : vector<16x128xi1>, vector<16x128xf32>
    %c9 = arith.constant 9 : index
    %c0_117 = arith.constant 0 : index
    %192 = vector.load %arg4[%c9, %c0_117] : memref<10x1024xf32, #tpu.memory_space<vmem>>, vector<1x128xf32>
    %c0_118 = arith.constant 0 : index
    %c0_119 = arith.constant 0 : index
    %c0_120 = arith.constant 0 : index
    %193 = vector.load %arg18[%c0_118, %c0_119, %c0_120] : memref<3x128x128xbf16, #tpu.memory_space<vmem>>, vector<1x128x128xbf16>
    %194 = vector.shape_cast %193 : vector<1x128x128xbf16> to vector<128x128xbf16>
    %195 = arith.truncf %191 : vector<16x128xf32> to vector<16x128xbf16>
    %cst_121 = arith.constant dense<0.000000e+00> : vector<16x128xf32>
    %196 = tpu.matmul %195, %194, %cst_121 {dimension_numbers = #tpu.dot_dimension_numbers<[1], [0], [0], [1], [0, 0, 1, 1], [], []>} : vector<16x128xbf16>, vector<128x128xbf16>, vector<16x128xf32> -> vector<16x128xf32>
    %c1_122 = arith.constant 1 : index
    %c0_123 = arith.constant 0 : index
    %c0_124 = arith.constant 0 : index
    %197 = vector.load %arg18[%c1_122, %c0_123, %c0_124] : memref<3x128x128xbf16, #tpu.memory_space<vmem>>, vector<1x128x128xbf16>
    %198 = vector.shape_cast %197 : vector<1x128x128xbf16> to vector<128x128xbf16>
    %199 = arith.truncf %191 : vector<16x128xf32> to vector<16x128xbf16>
    %cst_125 = arith.constant dense<0.000000e+00> : vector<16x128xf32>
    %200 = tpu.matmul %199, %198, %cst_125 {dimension_numbers = #tpu.dot_dimension_numbers<[1], [0], [0], [1], [0, 0, 1, 1], [], []>} : vector<16x128xbf16>, vector<128x128xbf16>, vector<16x128xf32> -> vector<16x128xf32>
    %c2_126 = arith.constant 2 : index
    %c0_127 = arith.constant 0 : index
    %c0_128 = arith.constant 0 : index
    %201 = vector.load %arg18[%c2_126, %c0_127, %c0_128] : memref<3x128x128xbf16, #tpu.memory_space<vmem>>, vector<1x128x128xbf16>
    %202 = vector.shape_cast %201 : vector<1x128x128xbf16> to vector<128x128xbf16>
    %203 = arith.truncf %191 : vector<16x128xf32> to vector<16x128xbf16>
    %cst_129 = arith.constant dense<0.000000e+00> : vector<16x128xf32>
    %204 = tpu.matmul %203, %202, %cst_129 {dimension_numbers = #tpu.dot_dimension_numbers<[1], [0], [0], [1], [0, 0, 1, 1], [], []>} : vector<16x128xbf16>, vector<128x128xbf16>, vector<16x128xf32> -> vector<16x128xf32>
    %205 = tpu.iota {dimensions = array<i32: 0>} : vector<16x128xi32>
    %c0_i32_130 = arith.constant 0 : i32
    %206 = vector.broadcast %c0_i32_130 : i32 to vector<16x128xi32>
    %207 = arith.cmpi eq, %205, %206 : vector<16x128xi32>
    %c1_i32_131 = arith.constant 1 : i32
    %208 = tpu.dynamic_rotate %196 by %c1_i32_131 dim 0 : vector<16x128xf32>, i32 -> vector<16x128xf32>
    %cst_132 = arith.constant 0.000000e+00 : f32
    %209 = vector.broadcast %cst_132 : f32 to vector<16x128xf32>
    %210 = arith.select %207, %209, %208 : vector<16x128xi1>, vector<16x128xf32>
    %211 = arith.addf %210, %200 : vector<16x128xf32>
    %212 = tpu.iota {dimensions = array<i32: 0>} : vector<16x128xi32>
    %c15_i32_133 = arith.constant 15 : i32
    %213 = vector.broadcast %c15_i32_133 : i32 to vector<16x128xi32>
    %214 = arith.cmpi eq, %212, %213 : vector<16x128xi32>
    %c15_i32_134 = arith.constant 15 : i32
    %215 = tpu.dynamic_rotate %204 by %c15_i32_134 dim 0 : vector<16x128xf32>, i32 -> vector<16x128xf32>
    %cst_135 = arith.constant 0.000000e+00 : f32
    %216 = vector.broadcast %cst_135 : f32 to vector<16x128xf32>
    %217 = arith.select %214, %216, %215 : vector<16x128xi1>, vector<16x128xf32>
    %218 = arith.addf %211, %217 : vector<16x128xf32>
    %219 = vector.broadcast %192 : vector<1x128xf32> to vector<16x128xf32>
    %220 = arith.addf %218, %219 : vector<16x128xf32>
    %cst_136 = arith.constant 0.000000e+00 : f32
    %221 = vector.broadcast %cst_136 : f32 to vector<16x128xf32>
    %222 = arith.cmpf oge, %220, %221 : vector<16x128xf32>
    %cst_137 = arith.constant 1.000000e-01 : f32
    %223 = vector.broadcast %cst_137 : f32 to vector<16x128xf32>
    %224 = arith.mulf %223, %220 : vector<16x128xf32>
    %225 = arith.select %222, %220, %224 : vector<16x128xi1>, vector<16x128xf32>
    %c0_138 = arith.constant 0 : index
    %c0_139 = arith.constant 0 : index
    %c0_140 = arith.constant 0 : index
    %226 = vector.load %arg19[%c0_138, %c0_139, %c0_140] : memref<1x16x128xf32, #tpu.memory_space<vmem>>, vector<1x16x128xf32>
    %227 = vector.shape_cast %226 : vector<1x16x128xf32> to vector<16x128xf32>
    %228 = vector.shape_cast %225 : vector<16x128xf32> to vector<1x16x128xf32>
    tpu.vector_store %arg19[%c0_138, %c0_139, %c0_140], %228 {strides = array<i32>} : memref<1x16x128xf32, #tpu.memory_space<vmem>>, vector<1x16x128xf32>,
    return
  }
  func.func @transform_0(%arg0: i32) -> (i32, i32, i32) {
    %c0_i32 = arith.constant 0 : i32
    %c0_i32_0 = arith.constant 0 : i32
    %c0_i32_1 = arith.constant 0 : i32
    return %arg0, %c0_i32, %c0_i32_0 : i32, i32, i32
  }
  func.func @transform_1(%arg0: i32) -> (i32, i32, i32) {
    %c0_i32 = arith.constant 0 : i32
    %c0_i32_0 = arith.constant 0 : i32
    %c0_i32_1 = arith.constant 0 : i32
    return %arg0, %c0_i32, %c0_i32_0 : i32, i32, i32
  }
  func.func @transform_2(%arg0: i32) -> (i32, i32, i32) {
    %c0_i32 = arith.constant 0 : i32
    %c0_i32_0 = arith.constant 0 : i32
    %c0_i32_1 = arith.constant 0 : i32
    return %arg0, %c0_i32, %c0_i32_0 : i32, i32, i32
  }
  func.func @transform_3(%arg0: i32) -> (i32, i32) {
    %c0_i32 = arith.constant 0 : i32
    %c0_i32_0 = arith.constant 0 : i32
    %c0_i32_1 = arith.constant 0 : i32
    return %c0_i32, %c0_i32_0 : i32, i32
  }
  func.func @transform_4(%arg0: i32) -> (i32, i32) {
    %c0_i32 = arith.constant 0 : i32
    %c0_i32_0 = arith.constant 0 : i32
    %c0_i32_1 = arith.constant 0 : i32
    return %c0_i32, %c0_i32_0 : i32, i32
  }
  func.func @transform_5(%arg0: i32) -> (i32, i32, i32) {
    %c0_i32 = arith.constant 0 : i32
    %c0_i32_0 = arith.constant 0 : i32
    %c0_i32_1 = arith.constant 0 : i32
    %c0_i32_2 = arith.constant 0 : i32
    return %c0_i32, %c0_i32_0, %c0_i32_1 : i32, i32, i32
  }
  func.func @transform_6(%arg0: i32) -> (i32, i32) {
    %c0_i32 = arith.constant 0 : i32
    %c0_i32_0 = arith.constant 0 : i32
    %c0_i32_1 = arith.constant 0 : i32
    return %c0_i32, %c0_i32_0 : i32, i32
  }
  func.func @transform_7(%arg0: i32) -> (i32, i32) {
    %c0_i32 = arith.constant 0 : i32
    %c0_i32_0 = arith.constant 0 : i32
    %c0_i32_1 = arith.constant 0 : i32
    return %c0_i32, %c0_i32_0 : i32, i32
  }
  func.func @transform_8(%arg0: i32) -> (i32, i32) {
    %c0_i32 = arith.constant 0 : i32
    %c0_i32_0 = arith.constant 0 : i32
    %c0_i32_1 = arith.constant 0 : i32
    return %c0_i32, %c0_i32_0 : i32, i32
  }
  func.func @transform_9(%arg0: i32) -> (i32, i32, i32) {
    %c0_i32 = arith.constant 0 : i32
    %c0_i32_0 = arith.constant 0 : i32
    %c0_i32_1 = arith.constant 0 : i32
    %c0_i32_2 = arith.constant 0 : i32
    return %c0_i32, %c0_i32_0, %c0_i32_1 : i32, i32, i32
  }
  func.func @transform_10(%arg0: i32) -> (i32, i32, i32) {
    %c0_i32 = arith.constant 0 : i32
    %c0_i32_0 = arith.constant 0 : i32
    %c0_i32_1 = arith.constant 0 : i32
    %c0_i32_2 = arith.constant 0 : i32
    return %c0_i32, %c0_i32_0, %c0_i32_1 : i32, i32, i32
  }
  func.func @transform_11(%arg0: i32) -> (i32, i32) {
    %c0_i32 = arith.constant 0 : i32
    %c0_i32_0 = arith.constant 0 : i32
    %c0_i32_1 = arith.constant 0 : i32
    return %c0_i32, %c0_i32_0 : i32, i32
  }
  func.func @transform_12(%arg0: i32) -> (i32, i32, i32) {
    %c0_i32 = arith.constant 0 : i32
    %c0_i32_0 = arith.constant 0 : i32
    %c0_i32_1 = arith.constant 0 : i32
    %c0_i32_2 = arith.constant 0 : i32
    return %c0_i32, %c0_i32_0, %c0_i32_1 : i32, i32, i32
  }
  func.func @transform_13(%arg0: i32) -> (i32, i32) {
    %c0_i32 = arith.constant 0 : i32
    %c0_i32_0 = arith.constant 0 : i32
    %c0_i32_1 = arith.constant 0 : i32
    return %c0_i32, %c0_i32_0 : i32, i32
  }
  func.func @transform_14(%arg0: i32) -> (i32, i32) {
    %c0_i32 = arith.constant 0 : i32
    %c0_i32_0 = arith.constant 0 : i32
    %c0_i32_1 = arith.constant 0 : i32
    return %c0_i32, %c0_i32_0 : i32, i32
  }
  func.func @transform_15(%arg0: i32) -> (i32, i32) {
    %c0_i32 = arith.constant 0 : i32
    %c0_i32_0 = arith.constant 0 : i32
    %c0_i32_1 = arith.constant 0 : i32
    return %c0_i32, %c0_i32_0 : i32, i32
  }
  func.func @transform_16(%arg0: i32) -> (i32, i32, i32) {
    %c0_i32 = arith.constant 0 : i32
    %c0_i32_0 = arith.constant 0 : i32
    %c0_i32_1 = arith.constant 0 : i32
    %c0_i32_2 = arith.constant 0 : i32
    return %c0_i32, %c0_i32_0, %c0_i32_1 : i32, i32, i32
  }
  func.func @transform_17(%arg0: i32) -> (i32, i32, i32) {
    %c0_i32 = arith.constant 0 : i32
    %c0_i32_0 = arith.constant 0 : i32
    %c0_i32_1 = arith.constant 0 : i32
    %c0_i32_2 = arith.constant 0 : i32
    return %c0_i32, %c0_i32_0, %c0_i32_1 : i32, i32, i32
  }
  func.func @transform_18(%arg0: i32) -> (i32, i32, i32) {
    %c0_i32 = arith.constant 0 : i32
    %c0_i32_0 = arith.constant 0 : i32
    %c0_i32_1 = arith.constant 0 : i32
    return %arg0, %c0_i32, %c0_i32_0 : i32, i32, i32
  }
}

</mosaic_0001>

<bundles_post_ra>
// kernel: decoder_forward_pallas.1
= control target key start
LH: loop header
LB: loop body
LE: loop exit
PB: predicated region body
PF: predicated region fallthrough
CT: control target
= control target key end

     0   :  { %v6526_v1 = vmov 0   ;;  %v6527_v19 = vmov 0.0   ;;  %vm6528_vm0 = vmmov 0   ;;  %vm209_vm1 = vcmask 1041408   ;;  %s8278_s4 = inlined_call_operand.vmem [shape: bf16[128,256], index: 4, kind: input, shape index: {}]   ;;  %s8279_s0 = inlined_call_operand.vmem [shape: f32[1,4,128], index: 0, kind: input, shape index: {}]   ;;  %s8280_s6 = inlined_call_operand.vmem [shape: bf16[256,512], index: 6, kind: input, shape index: {}]   ;;  %s8281_s5 = inlined_call_operand.vmem [shape: bf16[2,8,4], index: 5, kind: input, shape index: {}]   ;;  %s8282_s7 = inlined_call_operand.vmem [shape: bf16[512,16], index: 7, kind: input, shape index: {}]   ;;  %s8283_s3 = inlined_call_operand.vmem [shape: f32[10,1024], index: 3, kind: input, shape index: {}]   ;;  %s8284_s1 = inlined_call_operand.vmem [shape: f32[1,8,128], index: 1, kind: input, shape index: {}]   ;;  %s8285_s8 = inlined_call_operand.vmem [shape: bf16[16,128], index: 8, kind: input, shape index: {}]   ;;  %s8286_s9 = inlined_call_operand.vmem [shape: bf16[3,256,128], index: 9, kind: input, shape index: {}]   ;;  %s8287_s10 = inlined_call_operand.vmem [shape: bf16[3,128,128], index: 10, kind: input, shape index: {}]   ;;  %s8288_s11 = inlined_call_operand.vmem [shape: bf16[128,256], index: 11, kind: input, shape index: {}]   ;;  %s8289_s12 = inlined_call_operand.vmem [shape: bf16[2,16,8], index: 12, kind: input, shape index: {}]   ;;  %s8290_s13 = inlined_call_operand.vmem [shape: bf16[256,1024], index: 13, kind: input, shape index: {}]   ;;  %s8291_s14 = inlined_call_operand.vmem [shape: bf16[1024,32], index: 14, kind: input, shape index: {}]   ;;  %s8292_s2 = inlined_call_operand.vmem [shape: f32[1,16,128], index: 2, kind: input, shape index: {}]   ;;  %s8293_s15 = inlined_call_operand.vmem [shape: bf16[32,128], index: 15, kind: input, shape index: {}]   ;;  %s8294_s16 = inlined_call_operand.vmem [shape: bf16[3,256,128], index: 16, kind: input, shape index: {}]   ;;  %s8295_s17 = inlined_call_operand.vmem [shape: bf16[3,128,128], index: 17, kind: input, shape index: {}]   ;;  %s8296_s18 = inlined_call_operand.vmem [shape: f32[1,16,128], index: 18, kind: output, shape index: {}]  }
   0x1   :  { %8299 = sst [smem:[#allocation2_spill]] %s8278_s4  ;;  %191 = vmatprep.mubr.bf16.mxu0 %v6526_v1  ;;  %5962 = vmatprep.subr.bf16.mxu1 %v6527_v19  ;;  %v4971_v51 = vld [vmem:[%s8281_s5 + $0x4] sm:$0xf]  ;;  %vm205_vm2 = vcmask 31744   ;;  %v200_v54 = vld [vmem:[%s8281_s5] sm:$0xf] }
   0x2   :  { %8300 = sst [smem:[#allocation3_spill]] %s8279_s0  ;;  %s8302_s29 = sld [smem:[#allocation2_spill]]  ;;  %5964 = vmatprep.mubr.msk.bf16.mxu1 %vm6528_vm0, %v6527_v19  ;;  %vm1152_vm3 = vcmask 130048   ;;  %vm2201_vm8 = vcmask 1043456   ;;  %vm2197_vm9 = vcmask 64512   ;;  %vm4018_vm10 = vcmask 261120  }
   0x3   :  { %8301 = sst [smem:[#allocation4_spill]] %s8280_s6  ;;  %s8303_s20 = sld [smem:[#allocation3_spill]] }
   0x4   :  { %s8304_s6 = sld [smem:[#allocation4_spill]] }
   0x8   :  { %v6123_v0 = vld [vmem:[%s8302_s29 + $0x4] ss:$8 sps:$4 sm:$0xff]   ;;  %v6125_v2 = vld [vmem:[%s8302_s29] ss:$8 sps:$4 sm:$0xff]   ;;  %v6126_v3 = vld [vmem:[%s8302_s29 + $0x14] ss:$8 sps:$4 sm:$0xff]  }
   0x9   :  { %159 = vmatprep.subr.bf16.mxu0 %v6123_v0  ;;  %v6128_v4 = vld [vmem:[%s8302_s29 + $0x10] ss:$8 sps:$4 sm:$0xff]   ;;  %v6129_v5 = vld [vmem:[%s8302_s29 + $0x24] ss:$8 sps:$4 sm:$0xff]   ;;  %v6131_v6 = vld [vmem:[%s8302_s29 + $0x20] ss:$8 sps:$4 sm:$0xff]  }
   0xa   :  { %160 = vmatpush1.bf16.msra.mxu0 %v6125_v2  ;;  %v6132_v7 = vld [vmem:[%s8302_s29 + $0x34] ss:$8 sps:$4 sm:$0xff]   ;;  %v6134_v8 = vld [vmem:[%s8302_s29 + $0x30] ss:$8 sps:$4 sm:$0xff]   ;;  %v6135_v9 = vld [vmem:[%s8302_s29 + $0x44] ss:$8 sps:$4 sm:$0xff]  }
   0xb   :  { %161 = vmatprep.subr.bf16.mxu0 %v6126_v3  ;;  %v6137_v10 = vld [vmem:[%s8302_s29 + $0x40] ss:$8 sps:$4 sm:$0xff]   ;;  %v6138_v11 = vld [vmem:[%s8302_s29 + $0x54] ss:$8 sps:$4 sm:$0xff]   ;;  %v6140_v12 = vld [vmem:[%s8302_s29 + $0x50] ss:$8 sps:$4 sm:$0xff]  }
   0xc   :  { %v6141_v13 = vld [vmem:[%s8302_s29 + $0x64] ss:$8 sps:$4 sm:$0xff]   ;;  %v6143_v14 = vld [vmem:[%s8302_s29 + $0x60] ss:$8 sps:$4 sm:$0xff]   ;;  %v6144_v15 = vld [vmem:[%s8302_s29 + $0x74] ss:$8 sps:$4 sm:$0xff]  }
   0xd   :  { %v6146_v16 = vld [vmem:[%s8302_s29 + $0x70] ss:$8 sps:$4 sm:$0xff]   ;;  %v60_v17 = vld [vmem:[%s8303_s20] sm:$0xf]  ;;  %v6152_v21 = vld [vmem:[%s8304_s6 + $0xc] ss:$16 sps:$4 sm:$0xff]  }
   0xe   :  { %162 = vmatpush1.bf16.msra.mxu0 %v6128_v4  ;;  %v78_v18 = vpack.c.bf16 %v60_v17, %v60_v17  ;;  %v6150_v20 = vld [vmem:[%s8304_s6 + $0x8] ss:$16 sps:$4 sm:$0xff]   ;;  %v6158_v23 = vld [vmem:[%s8304_s6 + $0x2c] ss:$16 sps:$4 sm:$0xff]   ;;  %v6149_v52 = vld [vmem:[%s8304_s6 + $0x4] ss:$16 sps:$4 sm:$0xff]  }
   0xf   :  { %163 = vmatprep.subr.bf16.mxu0 %v6129_v5  ;;  %v6156_v22 = vld [vmem:[%s8304_s6 + $0x28] ss:$16 sps:$4 sm:$0xff]   ;;  %v6164_v24 = vld [vmem:[%s8304_s6 + $0x4c] ss:$16 sps:$4 sm:$0xff]   ;;  %v6147_v55 = vld [vmem:[%s8304_s6] ss:$16 sps:$4 sm:$0xff]  }
  0x10   :  { %v6162_v25 = vld [vmem:[%s8304_s6 + $0x48] ss:$16 sps:$4 sm:$0xff]   ;;  %v6170_v26 = vld [vmem:[%s8304_s6 + $0x6c] ss:$16 sps:$4 sm:$0xff]   ;;  %v6155_v56 = vld [vmem:[%s8304_s6 + $0x24] ss:$16 sps:$4 sm:$0xff]  }
  0x11   :  { %v6168_v27 = vld [vmem:[%s8304_s6 + $0x68] ss:$16 sps:$4 sm:$0xff]   ;;  %v6176_v28 = vld [vmem:[%s8304_s6 + $0x8c] ss:$16 sps:$4 sm:$0xff]   ;;  %v6153_v57 = vld [vmem:[%s8304_s6 + $0x20] ss:$16 sps:$4 sm:$0xff]  }
  0x12   :  { %164 = vmatpush1.bf16.msra.mxu0 %v6131_v6  ;;  %v6174_v29 = vld [vmem:[%s8304_s6 + $0x88] ss:$16 sps:$4 sm:$0xff]   ;;  %v6182_v30 = vld [vmem:[%s8304_s6 + $0xac] ss:$16 sps:$4 sm:$0xff]   ;;  %v6161_v58 = vld [vmem:[%s8304_s6 + $0x44] ss:$16 sps:$4 sm:$0xff]  }
  0x13   :  { %165 = vmatprep.subr.bf16.mxu0 %v6132_v7  ;;  %v6180_v31 = vld [vmem:[%s8304_s6 + $0xa8] ss:$16 sps:$4 sm:$0xff]   ;;  %v6188_v32 = vld [vmem:[%s8304_s6 + $0xcc] ss:$16 sps:$4 sm:$0xff]   ;;  %v6159_v59 = vld [vmem:[%s8304_s6 + $0x40] ss:$16 sps:$4 sm:$0xff]  }
  0x14   :  { %v6186_v33 = vld [vmem:[%s8304_s6 + $0xc8] ss:$16 sps:$4 sm:$0xff]   ;;  %v6194_v34 = vld [vmem:[%s8304_s6 + $0xec] ss:$16 sps:$4 sm:$0xff]   ;;  %v6167_v60 = vld [vmem:[%s8304_s6 + $0x64] ss:$16 sps:$4 sm:$0xff]  }
  0x15   :  { %v6192_v35 = vld [vmem:[%s8304_s6 + $0xe8] ss:$16 sps:$4 sm:$0xff]   ;;  %v6200_v36 = vld [vmem:[%s8304_s6 + $0x10c] ss:$16 sps:$4 sm:$0xff]   ;;  %v6165_v61 = vld [vmem:[%s8304_s6 + $0x60] ss:$16 sps:$4 sm:$0xff]  }
  0x16   :  { %166 = vmatpush1.bf16.msra.mxu0 %v6134_v8  ;;  %v6198_v37 = vld [vmem:[%s8304_s6 + $0x108] ss:$16 sps:$4 sm:$0xff]   ;;  %v6206_v38 = vld [vmem:[%s8304_s6 + $0x12c] ss:$16 sps:$4 sm:$0xff]   ;;  %v6173_v62 = vld [vmem:[%s8304_s6 + $0x84] ss:$16 sps:$4 sm:$0xff]  }
  0x17   :  { %167 = vmatprep.subr.bf16.mxu0 %v6135_v9  ;;  %v6204_v39 = vld [vmem:[%s8304_s6 + $0x128] ss:$16 sps:$4 sm:$0xff]   ;;  %v6212_v40 = vld [vmem:[%s8304_s6 + $0x14c] ss:$16 sps:$4 sm:$0xff]   ;;  %v6171_v63 = vld [vmem:[%s8304_s6 + $0x80] ss:$16 sps:$4 sm:$0xff]  }
  0x18   :  { %v6210_v41 = vld [vmem:[%s8304_s6 + $0x148] ss:$16 sps:$4 sm:$0xff]   ;;  %v6218_v42 = vld [vmem:[%s8304_s6 + $0x16c] ss:$16 sps:$4 sm:$0xff]   ;;  %v6179_v0 = vld [vmem:[%s8304_s6 + $0xa4] ss:$16 sps:$4 sm:$0xff]  }
  0x19   :  { %v6216_v43 = vld [vmem:[%s8304_s6 + $0x168] ss:$16 sps:$4 sm:$0xff]   ;;  %v6177_v2 = vld [vmem:[%s8304_s6 + $0xa0] ss:$16 sps:$4 sm:$0xff]   ;;  %v6185_v3 = vld [vmem:[%s8304_s6 + $0xc4] ss:$16 sps:$4 sm:$0xff]  }
  0x1a   :  { %168 = vmatpush1.bf16.msra.mxu0 %v6137_v10  ;;  %v6183_v4 = vld [vmem:[%s8304_s6 + $0xc0] ss:$16 sps:$4 sm:$0xff]   ;;  %v6191_v5 = vld [vmem:[%s8304_s6 + $0xe4] ss:$16 sps:$4 sm:$0xff]  }
  0x1b   :  { %169 = vmatprep.subr.bf16.mxu0 %v6138_v11  ;;  %v6189_v6 = vld [vmem:[%s8304_s6 + $0xe0] ss:$16 sps:$4 sm:$0xff]   ;;  %v6197_v7 = vld [vmem:[%s8304_s6 + $0x104] ss:$16 sps:$4 sm:$0xff]  }
  0x1c   :  { %v6195_v8 = vld [vmem:[%s8304_s6 + $0x100] ss:$16 sps:$4 sm:$0xff]   ;;  %v6203_v9 = vld [vmem:[%s8304_s6 + $0x124] ss:$16 sps:$4 sm:$0xff]  }
  0x1d   :  { %v6201_v10 = vld [vmem:[%s8304_s6 + $0x120] ss:$16 sps:$4 sm:$0xff]   ;;  %v6209_v11 = vld [vmem:[%s8304_s6 + $0x144] ss:$16 sps:$4 sm:$0xff]  }
  0x1e   :  { %170 = vmatpush1.bf16.msra.mxu0 %v6140_v12  ;;  %v6207_v12 = vld [vmem:[%s8304_s6 + $0x140] ss:$16 sps:$4 sm:$0xff]  }
  0x1f   :  { %171 = vmatprep.subr.bf16.mxu0 %v6141_v13  ;;  %v6215_v13 = vld [vmem:[%s8304_s6 + $0x164] ss:$16 sps:$4 sm:$0xff]   ;;  %v6219_v17 = vld [vmem:[%s8304_s6 + $0x180] ss:$16 sps:$4 sm:$0xff]  }
  0x22   :  { %172 = vmatpush1.bf16.msra.mxu0 %v6143_v14  ;;  %v6213_v14 = vld [vmem:[%s8304_s6 + $0x160] ss:$16 sps:$4 sm:$0xff]  }
  0x23   :  { %173 = vmatprep.subr.bf16.mxu0 %v6144_v15  ;;  %v6221_v15 = vld [vmem:[%s8304_s6 + $0x184] ss:$16 sps:$4 sm:$0xff]  }
  0x26   :  { %174 = vmatpush1.bf16.msra.mxu0 %v6146_v16  ;;  %v6224_v16 = vld [vmem:[%s8304_s6 + $0x18c] ss:$16 sps:$4 sm:$0xff]  }
  0x27   :  { %751 = vmatprep.subr.bf16.mxu0 %v6152_v21  ;;  %v6230_v21 = vld [vmem:[%s8304_s6 + $0x1ac] ss:$16 sps:$4 sm:$0xff]  }
  0x29   :  { %192 = vmatmul.mubr.bf16.vlgmr.msra.gmra.mrb[0].mxu0 %v78_v18  ;;  %v6222_v18 = vld [vmem:[%s8304_s6 + $0x188] ss:$16 sps:$4 sm:$0xff]  }
  0x2a   :  { %752 = vmatpush1.bf16.msra.mxu0 %v6150_v20  ;;  %v6227_v20 = vld [vmem:[%s8304_s6 + $0x1a4] ss:$16 sps:$4 sm:$0xff]  }
  0x2b   :  { %753 = vmatprep.subr.bf16.mxu0 %v6158_v23  ;;  %v6228_v23 = vld [vmem:[%s8304_s6 + $0x1a8] ss:$16 sps:$4 sm:$0xff]  }
  0x2e   :  { %754 = vmatpush1.bf16.msra.mxu0 %v6156_v22  ;;  %v6225_v22 = vld [vmem:[%s8304_s6 + $0x1a0] ss:$16 sps:$4 sm:$0xff]  }
  0x2f   :  { %755 = vmatprep.subr.bf16.mxu0 %v6164_v24  ;;  %v6233_v24 = vld [vmem:[%s8304_s6 + $0x1c4] ss:$16 sps:$4 sm:$0xff]  }
  0x32   :  { %756 = vmatpush1.bf16.msra.mxu0 %v6162_v25  ;;  %v6236_v25 = vld [vmem:[%s8304_s6 + $0x1cc] ss:$16 sps:$4 sm:$0xff]  }
  0x33   :  { %757 = vmatprep.subr.bf16.mxu0 %v6170_v26  ;;  %v6231_v26 = vld [vmem:[%s8304_s6 + $0x1c0] ss:$16 sps:$4 sm:$0xff]  }
  0x36   :  { %758 = vmatpush1.bf16.msra.mxu0 %v6168_v27  ;;  %v6234_v27 = vld [vmem:[%s8304_s6 + $0x1c8] ss:$16 sps:$4 sm:$0xff]  }
  0x37   :  { %759 = vmatprep.subr.bf16.mxu0 %v6176_v28  ;;  %v6239_v28 = vld [vmem:[%s8304_s6 + $0x1e4] ss:$16 sps:$4 sm:$0xff]  }
  0x3a   :  { %760 = vmatpush1.bf16.msra.mxu0 %v6174_v29  ;;  %v6242_v29 = vld [vmem:[%s8304_s6 + $0x1ec] ss:$16 sps:$4 sm:$0xff]  }
  0x3b   :  { %761 = vmatprep.subr.bf16.mxu0 %v6182_v30  ;;  %v6237_v30 = vld [vmem:[%s8304_s6 + $0x1e0] ss:$16 sps:$4 sm:$0xff]  }
  0x3e   :  { %762 = vmatpush1.bf16.msra.mxu0 %v6180_v31  ;;  %v6240_v31 = vld [vmem:[%s8304_s6 + $0x1e8] ss:$16 sps:$4 sm:$0xff]  }
  0x3f   :  { %763 = vmatprep.subr.bf16.mxu0 %v6188_v32  ;;  %v6243_v32 = vld [vmem:[%s8282_s7 + $0x40] sm:$0xff]  }
  0x42   :  { %764 = vmatpush1.bf16.msra.mxu0 %v6186_v33  ;;  %v6244_v33 = vld [vmem:[%s8282_s7 + $0xc0] sm:$0xff]  }
  0x43   :  { %765 = vmatprep.subr.bf16.mxu0 %v6194_v34 }
  0x46   :  { %766 = vmatpush1.bf16.msra.mxu0 %v6192_v35 }
  0x47   :  { %767 = vmatprep.subr.bf16.mxu0 %v6200_v36 }
  0x4a   :  { %768 = vmatpush1.bf16.msra.mxu0 %v6198_v37 }
  0x4b   :  { %769 = vmatprep.subr.bf16.mxu0 %v6206_v38 }
  0x4e   :  { %770 = vmatpush1.bf16.msra.mxu0 %v6204_v39  ;;  %v299_v39 = vld [vmem:[%s8283_s3] ss:$0 sm:$0xff] }
  0x4f   :  { %771 = vmatprep.subr.bf16.mxu0 %v6212_v40 }
  0x52   :  { %772 = vmatpush1.bf16.msra.mxu0 %v6210_v41 }
  0x53   :  { %773 = vmatprep.subr.bf16.mxu0 %v6218_v42  ;;  %v6892_v42 = vld [vmem:[%s8284_s1] sm:$0xff] }
  0x56   :  { %774 = vmatpush1.bf16.msra.mxu0 %v6216_v43 }
  0x57   :  { %775 = vmatprep.subr.bf16.mxu0 %v6224_v16 }
  0x5a   :  { %776 = vmatpush1.bf16.msra.mxu0 %v6222_v18 }
  0x5b   :  { %777 = vmatprep.subr.bf16.mxu0 %v6230_v21 }
  0x5e   :  { %778 = vmatpush1.bf16.msra.mxu0 %v6228_v23 }
  0x5f   :  { %779 = vmatprep.subr.bf16.mxu0 %v6236_v25 }
  0x62   :  { %780 = vmatpush1.bf16.msra.mxu0 %v6234_v27 }
  0x63   :  { %781 = vmatprep.subr.bf16.mxu0 %v6242_v29 }
  0x66   :  { %782 = vmatpush1.bf16.msra.mxu0 %v6240_v31 }
  0x67   :  { %5657 = vmatprep.subr.bf16.mxu0 %v6244_v33 }
  0xfc   :  { %v193_v44 = vpop.f32.mrb[0].mxu0 }
  0xfd   :  { %v195_v45 = vpop.f32.mrb[1].mxu0  ;;  %v201_v49 = vpack.c.bf16 %v193_v44, %v193_v44 }
  0xfe   :  { %v204_v46 = vpack.c.bf16 %v195_v45, %v195_v45  ;;  %v197_v47 = vpop.f32.mrb[2].mxu0 }
  0xff   :  { %v198_v48 = vpop.f32.mrb[3].mxu0  ;;  %v257_v53 = vsel %vm209_vm1, %v201_v49, 0  ;;  %v6246_v49 = vld [vmem:[%s8282_s7 + $0x80] sm:$0xff]  }
 0x100   :  { %v211_v50 = vsel %vm209_vm1, %v204_v46, 0  ;;  %v365_v46 = vpack.c.bf16 %v6892_v42, %v6892_v42  ;;  %v6245_v48 = vld [vmem:[%s8282_s7] sm:$0xff]  }
 0x101   :  { %5963 = vmatpush3.bf16.msra.mxu1 %v211_v50  ;;  %v6247_v50 = vld [vmem:[%s8282_s7 + $0x48] sm:$0xff]  }
 0x102   :  { %5968 = vmatprep.subr.bf16.mxu1 %v6527_v19 }
 0x104   :  { %5965 = vmatmul.mubr.msk.bf16.vlgmr.msra.gmra.mrb[0].mxu1 %vm205_vm2, %v4971_v51  ;;  %v6248_v51 = vld [vmem:[%s8282_s7 + $0xc8] sm:$0xff]  }
 0x105   :  { %5969 = vmatpush3.bf16.msra.mxu1 %v257_v53  ;;  %5970 = vmatprep.mubr.msk.bf16.mxu1 %vm6528_vm0, %v6527_v19  ;;  %v6250_v53 = vld [vmem:[%s8282_s7 + $0x88] sm:$0xff]  }
 0x106   :  { %710 = vmatprep.subr.bf16.mxu1 %v6149_v52  ;;  %v6249_v52 = vld [vmem:[%s8282_s7 + $0x8] sm:$0xff]  }
 0x10c   :  { %5971 = vmatmul.mubr.msk.bf16.vlgmr.msra.gmra.mrb[4].mxu1 %vm205_vm2, %v200_v54  ;;  %v6251_v54 = vld [vmem:[%s8282_s7 + $0x50] sm:$0xff]  }
 0x10d   :  { %711 = vmatpush1.bf16.msra.mxu1 %v6147_v55  ;;  %v6252_v55 = vld [vmem:[%s8282_s7 + $0xd0] sm:$0xff]  }
 0x10e   :  { %712 = vmatprep.subr.bf16.mxu1 %v6155_v56  ;;  %v6253_v56 = vld [vmem:[%s8282_s7 + $0x10] sm:$0xff]  }
 0x111   :  { %713 = vmatpush1.bf16.msra.mxu1 %v6153_v57  ;;  %v6254_v57 = vld [vmem:[%s8282_s7 + $0x90] sm:$0xff]  }
 0x112   :  { %714 = vmatprep.subr.bf16.mxu1 %v6161_v58  ;;  %v6255_v58 = vld [vmem:[%s8282_s7 + $0x58] sm:$0xff]  }
 0x115   :  { %715 = vmatpush1.bf16.msra.mxu1 %v6159_v59  ;;  %v6256_v59 = vld [vmem:[%s8282_s7 + $0xd8] sm:$0xff]  }
 0x116   :  { %716 = vmatprep.subr.bf16.mxu1 %v6167_v60  ;;  %v6257_v60 = vld [vmem:[%s8282_s7 + $0x18] sm:$0xff]  }
 0x119   :  { %717 = vmatpush1.bf16.msra.mxu1 %v6165_v61  ;;  %v6258_v61 = vld [vmem:[%s8282_s7 + $0x98] sm:$0xff]  }
 0x11a   :  { %718 = vmatprep.subr.bf16.mxu1 %v6173_v62  ;;  %v6259_v62 = vld [vmem:[%s8282_s7 + $0x60] sm:$0xff]  }
 0x11d   :  { %719 = vmatpush1.bf16.msra.mxu1 %v6171_v63  ;;  %v6260_v63 = vld [vmem:[%s8282_s7 + $0xe0] sm:$0xff]  }
 0x11e   :  { %720 = vmatprep.subr.bf16.mxu1 %v6179_v0  ;;  %v6261_v0 = vld [vmem:[%s8282_s7 + $0x20] sm:$0xff]  }
 0x121   :  { %721 = vmatpush1.bf16.msra.mxu1 %v6177_v2  ;;  %v6262_v2 = vld [vmem:[%s8282_s7 + $0xa0] sm:$0xff]  }
 0x122   :  { %722 = vmatprep.subr.bf16.mxu1 %v6185_v3  ;;  %v6263_v3 = vld [vmem:[%s8282_s7 + $0x68] sm:$0xff]  }
 0x125   :  { %723 = vmatpush1.bf16.msra.mxu1 %v6183_v4  ;;  %v6264_v4 = vld [vmem:[%s8282_s7 + $0xe8] sm:$0xff]  }
 0x126   :  { %724 = vmatprep.subr.bf16.mxu1 %v6191_v5  ;;  %v6265_v5 = vld [vmem:[%s8282_s7 + $0x28] sm:$0xff]  }
 0x129   :  { %725 = vmatpush1.bf16.msra.mxu1 %v6189_v6  ;;  %v6266_v6 = vld [vmem:[%s8282_s7 + $0xa8] sm:$0xff]  }
 0x12a   :  { %726 = vmatprep.subr.bf16.mxu1 %v6197_v7  ;;  %v6267_v7 = vld [vmem:[%s8282_s7 + $0x70] sm:$0xff]  }
 0x12d   :  { %727 = vmatpush1.bf16.msra.mxu1 %v6195_v8  ;;  %v6268_v8 = vld [vmem:[%s8282_s7 + $0xf0] sm:$0xff]  }
 0x12e   :  { %728 = vmatprep.subr.bf16.mxu1 %v6203_v9  ;;  %v6269_v9 = vld [vmem:[%s8282_s7 + $0x30] sm:$0xff]  }
 0x131   :  { %729 = vmatpush1.bf16.msra.mxu1 %v6201_v10  ;;  %v6270_v10 = vld [vmem:[%s8282_s7 + $0xb0] sm:$0xff]  }
 0x132   :  { %730 = vmatprep.subr.bf16.mxu1 %v6209_v11  ;;  %v6271_v11 = vld [vmem:[%s8282_s7 + $0x78] sm:$0xff]  }
 0x135   :  { %731 = vmatpush1.bf16.msra.mxu1 %v6207_v12  ;;  %v6272_v12 = vld [vmem:[%s8282_s7 + $0xf8] sm:$0xff]  }
 0x136   :  { %732 = vmatprep.subr.bf16.mxu1 %v6215_v13  ;;  %v6273_v13 = vld [vmem:[%s8282_s7 + $0x38] sm:$0xff]  }
 0x139   :  { %733 = vmatpush1.bf16.msra.mxu1 %v6213_v14  ;;  %v6274_v14 = vld [vmem:[%s8282_s7 + $0xb8] sm:$0xff]  }
 0x13a   :  { %734 = vmatprep.subr.bf16.mxu1 %v6221_v15  ;;  %v370_v15 = vlaneseq }
 0x13c   :  { %v6991_v16 = vshrl.u32 %v370_v15, 7 }
 0x13d   :  { %735 = vmatpush1.bf16.msra.mxu1 %v6219_v17 }
 0x13e   :  { %736 = vmatprep.subr.bf16.mxu1 %v6227_v20  ;;  %v372_v17 = vsub.s32 0, %v6991_v16  ;;  %v380_v18 = vsub.s32 2, %v6991_v16  ;;  %v4974_v20 = vld [vmem:[%s8283_s3 + $0x1] ss:$8 sm:$0xf]  ;;  %v376_v21 = vsub.s32 1, %v6991_v16 }
 0x13f   :  { %vm1707_vm4 = vcmp.eq.s32.totalorder %v6991_v16, 0  ;;  %vm1711_vm5 = vcmp.eq.s32.totalorder %v6991_v16, 7  ;;  %vm4580_vm11 = vcmp.lt.s32.totalorder %v6991_v16, 1  ;;  %vm4591_vm12 = vcmp.lt.s32.totalorder %v6991_v16, 7 }
 0x140   :  { %v373_v23 = vrot.slane %v4974_v20, %v372_v17  ;;  %v377_v25 = vrot.slane %v4974_v20, %v376_v21 }
 0x141   :  { %737 = vmatpush1.bf16.msra.mxu1 %v6225_v22  ;;  %v384_v22 = vsub.s32 3, %v6991_v16 }
 0x142   :  { %738 = vmatprep.subr.bf16.mxu1 %v6233_v24  ;;  %v381_v24 = vrot.slane %v4974_v20, %v380_v18 }
 0x145   :  { %739 = vmatpush1.bf16.msra.mxu1 %v6231_v26  ;;  %v385_v26 = vrot.slane %v4974_v20, %v384_v22 }
 0x146   :  { %740 = vmatprep.subr.bf16.mxu1 %v6239_v28 }
 0x149   :  { %741 = vmatpush1.bf16.msra.mxu1 %v6237_v30 }
 0x14a   :  { %5635 = vmatprep.subr.bf16.mxu1 %v6243_v32 }
 0x1d7   :  { %v247_v34 = vpop.f32.mrb[0].mxu1 }
 0x1d8   :  { %v5966_v35 = vpop.f32.mrb[1].mxu1 }
 0x1d9   :  { %v250_v36 = vpop.f32.mrb[2].mxu1 }
 0x1da   :  { %v5967_v37 = vpop.f32.mrb[3].mxu1 }
 0x1df   :  { %v293_v38 = vpop.f32.mrb[4].mxu1 }
 0x1e0   :  { %v294_v40 = vadd.f32 %v293_v38, %v247_v34  ;;  %v5972_v41 = vpop.f32.mrb[5].mxu1 }
 0x1e1   :  { %v296_v43 = vpop.f32.mrb[6].mxu1 }
 0x1e2   :  { %v300_v44 = vadd.f32 %v299_v39, %v294_v40  ;;  %v5973_v45 = vpop.f32.mrb[7].mxu1 }
 0x1e4   :  { %v6896_v47 = vpack.c.bf16 %v300_v44, %v300_v44 }
 0x1e6   :  { %742 = vmatprep.mubr.bf16.mxu1 %v6896_v47  ;;  %783 = vmatprep.mubr.bf16.mxu0 %v6896_v47 }
 0x1e7   :  { %743 = vmatmul.mubr.bf16.vlgmr.msra.gmra.mrb[8].mxu1 %v365_v46  ;;  %784 = vmatmul.mubr.bf16.vlgmr.msra.gmra.mrb[4].mxu0 %v365_v46 }
 0x1e8   :  { %5636 = vmatpush3.bf16.msra.mxu1 %v6245_v48  ;;  %5658 = vmatpush3.bf16.msra.mxu0 %v6246_v49  ;;  %v6275_v49 = vld [vmem:[%s8285_s8] sm:$0xff]  }
 0x1e9   :  { %5637 = vmatprep.subr.bf16.mxu1 %v6247_v50  ;;  %5659 = vmatprep.subr.bf16.mxu0 %v6248_v51  ;;  %v6276_v50 = vld [vmem:[%s8286_s9 + $0x40] sm:$0xff]  }
 0x1ea   :  { %v6278_v51 = vld [vmem:[%s8286_s9 + $0xc0] sm:$0xff]  }
 0x1ec   :  { %5638 = vmatpush3.bf16.msra.mxu1 %v6249_v52  ;;  %5660 = vmatpush3.bf16.msra.mxu0 %v6250_v53  ;;  %v6279_v52 = vld [vmem:[%s8286_s9 + $0x80] sm:$0xff]   ;;  %v6282_v53 = vld [vmem:[%s8286_s9 + $0xc8] sm:$0xff]  }
 0x1ed   :  { %5639 = vmatprep.subr.bf16.mxu1 %v6251_v54  ;;  %5661 = vmatprep.subr.bf16.mxu0 %v6252_v55  ;;  %v6283_v54 = vld [vmem:[%s8286_s9 + $0x88] sm:$0xff]   ;;  %v6286_v55 = vld [vmem:[%s8286_s9 + $0xd0] sm:$0xff]  }
 0x1f0   :  { %5640 = vmatpush3.bf16.msra.mxu1 %v6253_v56  ;;  %5662 = vmatpush3.bf16.msra.mxu0 %v6254_v57  ;;  %v6287_v56 = vld [vmem:[%s8286_s9 + $0x90] sm:$0xff]   ;;  %v6290_v57 = vld [vmem:[%s8286_s9 + $0xd8] sm:$0xff]  }
 0x1f1   :  { %5641 = vmatprep.subr.bf16.mxu1 %v6255_v58  ;;  %5663 = vmatprep.subr.bf16.mxu0 %v6256_v59  ;;  %v6291_v58 = vld [vmem:[%s8286_s9 + $0x98] sm:$0xff]   ;;  %v6294_v59 = vld [vmem:[%s8286_s9 + $0xe0] sm:$0xff]  }
 0x1f4   :  { %5642 = vmatpush3.bf16.msra.mxu1 %v6257_v60  ;;  %5664 = vmatpush3.bf16.msra.mxu0 %v6258_v61  ;;  %v6295_v60 = vld [vmem:[%s8286_s9 + $0xa0] sm:$0xff]   ;;  %v6298_v61 = vld [vmem:[%s8286_s9 + $0xe8] sm:$0xff]  }
 0x1f5   :  { %5643 = vmatprep.subr.bf16.mxu1 %v6259_v62  ;;  %5665 = vmatprep.subr.bf16.mxu0 %v6260_v63  ;;  %v6299_v62 = vld [vmem:[%s8286_s9 + $0xa8] sm:$0xff]   ;;  %v6302_v63 = vld [vmem:[%s8286_s9 + $0xf0] sm:$0xff]  }
 0x1f8   :  { %5644 = vmatpush3.bf16.msra.mxu1 %v6261_v0  ;;  %5666 = vmatpush3.bf16.msra.mxu0 %v6262_v2  ;;  %v6303_v0 = vld [vmem:[%s8286_s9 + $0xb0] sm:$0xff]  }
 0x1f9   :  { %5645 = vmatprep.subr.bf16.mxu1 %v6263_v3  ;;  %5667 = vmatprep.subr.bf16.mxu0 %v6264_v4  ;;  %v864_v4 = vld [vmem:[%s8283_s3 + $0x2] ss:$0 sm:$0xff] }
 0x1fc   :  { %5646 = vmatpush3.bf16.msra.mxu1 %v6265_v5  ;;  %5668 = vmatpush3.bf16.msra.mxu0 %v6266_v6 }
 0x1fd   :  { %5647 = vmatprep.subr.bf16.mxu1 %v6267_v7  ;;  %5669 = vmatprep.subr.bf16.mxu0 %v6268_v8 }
 0x200   :  { %5648 = vmatpush3.bf16.msra.mxu1 %v6269_v9  ;;  %5670 = vmatpush3.bf16.msra.mxu0 %v6270_v10 }
 0x201   :  { %5649 = vmatprep.subr.bf16.mxu1 %v6271_v11  ;;  %5671 = vmatprep.subr.bf16.mxu0 %v6272_v12 }
 0x204   :  { %5650 = vmatpush3.bf16.msra.mxu1 %v6273_v13  ;;  %5672 = vmatpush3.bf16.msra.mxu0 %v6274_v14 }
 0x205   :  { %5974 = vmatprep.subr.bf16.mxu1 %v6527_v19  ;;  %5703 = vmatprep.subr.bf16.mxu0 %v6278_v51 }
 0x2ba   :  { %v744_v27 = vpop.f32.mrb[8].mxu1  ;;  %v785_v28 = vpop.f32.mrb[4].mxu0 }
 0x2bb   :  { %v745_v29 = vadd.f32 %v744_v27, %v373_v23  ;;  %v786_v30 = vadd.f32 %v785_v28, %v381_v24  ;;  %v746_v31 = vpop.f32.mrb[9].mxu1  ;;  %v787_v32 = vpop.f32.mrb[5].mxu0  ;;  %v6280_v27 = vld [vmem:[%s8286_s9 + $0x48] sm:$0xff]  }
 0x2bc   :  { %v747_v33 = vadd.f32 %v746_v31, %v377_v25  ;;  %v788_v34 = vadd.f32 %v787_v32, %v385_v26  ;;  %v748_v35 = vpop.f32.mrb[10].mxu1  ;;  %v789_v36 = vpop.f32.mrb[6].mxu0  ;;  %v6277_v25 = vld [vmem:[%s8286_s9] sm:$0xff]   ;;  %v6281_v28 = vld [vmem:[%s8286_s9 + $0x8] sm:$0xff]   ;;  %v6288_v31 = vld [vmem:[%s8286_s9 + $0x58] sm:$0xff]  }
 0x2bd   :  { %v792_v37 = vmax.f32 %v745_v29, 0.0  ;;  %v794_v38 = vmax.f32 %v786_v30, 0.0  ;;  %v749_v39 = vpop.f32.mrb[11].mxu1  ;;  %v790_v40 = vpop.f32.mrb[7].mxu0  ;;  %v6284_v29 = vld [vmem:[%s8286_s9 + $0x50] sm:$0xff]   ;;  %v6289_v32 = vld [vmem:[%s8286_s9 + $0x18] sm:$0xff]  }
 0x2be   :  { %v793_v41 = vmax.f32 %v747_v33, 0.0  ;;  %v795_v43 = vmax.f32 %v788_v34, 0.0  ;;  %v6285_v30 = vld [vmem:[%s8286_s9 + $0x10] sm:$0xff]   ;;  %v6292_v33 = vld [vmem:[%s8286_s9 + $0x60] sm:$0xff]   ;;  %v6296_v35 = vld [vmem:[%s8286_s9 + $0x68] sm:$0xff]  }
 0x2bf   :  { %v862_v44 = vpack.c.bf16 %v794_v38, %v794_v38  ;;  %v860_v48 = vpack.c.bf16 %v792_v37, %v792_v37  ;;  %v6293_v34 = vld [vmem:[%s8286_s9 + $0x20] sm:$0xff]   ;;  %v6297_v36 = vld [vmem:[%s8286_s9 + $0x28] sm:$0xff]   ;;  %v6300_v37 = vld [vmem:[%s8286_s9 + $0x70] sm:$0xff]  }
 0x2c0   :  { %v861_v45 = vpack.c.bf16 %v793_v41, %v793_v41  ;;  %v863_v46 = vpack.c.bf16 %v795_v43, %v795_v43  ;;  %v6301_v38 = vld [vmem:[%s8286_s9 + $0x30] sm:$0xff]   ;;  %v6304_v39 = vld [vmem:[%s8286_s9 + $0x78] sm:$0xff]  }
 0x2c1   :  { %v6305_v40 = vld [vmem:[%s8286_s9 + $0x38] sm:$0xff]  }
 0x2c2   :  { %1089 = vmatprep.mubr.bf16.mxu1 %v861_v45  ;;  %1129 = vmatprep.mubr.bf16.mxu0 %v863_v46  ;;  %v6306_v41 = vld [vmem:[%s8286_s9 + $0xf8] sm:$0xff]  }
 0x2c3   :  { %1090 = vmatmul.mubr.bf16.vlgmr.msra.gmra.mrb[12].mxu1 %v860_v48  ;;  %1130 = vmatmul.mubr.bf16.vlgmr.msra.gmra.mrb[8].mxu0 %v862_v44  ;;  %v6307_v43 = vld [vmem:[%s8286_s9 + $0xb8] sm:$0xff]   ;;  %v6308_v44 = vld [vmem:[%s8286_s9 + $0x140] sm:$0xff]  }
 0x2c4   :  { %5976 = vmatprep.mubr.msk.bf16.mxu1 %vm6528_vm0, %v6527_v19  ;;  %5975 = vmatpush3.bf16.msra.mxu1 %v6275_v49 }
 0x2c5   :  { %5681 = vmatprep.subr.bf16.mxu1 %v6276_v50  ;;  %5704 = vmatpush3.bf16.msra.mxu0 %v6279_v52  ;;  %v6309_v52 = vld [vmem:[%s8286_s9 + $0x100] sm:$0xff]  }
 0x2c6   :  { %5705 = vmatprep.subr.bf16.mxu0 %v6282_v53  ;;  %v6310_v53 = vld [vmem:[%s8286_s9 + $0x148] sm:$0xff]  }
 0x2c9   :  { %5706 = vmatpush3.bf16.msra.mxu0 %v6283_v54  ;;  %v6312_v54 = vld [vmem:[%s8286_s9 + $0x150] sm:$0xff]  }
 0x2ca   :  { %5707 = vmatprep.subr.bf16.mxu0 %v6286_v55  ;;  %v6313_v55 = vld [vmem:[%s8286_s9 + $0x110] sm:$0xff]  }
 0x2cd   :  { %5708 = vmatpush3.bf16.msra.mxu0 %v6287_v56  ;;  %v6314_v56 = vld [vmem:[%s8286_s9 + $0x158] sm:$0xff]  }
 0x2ce   :  { %5709 = vmatprep.subr.bf16.mxu0 %v6290_v57  ;;  %v6315_v57 = vld [vmem:[%s8286_s9 + $0x118] sm:$0xff]  }
 0x2d1   :  { %5710 = vmatpush3.bf16.msra.mxu0 %v6291_v58  ;;  %v6316_v58 = vld [vmem:[%s8286_s9 + $0x160] sm:$0xff]  }
 0x2d2   :  { %5711 = vmatprep.subr.bf16.mxu0 %v6294_v59  ;;  %v6317_v59 = vld [vmem:[%s8286_s9 + $0x120] sm:$0xff]  }
 0x2d5   :  { %5712 = vmatpush3.bf16.msra.mxu0 %v6295_v60  ;;  %v6318_v60 = vld [vmem:[%s8286_s9 + $0x168] sm:$0xff]  }
 0x2d6   :  { %5713 = vmatprep.subr.bf16.mxu0 %v6298_v61  ;;  %v6319_v61 = vld [vmem:[%s8286_s9 + $0x128] sm:$0xff]  }
 0x2d9   :  { %5714 = vmatpush3.bf16.msra.mxu0 %v6299_v62  ;;  %v6320_v62 = vld [vmem:[%s8286_s9 + $0x170] sm:$0xff]  }
 0x2da   :  { %5715 = vmatprep.subr.bf16.mxu0 %v6302_v63  ;;  %v6321_v63 = vld [vmem:[%s8286_s9 + $0x130] sm:$0xff]  }
 0x2dd   :  { %5716 = vmatpush3.bf16.msra.mxu0 %v6303_v0  ;;  %v6322_v0 = vld [vmem:[%s8286_s9 + $0x178] sm:$0xff]  }
 0x2de   :  { %5717 = vmatprep.subr.bf16.mxu0 %v6306_v41 }
 0x2e1   :  { %5718 = vmatpush3.bf16.msra.mxu0 %v6307_v43 }
 0x2e2   :  { %5980 = vmatprep.subr.bf16.mxu0 %v6527_v19 }
 0x396   :  { %v5651_v2 = vpop.f32.mrb[12].mxu1  ;;  %v5673_v3 = vpop.f32.mrb[8].mxu0 }
 0x397   :  { %v5652_v5 = vpop.f32.mrb[13].mxu1  ;;  %v5674_v6 = vpop.f32.mrb[9].mxu0 }
 0x398   :  { %v5653_v7 = vadd.f32 %v5652_v5, %v5651_v2  ;;  %v5675_v8 = vadd.f32 %v5674_v6, %v5673_v3  ;;  %v5654_v9 = vpop.f32.mrb[14].mxu1  ;;  %v5676_v10 = vpop.f32.mrb[10].mxu0  ;;  %v6323_v2 = vld [vmem:[%s8286_s9 + $0x138] sm:$0xff]   ;;  %v6324_v3 = vld [vmem:[%s8287_s10] sm:$0xff]   ;;  %v6326_v5 = vld [vmem:[%s8287_s10 + $0x8] sm:$0xff]  }
 0x399   :  { %v5655_v11 = vpop.f32.mrb[15].mxu1  ;;  %v5677_v12 = vpop.f32.mrb[11].mxu0  ;;  %v6328_v6 = vld [vmem:[%s8287_s10 + $0x10] sm:$0xff]   ;;  %v6331_v9 = vld [vmem:[%s8287_s10 + $0x58] sm:$0xff]   ;;  %v6332_v10 = vld [vmem:[%s8287_s10 + $0x20] sm:$0xff]  }
 0x39a   :  { %v1092_v13 = vadd.f32 %v5653_v7, %v864_v4  ;;  %v6325_v4 = vld [vmem:[%s8287_s10 + $0x40] sm:$0xff]   ;;  %v6329_v7 = vld [vmem:[%s8287_s10 + $0x50] sm:$0xff]   ;;  %v6334_v12 = vld [vmem:[%s8287_s10 + $0x28] sm:$0xff]  }
 0x39b   :  { %v6333_v11 = vld [vmem:[%s8287_s10 + $0x60] sm:$0xff]  }
 0x39c   :  { %v1132_v14 = vadd.f32 %v5675_v8, %v1092_v13  ;;  %v6330_v8 = vld [vmem:[%s8287_s10 + $0x18] sm:$0xff]   ;;  %v6335_v13 = vld [vmem:[%s8287_s10 + $0x68] sm:$0xff]  }
 0x39e   :  { %v5071_v15 = vmul.f32 -1.442695, %v1132_v14  ;;  %v6336_v14 = vld [vmem:[%s8287_s10 + $0x30] sm:$0xff]  }
 0x3a0   :  { %6512 = vpow2.f32 %v5071_v15  ;;  %v6337_v15 = vld [vmem:[%s8287_s10 + $0x70] sm:$0xff]  }
 0x3aa   :  { %v6513_v20 = vpop.eup %6512 }
 0x3ab   :  { %v1140_v23 = vadd.f32 1.0, %v6513_v20  ;;  %v6338_v20 = vld [vmem:[%s8287_s10 + $0x38] sm:$0xff]  }
 0x3ad   :  { %6514 = vrcp.f32 %v1140_v23  ;;  %v6339_v23 = vld [vmem:[%s8287_s10 + $0x78] sm:$0xff]  }
 0x3b7   :  { %v6515_v24 = vpop.eup %6514 }
 0x3b8   :  { %v1145_v26 = vpack.c.bf16 %v6515_v24, %v6515_v24 }
 0x3ba   :  { %5977 = vmatmul.mubr.msk.bf16.vlgmr.msra.gmra.mrb[16].mxu1 %vm1152_vm3, %v1145_v26 }
 0x3bb   :  { %5682 = vmatpush3.bf16.msra.mxu1 %v6277_v25 }
 0x3bc   :  { %5683 = vmatprep.subr.bf16.mxu1 %v6280_v27 }
 0x3bf   :  { %5684 = vmatpush3.bf16.msra.mxu1 %v6281_v28 }
 0x3c0   :  { %5685 = vmatprep.subr.bf16.mxu1 %v6284_v29 }
 0x3c3   :  { %5686 = vmatpush3.bf16.msra.mxu1 %v6285_v30 }
 0x3c4   :  { %5687 = vmatprep.subr.bf16.mxu1 %v6288_v31 }
 0x3c7   :  { %5688 = vmatpush3.bf16.msra.mxu1 %v6289_v32 }
 0x3c8   :  { %5689 = vmatprep.subr.bf16.mxu1 %v6292_v33 }
 0x3cb   :  { %5690 = vmatpush3.bf16.msra.mxu1 %v6293_v34 }
 0x3cc   :  { %5691 = vmatprep.subr.bf16.mxu1 %v6296_v35 }
 0x3cf   :  { %5692 = vmatpush3.bf16.msra.mxu1 %v6297_v36 }
 0x3d0   :  { %5693 = vmatprep.subr.bf16.mxu1 %v6300_v37 }
 0x3d3   :  { %5694 = vmatpush3.bf16.msra.mxu1 %v6301_v38 }
 0x3d4   :  { %5695 = vmatprep.subr.bf16.mxu1 %v6304_v39 }
 0x3d7   :  { %5696 = vmatpush3.bf16.msra.mxu1 %v6305_v40 }
 0x3d8   :  { %5725 = vmatprep.subr.bf16.mxu1 %v6308_v44  ;;  %v1197_v44 = vld [vmem:[%s8283_s3 + $0x3] ss:$0 sm:$0xff] }
 0x48d   :  { %v1190_v45 = vpop.f32.mrb[16].mxu1 }
 0x48e   :  { %v1196_v46 = vmul.f32 %v1190_v45, %v6892_v42  ;;  %v5978_v48 = vpop.f32.mrb[17].mxu1  ;;  %v6311_v42 = vld [vmem:[%s8286_s9 + $0x108] sm:$0xff]  }
 0x48f   :  { %v1193_v49 = vpop.f32.mrb[18].mxu1 }
 0x490   :  { %v1230_v50 = vpack.c.bf16 %v1196_v46, %v1196_v46  ;;  %v5979_v51 = vpop.f32.mrb[19].mxu1 }
 0x491   :  { %v6340_v51 = vld [vmem:[%s8287_s10 + $0x80] sm:$0xff]  }
 0x492   :  { %1359 = vmatprep.mubr.bf16.mxu1 %v1230_v50  ;;  %1528 = vmatprep.mubr.bf16.mxu0 %v1230_v50 }
 0x493   :  { %1360 = vmatmul.mubr.bf16.vlgmr.msra.gmra.mrb[20].mxu1 %v6896_v47  ;;  %1529 = vmatmul.mubr.bf16.vlgmr.msra.gmra.mrb[12].mxu0 %v6896_v47 }
 0x494   :  { %5726 = vmatpush3.bf16.msra.mxu1 %v6309_v52  ;;  %1697 = vmatprep.mubr.bf16.mxu1 %v1230_v50 }
 0x495   :  { %5727 = vmatprep.subr.bf16.mxu1 %v6310_v53  ;;  %5996 = vmatprep.mubr.msk.bf16.mxu0 %vm6528_vm0, %v6527_v19  ;;  %v6341_v53 = vld [vmem:[%s8287_s10 + $0x88] sm:$0xff]  }
 0x496   :  { %5981 = vmatpush3.bf16.msra.mxu0 %v6324_v3  ;;  %v6362_v3 = vld [vmem:[%s8288_s11 + $0x44] ss:$8 sps:$4 sm:$0xff]  }
 0x497   :  { %5982 = vmatprep.subr.bf16.mxu0 %v6527_v19 }
 0x498   :  { %5728 = vmatpush3.bf16.msra.mxu1 %v6311_v42  ;;  %v6342_v42 = vld [vmem:[%s8287_s10 + $0x90] sm:$0xff]  }
 0x499   :  { %5729 = vmatprep.subr.bf16.mxu1 %v6312_v54  ;;  %v6343_v54 = vld [vmem:[%s8287_s10 + $0x98] sm:$0xff]  }
 0x49a   :  { %5983 = vmatpush3.bf16.msra.mxu0 %v6326_v5  ;;  %v6365_v5 = vld [vmem:[%s8288_s11 + $0x54] ss:$8 sps:$4 sm:$0xff]  }
 0x49b   :  { %5984 = vmatprep.subr.bf16.mxu0 %v6527_v19 }
 0x49c   :  { %5730 = vmatpush3.bf16.msra.mxu1 %v6313_v55  ;;  %v6344_v55 = vld [vmem:[%s8287_s10 + $0xa0] sm:$0xff]  }
 0x49d   :  { %5731 = vmatprep.subr.bf16.mxu1 %v6314_v56  ;;  %v6346_v56 = vld [vmem:[%s8287_s10 + $0xb0] sm:$0xff]  }
 0x49e   :  { %5985 = vmatpush3.bf16.msra.mxu0 %v6328_v6  ;;  %v6368_v6 = vld [vmem:[%s8288_s11 + $0x64] ss:$8 sps:$4 sm:$0xff]  }
 0x49f   :  { %5986 = vmatprep.subr.bf16.mxu0 %v6527_v19 }
 0x4a0   :  { %5732 = vmatpush3.bf16.msra.mxu1 %v6315_v57  ;;  %v6347_v57 = vld [vmem:[%s8287_s10 + $0xb8] sm:$0xff]  }
 0x4a1   :  { %5733 = vmatprep.subr.bf16.mxu1 %v6316_v58  ;;  %v6348_v58 = vld [vmem:[%s8288_s11] ss:$8 sps:$4 sm:$0xff]  }
 0x4a2   :  { %5987 = vmatpush3.bf16.msra.mxu0 %v6330_v8  ;;  %v6371_v8 = vld [vmem:[%s8288_s11 + $0x74] ss:$8 sps:$4 sm:$0xff]  }
 0x4a3   :  { %5988 = vmatprep.subr.bf16.mxu0 %v6527_v19 }
 0x4a4   :  { %5734 = vmatpush3.bf16.msra.mxu1 %v6317_v59  ;;  %v6350_v59 = vld [vmem:[%s8288_s11 + $0x4] ss:$8 sps:$4 sm:$0xff]  }
 0x4a5   :  { %5735 = vmatprep.subr.bf16.mxu1 %v6318_v60  ;;  %v6353_v60 = vld [vmem:[%s8288_s11 + $0x14] ss:$8 sps:$4 sm:$0xff]  }
 0x4a6   :  { %5989 = vmatpush3.bf16.msra.mxu0 %v6332_v10 }
 0x4a7   :  { %5990 = vmatprep.subr.bf16.mxu0 %v6527_v19 }
 0x4a8   :  { %5736 = vmatpush3.bf16.msra.mxu1 %v6319_v61  ;;  %v6351_v61 = vld [vmem:[%s8288_s11 + $0x10] ss:$8 sps:$4 sm:$0xff]  }
 0x4a9   :  { %5737 = vmatprep.subr.bf16.mxu1 %v6320_v62  ;;  %v6356_v62 = vld [vmem:[%s8288_s11 + $0x24] ss:$8 sps:$4 sm:$0xff]  }
 0x4aa   :  { %5991 = vmatpush3.bf16.msra.mxu0 %v6334_v12 }
 0x4ab   :  { %5992 = vmatprep.subr.bf16.mxu0 %v6527_v19 }
 0x4ac   :  { %5738 = vmatpush3.bf16.msra.mxu1 %v6321_v63  ;;  %v6354_v63 = vld [vmem:[%s8288_s11 + $0x20] ss:$8 sps:$4 sm:$0xff]  }
 0x4ad   :  { %5739 = vmatprep.subr.bf16.mxu1 %v6322_v0  ;;  %v6359_v0 = vld [vmem:[%s8288_s11 + $0x34] ss:$8 sps:$4 sm:$0xff]  }
 0x4ae   :  { %5993 = vmatpush3.bf16.msra.mxu0 %v6336_v14 }
 0x4af   :  { %5994 = vmatprep.subr.bf16.mxu0 %v6527_v19 }
 0x4b0   :  { %5740 = vmatpush3.bf16.msra.mxu1 %v6323_v2  ;;  %v6357_v2 = vld [vmem:[%s8288_s11 + $0x30] ss:$8 sps:$4 sm:$0xff]  }
 0x4b1   :  { %6000 = vmatprep.subr.bf16.mxu1 %v6527_v19 }
 0x4b2   :  { %5995 = vmatpush3.bf16.msra.mxu0 %v6338_v20 }
 0x4b3   :  { %1698 = vmatmul.mubr.bf16.vlgmr.msra.gmra.mrb[24].mxu1 %v6896_v47  ;;  %v6327_v47 = vld [vmem:[%s8287_s10 + $0x48] sm:$0xff]   ;;  %6020 = vmatprep.subr.bf16.mxu0 %v6527_v19 }
 0x4b4   :  { %6016 = vmatprep.mubr.msk.bf16.mxu1 %vm6528_vm0, %v6527_v19  ;;  %6001 = vmatpush3.bf16.msra.mxu1 %v6325_v4  ;;  %v6360_v4 = vld [vmem:[%s8288_s11 + $0x40] ss:$8 sps:$4 sm:$0xff]  }
 0x4b5   :  { %6002 = vmatprep.subr.bf16.mxu1 %v6527_v19 }
 0x4b8   :  { %6003 = vmatpush3.bf16.msra.mxu1 %v6327_v47  ;;  %v6363_v47 = vld [vmem:[%s8288_s11 + $0x50] ss:$8 sps:$4 sm:$0xff]  }
 0x4b9   :  { %6004 = vmatprep.subr.bf16.mxu1 %v6527_v19 }
 0x4bc   :  { %6005 = vmatpush3.bf16.msra.mxu1 %v6329_v7  ;;  %v6366_v7 = vld [vmem:[%s8288_s11 + $0x60] ss:$8 sps:$4 sm:$0xff]  }
 0x4bd   :  { %6006 = vmatprep.subr.bf16.mxu1 %v6527_v19 }
 0x4c0   :  { %6007 = vmatpush3.bf16.msra.mxu1 %v6331_v9  ;;  %v6369_v9 = vld [vmem:[%s8288_s11 + $0x70] ss:$8 sps:$4 sm:$0xff]  }
 0x4c1   :  { %6008 = vmatprep.subr.bf16.mxu1 %v6527_v19 }
 0x4c4   :  { %6009 = vmatpush3.bf16.msra.mxu1 %v6333_v11 }
 0x4c5   :  { %6010 = vmatprep.subr.bf16.mxu1 %v6527_v19 }
 0x4c8   :  { %6011 = vmatpush3.bf16.msra.mxu1 %v6335_v13 }
 0x4c9   :  { %6012 = vmatprep.subr.bf16.mxu1 %v6527_v19 }
 0x4cc   :  { %6013 = vmatpush3.bf16.msra.mxu1 %v6337_v15 }
 0x4cd   :  { %6014 = vmatprep.subr.bf16.mxu1 %v6527_v19 }
 0x4d0   :  { %6015 = vmatpush3.bf16.msra.mxu1 %v6339_v23 }
 0x4d1   :  { %2144 = vmatprep.subr.bf16.mxu1 %v6350_v59  ;;  %v2342_v59 = vld [vmem:[%s8290_s13 + $0x148] sm:$0xff] }
 0x566   :  { %v5697_v24 = vpop.f32.mrb[20].mxu1  ;;  %v5719_v25 = vpop.f32.mrb[12].mxu0 }
 0x567   :  { %v5698_v26 = vpop.f32.mrb[21].mxu1  ;;  %v5720_v27 = vpop.f32.mrb[13].mxu0 }
 0x568   :  { %v5699_v28 = vadd.f32 %v5698_v26, %v5697_v24  ;;  %v5721_v29 = vadd.f32 %v5720_v27, %v5719_v25  ;;  %v5700_v30 = vpop.f32.mrb[22].mxu1  ;;  %v5722_v31 = vpop.f32.mrb[14].mxu0 }
 0x569   :  { %v5701_v32 = vpop.f32.mrb[23].mxu1  ;;  %v5723_v33 = vpop.f32.mrb[15].mxu0  ;;  %v1719_v31 = vld [vmem:[%s8283_s3 + $0x4] ss:$0 sm:$0xff] }
 0x56a   :  { %v1708_v34 = vrot.slane %v5699_v28, 7 }
 0x56c   :  { %v1709_v35 = vsel %vm1707_vm4, 0.0, %v1708_v34 }
 0x56d   :  { %v1710_v36 = vadd.f32 %v5721_v29, %v1709_v35 }
 0x586   :  { %v5741_v37 = vpop.f32.mrb[24].mxu1 }
 0x587   :  { %v5742_v38 = vpop.f32.mrb[25].mxu1 }
 0x588   :  { %v5743_v39 = vadd.f32 %v5742_v38, %v5741_v37  ;;  %v5744_v40 = vpop.f32.mrb[26].mxu1 }
 0x589   :  { %v5745_v41 = vpop.f32.mrb[27].mxu1  ;;  %v2306_v40 = vld [vmem:[%s8290_s13 + $0x28] sm:$0xff] }
 0x58a   :  { %v1712_v43 = vrot.slane %v5743_v39, 1  ;;  %v2302_v39 = vld [vmem:[%s8290_s13 + $0x8] sm:$0xff] }
 0x58b   :  { %v5268_v41 = vcombine.low %v2302_v39, %v2306_v40 }
 0x58c   :  { %v1713_v45 = vsel %vm1711_vm5, 0.0, %v1712_v43  ;;  %v5269_v43 = vcombine.high %v2302_v39, %v2306_v40  ;;  %v2305_v39 = vld [vmem:[%s8290_s13 + $0x20] sm:$0xff] }
 0x58d   :  { %v1714_v46 = vadd.f32 %v1713_v45, %v1710_v36  ;;  %v2314_v45 = vld [vmem:[%s8290_s13 + $0x68] sm:$0xff] }
 0x58f   :  { %v1715_v48 = vadd.f32 %v1714_v46, %v1197_v44  ;;  %v2310_v44 = vld [vmem:[%s8290_s13 + $0x48] sm:$0xff] }
 0x590   :  { %v5277_v46 = vcombine.high %v2310_v44, %v2314_v45 }
 0x591   :  { %v1717_v49 = vmul.f32 0.1, %v1715_v48  ;;  %vm1716_vm6 = vcmp.ge.f32.partialorder %v1715_v48, 0.0 }
 0x593   :  { %v1718_v50 = vsel %vm1716_vm6, %v1715_v48, %v1717_v49  ;;  %v5276_v48 = vcombine.low %v2310_v44, %v2314_v45  ;;  %v2318_v49 = vld [vmem:[%s8290_s13 + $0x88] sm:$0xff] }
 0x594   :  { %v1736_v52 = vpack.c.bf16 %v1718_v50, %v1718_v50  ;;  %v2322_v50 = vld [vmem:[%s8290_s13 + $0xa8] sm:$0xff] }
 0x596   :  { %5997 = vmatmul.mubr.bf16.vlgmr.msra.gmra.mrb[16].mxu0 %v1736_v52  ;;  %6017 = vmatmul.mubr.bf16.vlgmr.msra.gmra.mrb[28].mxu1 %v1736_v52 }
 0x597   :  { %6021 = vmatpush3.bf16.msra.mxu0 %v6340_v51  ;;  %6036 = vmatprep.mubr.msk.bf16.mxu0 %vm6528_vm0, %v6527_v19  ;;  %v5285_v51 = vcombine.high %v2318_v49, %v2322_v50 }
 0x598   :  { %6022 = vmatprep.subr.bf16.mxu0 %v6527_v19  ;;  %2176 = vmatprep.mubr.bf16.mxu1 %v6526_v1  ;;  %v6345_v1 = vld [vmem:[%s8287_s10 + $0xa8] sm:$0xff]  }
 0x599   :  { %2145 = vmatpush1.bf16.msra.mxu1 %v6348_v58 }
 0x59a   :  { %2146 = vmatprep.subr.bf16.mxu1 %v6353_v60  ;;  %v2346_v60 = vld [vmem:[%s8290_s13 + $0x168] sm:$0xff] }
 0x59b   :  { %6023 = vmatpush3.bf16.msra.mxu0 %v6341_v53  ;;  %v2326_v53 = vld [vmem:[%s8290_s13 + $0xc8] sm:$0xff] }
 0x59c   :  { %6024 = vmatprep.subr.bf16.mxu0 %v6527_v19 }
 0x59d   :  { %2147 = vmatpush1.bf16.msra.mxu1 %v6351_v61  ;;  %v5309_v61 = vcombine.high %v2342_v59, %v2346_v60 }
 0x59e   :  { %2148 = vmatprep.subr.bf16.mxu1 %v6356_v62  ;;  %v5308_v62 = vcombine.low %v2342_v59, %v2346_v60  ;;  %v2337_v59 = vld [vmem:[%s8290_s13 + $0x120] sm:$0xff] }
 0x59f   :  { %6025 = vmatpush3.bf16.msra.mxu0 %v6342_v42  ;;  %v2330_v42 = vld [vmem:[%s8290_s13 + $0xe8] sm:$0xff] }
 0x5a0   :  { %6026 = vmatprep.subr.bf16.mxu0 %v6527_v19 }
 0x5a1   :  { %2149 = vmatpush1.bf16.msra.mxu1 %v6354_v63  ;;  %v2350_v63 = vld [vmem:[%s8290_s13 + $0x188] sm:$0xff] }
 0x5a2   :  { %2150 = vmatprep.subr.bf16.mxu1 %v6359_v0  ;;  %v2354_v0 = vld [vmem:[%s8290_s13 + $0x1a8] sm:$0xff] }
 0x5a3   :  { %6027 = vmatpush3.bf16.msra.mxu0 %v6343_v54  ;;  %v5293_v54 = vcombine.high %v2326_v53, %v2330_v42 }
 0x5a4   :  { %6028 = vmatprep.subr.bf16.mxu0 %v6527_v19 }
 0x5a5   :  { %2151 = vmatpush1.bf16.msra.mxu1 %v6357_v2  ;;  %v5317_v2 = vcombine.high %v2350_v63, %v2354_v0 }
 0x5a6   :  { %2152 = vmatprep.subr.bf16.mxu1 %v6362_v3  ;;  %v5316_v3 = vcombine.low %v2350_v63, %v2354_v0  ;;  %v2345_v63 = vld [vmem:[%s8290_s13 + $0x160] sm:$0xff] }
 0x5a7   :  { %6029 = vmatpush3.bf16.msra.mxu0 %v6344_v55  ;;  %v5292_v55 = vcombine.low %v2326_v53, %v2330_v42  ;;  %v2321_v53 = vld [vmem:[%s8290_s13 + $0xa0] sm:$0xff] }
 0x5a8   :  { %6030 = vmatprep.subr.bf16.mxu0 %v6527_v19 }
 0x5a9   :  { %2153 = vmatpush1.bf16.msra.mxu1 %v6360_v4  ;;  %v2358_v4 = vld [vmem:[%s8290_s13 + $0x1c8] sm:$0xff] }
 0x5aa   :  { %2154 = vmatprep.subr.bf16.mxu1 %v6365_v5  ;;  %v2362_v5 = vld [vmem:[%s8290_s13 + $0x1e8] sm:$0xff] }
 0x5ab   :  { %6031 = vmatpush3.bf16.msra.mxu0 %v6345_v1  ;;  %v2334_v1 = vld [vmem:[%s8290_s13 + $0x108] sm:$0xff] }
 0x5ac   :  { %6032 = vmatprep.subr.bf16.mxu0 %v6527_v19 }
 0x5ad   :  { %2155 = vmatpush1.bf16.msra.mxu1 %v6363_v47  ;;  %v5325_v47 = vcombine.high %v2358_v4, %v2362_v5 }
 0x5ae   :  { %2156 = vmatprep.subr.bf16.mxu1 %v6368_v6  ;;  %v5324_v6 = vcombine.low %v2358_v4, %v2362_v5  ;;  %v2353_v4 = vld [vmem:[%s8290_s13 + $0x1a0] sm:$0xff] }
 0x5af   :  { %6033 = vmatpush3.bf16.msra.mxu0 %v6346_v56  ;;  %v2338_v56 = vld [vmem:[%s8290_s13 + $0x128] sm:$0xff] }
 0x5b0   :  { %6034 = vmatprep.subr.bf16.mxu0 %v6527_v19  ;;  %v5300_v58 = vcombine.low %v2334_v1, %v2338_v56 }
 0x5b1   :  { %2157 = vmatpush1.bf16.msra.mxu1 %v6366_v7  ;;  %v2366_v7 = vld [vmem:[%s8290_s13 + $0x208] sm:$0xff] }
 0x5b2   :  { %2158 = vmatprep.subr.bf16.mxu1 %v6371_v8  ;;  %v2370_v8 = vld [vmem:[%s8290_s13 + $0x228] sm:$0xff] }
 0x5b3   :  { %6035 = vmatpush3.bf16.msra.mxu0 %v6347_v57  ;;  %v5301_v57 = vcombine.high %v2334_v1, %v2338_v56  ;;  %v2329_v1 = vld [vmem:[%s8290_s13 + $0xe0] sm:$0xff] }
 0x5b4   :  { %6040 = vmatprep.subr.bf16.mxu0 %v6527_v19 }
 0x5b5   :  { %2159 = vmatpush1.bf16.msra.mxu1 %v6369_v9  ;;  %v5333_v9 = vcombine.high %v2366_v7, %v2370_v8 }
 0x5b6   :  { %6037 = vmatmul.mubr.bf16.vlgmr.msra.gmra.mrb[20].mxu0 %v1736_v52  ;;  %3159 = vmatprep.subr.bf16.mxu1 %v5269_v43  ;;  %v5284_v52 = vcombine.low %v2318_v49, %v2322_v50  ;;  %v6372_v43 = vld [vmem:[%s8289_s12 + $0x8] sm:$0xff]   ;;  %v6373_v49 = vld [vmem:[%s8289_s12] sm:$0xff]  }
 0x5b7   :  { %6042 = vmatprep.mubr.msk.bf16.mxu0 %vm6528_vm0, %v6527_v19 }
 0x669   :  { %v1819_v10 = vpop.f32.mrb[16].mxu0  ;;  %v1924_v11 = vpop.f32.mrb[28].mxu1 }
 0x66a   :  { %v2035_v12 = vrot.slane %v1819_v10, 7  ;;  %v5998_v13 = vpop.f32.mrb[17].mxu0  ;;  %v6018_v14 = vpop.f32.mrb[29].mxu1  ;;  %v5332_v10 = vcombine.low %v2366_v7, %v2370_v8  ;;  %v2361_v7 = vld [vmem:[%s8290_s13 + $0x1e0] sm:$0xff] }
 0x66b   :  { %v1822_v15 = vpop.f32.mrb[18].mxu0  ;;  %v1927_v20 = vpop.f32.mrb[30].mxu1 }
 0x66c   :  { %v2036_v23 = vsel %vm1707_vm4, 0.0, %v2035_v12  ;;  %v5999_v24 = vpop.f32.mrb[19].mxu0  ;;  %v6019_v25 = vpop.f32.mrb[31].mxu1  ;;  %v2378_v12 = vld [vmem:[%s8290_s13 + $0x268] sm:$0xff] }
 0x66d   :  { %v2037_v26 = vadd.f32 %v2036_v23, %v1924_v11  ;;  %v2374_v11 = vld [vmem:[%s8290_s13 + $0x248] sm:$0xff] }
 0x66e   :  { %v5341_v13 = vcombine.high %v2374_v11, %v2378_v12  ;;  %v5340_v14 = vcombine.low %v2374_v11, %v2378_v12  ;;  %v2382_v15 = vld [vmem:[%s8290_s13 + $0x288] sm:$0xff]  ;;  %v2369_v11 = vld [vmem:[%s8290_s13 + $0x220] sm:$0xff] }
 0x66f   :  { %v2386_v20 = vld [vmem:[%s8290_s13 + $0x2a8] sm:$0xff] }
 0x670   :  { %v5349_v23 = vcombine.high %v2382_v15, %v2386_v20  ;;  %v5348_v24 = vcombine.low %v2382_v15, %v2386_v20  ;;  %v2390_v25 = vld [vmem:[%s8290_s13 + $0x2c8] sm:$0xff]  ;;  %v2377_v15 = vld [vmem:[%s8290_s13 + $0x260] sm:$0xff] }
 0x689   :  { %v2029_v27 = vpop.f32.mrb[20].mxu0 }
 0x68a   :  { %v2038_v28 = vrot.slane %v2029_v27, 1  ;;  %v6038_v29 = vpop.f32.mrb[21].mxu0 }
 0x68b   :  { %v2032_v30 = vpop.f32.mrb[22].mxu0  ;;  %v2398_v29 = vld [vmem:[%s8290_s13 + $0x308] sm:$0xff] }
 0x68c   :  { %v2039_v32 = vsel %vm1711_vm5, 0.0, %v2038_v28  ;;  %v6039_v33 = vpop.f32.mrb[23].mxu0  ;;  %v2402_v30 = vld [vmem:[%s8290_s13 + $0x328] sm:$0xff] }
 0x68d   :  { %v2040_v34 = vadd.f32 %v2039_v32, %v2037_v26  ;;  %v2394_v26 = vld [vmem:[%s8290_s13 + $0x2e8] sm:$0xff]  ;;  %v5364_v32 = vcombine.low %v2398_v29, %v2402_v30 }
 0x68e   :  { %v5357_v27 = vcombine.high %v2390_v25, %v2394_v26  ;;  %v5356_v28 = vcombine.low %v2390_v25, %v2394_v26  ;;  %v2385_v25 = vld [vmem:[%s8290_s13 + $0x2a0] sm:$0xff] }
 0x68f   :  { %v2041_v35 = vadd.f32 %v2040_v34, %v1719_v31  ;;  %v5365_v31 = vcombine.high %v2398_v29, %v2402_v30  ;;  %v2393_v29 = vld [vmem:[%s8290_s13 + $0x2e0] sm:$0xff] }
 0x691   :  { %v2043_v36 = vmul.f32 0.1, %v2041_v35  ;;  %vm2042_vm7 = vcmp.ge.f32.partialorder %v2041_v35, 0.0 }
 0x693   :  { %v2044_v37 = vsel %vm2042_vm7, %v2041_v35, %v2043_v36 }
 0x694   :  { %v2063_v38 = vpack.c.bf16 %v2044_v37, %v2044_v37 }
 0x696   :  { %2177 = vmatmul.mubr.bf16.vlgmr.msra.gmra.mrb[32].mxu1 %v2063_v38  ;;  %v2301_v38 = vld [vmem:[%s8290_s13] sm:$0xff] }
 0x697   :  { %3160 = vmatpush1.bf16.msra.mxu1 %v5268_v41  ;;  %v5267_v44 = vcombine.high %v2301_v38, %v2305_v39  ;;  %v5266_v50 = vcombine.low %v2301_v38, %v2305_v39  ;;  %v2409_v38 = vld [vmem:[%s8290_s13 + $0x360] sm:$0xff]  ;;  %v2406_v39 = vld [vmem:[%s8290_s13 + $0x348] sm:$0xff] }
 0x698   :  { %3161 = vmatprep.subr.bf16.mxu1 %v5277_v46  ;;  %v2309_v46 = vld [vmem:[%s8290_s13 + $0x40] sm:$0xff] }
 0x69b   :  { %3162 = vmatpush1.bf16.msra.mxu1 %v5276_v48  ;;  %v2313_v48 = vld [vmem:[%s8290_s13 + $0x60] sm:$0xff] }
 0x69c   :  { %3163 = vmatprep.subr.bf16.mxu1 %v5285_v51  ;;  %v5275_v51 = vcombine.high %v2309_v46, %v2313_v48  ;;  %v5274_v42 = vcombine.low %v2309_v46, %v2313_v48  ;;  %v2413_v46 = vld [vmem:[%s8290_s13 + $0x380] sm:$0xff] }
 0x69d   :  { %v2417_v48 = vld [vmem:[%s8290_s13 + $0x3a0] sm:$0xff] }
 0x69f   :  { %3164 = vmatpush1.bf16.msra.mxu1 %v5284_v52  ;;  %v2317_v52 = vld [vmem:[%s8290_s13 + $0x80] sm:$0xff] }
 0x6a0   :  { %3165 = vmatprep.subr.bf16.mxu1 %v5293_v54  ;;  %v5283_v54 = vcombine.high %v2317_v52, %v2321_v53  ;;  %v5282_v56 = vcombine.low %v2317_v52, %v2321_v53  ;;  %v5378_v52 = vcombine.low %v2413_v46, %v2417_v48 }
 0x6a3   :  { %3166 = vmatpush1.bf16.msra.mxu1 %v5292_v55  ;;  %v2325_v55 = vld [vmem:[%s8290_s13 + $0xc0] sm:$0xff] }
 0x6a4   :  { %3167 = vmatprep.subr.bf16.mxu1 %v5301_v57  ;;  %v5291_v57 = vcombine.high %v2325_v55, %v2329_v1  ;;  %v5290_v60 = vcombine.low %v2325_v55, %v2329_v1  ;;  %v2425_v55 = vld [vmem:[%s8290_s13 + $0x3e0] sm:$0xff]  ;;  %v2422_v1 = vld [vmem:[%s8290_s13 + $0x3c8] sm:$0xff] }
 0x6a7   :  { %3168 = vmatpush1.bf16.msra.mxu1 %v5300_v58  ;;  %v2333_v58 = vld [vmem:[%s8290_s13 + $0x100] sm:$0xff] }
 0x6a8   :  { %3169 = vmatprep.subr.bf16.mxu1 %v5309_v61  ;;  %v5299_v61 = vcombine.high %v2333_v58, %v2337_v59  ;;  %v5298_v0 = vcombine.low %v2333_v58, %v2337_v59 }
 0x6ab   :  { %3170 = vmatpush1.bf16.msra.mxu1 %v5308_v62  ;;  %v2341_v62 = vld [vmem:[%s8290_s13 + $0x140] sm:$0xff] }
 0x6ac   :  { %3171 = vmatprep.subr.bf16.mxu1 %v5317_v2  ;;  %v5307_v2 = vcombine.high %v2341_v62, %v2345_v63  ;;  %v5306_v5 = vcombine.low %v2341_v62, %v2345_v63  ;;  %v2307_v62 = vld [vmem:[%s8290_s13 + $0x30] sm:$0xff]  ;;  %v2304_v63 = vld [vmem:[%s8290_s13 + $0x18] sm:$0xff] }
 0x6af   :  { %3172 = vmatpush1.bf16.msra.mxu1 %v5316_v3  ;;  %v2349_v3 = vld [vmem:[%s8290_s13 + $0x180] sm:$0xff] }
 0x6b0   :  { %3173 = vmatprep.subr.bf16.mxu1 %v5325_v47  ;;  %v5315_v47 = vcombine.high %v2349_v3, %v2353_v4  ;;  %v5314_v8 = vcombine.low %v2349_v3, %v2353_v4 }
 0x6b3   :  { %3174 = vmatpush1.bf16.msra.mxu1 %v5324_v6  ;;  %v2357_v6 = vld [vmem:[%s8290_s13 + $0x1c0] sm:$0xff] }
 0x6b4   :  { %3175 = vmatprep.subr.bf16.mxu1 %v5333_v9  ;;  %v5323_v9 = vcombine.high %v2357_v6, %v2361_v7  ;;  %v5322_v12 = vcombine.low %v2357_v6, %v2361_v7 }
 0x6b7   :  { %3176 = vmatpush1.bf16.msra.mxu1 %v5332_v10  ;;  %v2365_v10 = vld [vmem:[%s8290_s13 + $0x200] sm:$0xff] }
 0x6b8   :  { %3177 = vmatprep.subr.bf16.mxu1 %v5341_v13  ;;  %v5331_v13 = vcombine.high %v2365_v10, %v2369_v11  ;;  %v5330_v20 = vcombine.low %v2365_v10, %v2369_v11 }
 0x6bb   :  { %3178 = vmatpush1.bf16.msra.mxu1 %v5340_v14  ;;  %v2373_v14 = vld [vmem:[%s8290_s13 + $0x240] sm:$0xff] }
 0x6bc   :  { %3179 = vmatprep.subr.bf16.mxu1 %v5349_v23  ;;  %v5339_v23 = vcombine.high %v2373_v14, %v2377_v15  ;;  %v5338_v26 = vcombine.low %v2373_v14, %v2377_v15 }
 0x6bf   :  { %3180 = vmatpush1.bf16.msra.mxu1 %v5348_v24  ;;  %v2381_v24 = vld [vmem:[%s8290_s13 + $0x280] sm:$0xff] }
 0x6c0   :  { %3181 = vmatprep.subr.bf16.mxu1 %v5357_v27  ;;  %v5347_v27 = vcombine.high %v2381_v24, %v2385_v25  ;;  %v5346_v30 = vcombine.low %v2381_v24, %v2385_v25 }
 0x6c3   :  { %3182 = vmatpush1.bf16.msra.mxu1 %v5356_v28  ;;  %v2389_v28 = vld [vmem:[%s8290_s13 + $0x2c0] sm:$0xff] }
 0x6c4   :  { %3183 = vmatprep.subr.bf16.mxu1 %v5365_v31  ;;  %v5355_v31 = vcombine.high %v2389_v28, %v2393_v29 }
 0x6c7   :  { %3184 = vmatpush1.bf16.msra.mxu1 %v5364_v32  ;;  %v2397_v32 = vld [vmem:[%s8290_s13 + $0x300] sm:$0xff] }
 0x769   :  { %v2178_v33 = vpop.f32.mrb[32].mxu1 }
 0x76a   :  { %v2180_v34 = vpop.f32.mrb[33].mxu1  ;;  %v2187_v40 = vpack.c.bf16 %v2178_v33, %v2178_v33  ;;  %v2401_v33 = vld [vmem:[%s8290_s13 + $0x320] sm:$0xff] }
 0x76b   :  { %v2191_v35 = vpack.c.bf16 %v2180_v34, %v2180_v34  ;;  %v2182_v36 = vpop.f32.mrb[34].mxu1  ;;  %v5354_v34 = vcombine.low %v2389_v28, %v2393_v29  ;;  %v2315_v28 = vld [vmem:[%s8290_s13 + $0x70] sm:$0xff]  ;;  %v2312_v29 = vld [vmem:[%s8290_s13 + $0x58] sm:$0xff] }
 0x76c   :  { %v2183_v37 = vpop.f32.mrb[35].mxu1  ;;  %v2255_v45 = vsel %vm2201_vm8, %v2187_v40, 0  ;;  %v5362_v36 = vcombine.low %v2397_v32, %v2401_v33 }
 0x76d   :  { %v2203_v41 = vsel %vm2201_vm8, %v2191_v35, 0  ;;  %v5363_v35 = vcombine.high %v2397_v32, %v2401_v33  ;;  %v2405_v37 = vld [vmem:[%s8290_s13 + $0x340] sm:$0xff]  ;;  %v2319_v32 = vld [vmem:[%s8290_s13 + $0x90] sm:$0xff] }
 0x76e   :  { %6041 = vmatpush3.bf16.msra.mxu0 %v2203_v41  ;;  %v5370_v40 = vcombine.low %v2405_v37, %v2409_v38  ;;  %v5371_v41 = vcombine.high %v2405_v37, %v2409_v38  ;;  %v2324_v37 = vld [vmem:[%s8290_s13 + $0xb8] sm:$0xff] }
 0x76f   :  { %6046 = vmatprep.subr.bf16.mxu0 %v6527_v19 }
 0x771   :  { %6043 = vmatmul.mubr.msk.bf16.vlgmr.msra.gmra.mrb[24].mxu0 %vm2197_vm9, %v6372_v43  ;;  %v2410_v43 = vld [vmem:[%s8290_s13 + $0x368] sm:$0xff] }
 0x772   :  { %6047 = vmatpush3.bf16.msra.mxu0 %v2255_v45  ;;  %6048 = vmatprep.mubr.msk.bf16.mxu0 %vm6528_vm0, %v6527_v19  ;;  %v5373_v45 = vcombine.high %v2406_v39, %v2410_v43 }
 0x773   :  { %3116 = vmatprep.subr.bf16.mxu0 %v5267_v44  ;;  %v5372_v44 = vcombine.low %v2406_v39, %v2410_v43  ;;  %v2327_v43 = vld [vmem:[%s8290_s13 + $0xd0] sm:$0xff] }
 0x774   :  { %3185 = vmatprep.subr.bf16.mxu1 %v5373_v45  ;;  %v2328_v45 = vld [vmem:[%s8290_s13 + $0xd8] sm:$0xff] }
 0x775   :  { %3186 = vmatpush1.bf16.msra.mxu1 %v5372_v44  ;;  %v2331_v44 = vld [vmem:[%s8290_s13 + $0xf0] sm:$0xff] }
 0x779   :  { %6049 = vmatmul.mubr.msk.bf16.vlgmr.msra.gmra.mrb[28].mxu0 %vm2197_vm9, %v6373_v49  ;;  %v2414_v49 = vld [vmem:[%s8290_s13 + $0x388] sm:$0xff] }
 0x77a   :  { %3117 = vmatpush1.bf16.msra.mxu0 %v5266_v50  ;;  %v5379_v50 = vcombine.high %v2413_v46, %v2417_v48  ;;  %v2332_v46 = vld [vmem:[%s8290_s13 + $0xf8] sm:$0xff] }
 0x77b   :  { %3118 = vmatprep.subr.bf16.mxu0 %v5275_v51  ;;  %v2418_v51 = vld [vmem:[%s8290_s13 + $0x3a8] sm:$0xff] }
 0x77c   :  { %v5380_v53 = vcombine.low %v2414_v49, %v2418_v51 }
 0x77e   :  { %3119 = vmatpush1.bf16.msra.mxu0 %v5274_v42  ;;  %v5381_v42 = vcombine.high %v2414_v49, %v2418_v51  ;;  %v5297_v51 = vcombine.high %v2328_v45, %v2332_v46 }
 0x77f   :  { %3120 = vmatprep.subr.bf16.mxu0 %v5283_v54  ;;  %v2421_v54 = vld [vmem:[%s8290_s13 + $0x3c0] sm:$0xff] }
 0x780   :  { %3187 = vmatprep.subr.bf16.mxu1 %v5381_v42  ;;  %v5386_v58 = vcombine.low %v2421_v54, %v2425_v55  ;;  %v2336_v42 = vld [vmem:[%s8290_s13 + $0x118] sm:$0xff] }
 0x781   :  { %3188 = vmatpush1.bf16.msra.mxu1 %v5380_v53  ;;  %v2339_v53 = vld [vmem:[%s8290_s13 + $0x130] sm:$0xff] }
 0x782   :  { %3121 = vmatpush1.bf16.msra.mxu0 %v5282_v56  ;;  %v5387_v56 = vcombine.high %v2421_v54, %v2425_v55  ;;  %v2340_v54 = vld [vmem:[%s8290_s13 + $0x138] sm:$0xff]  ;;  %v5294_v55 = vcombine.low %v2327_v43, %v2331_v44 }
 0x783   :  { %3122 = vmatprep.subr.bf16.mxu0 %v5291_v57  ;;  %v2426_v57 = vld [vmem:[%s8290_s13 + $0x3e8] sm:$0xff] }
 0x784   :  { %v5388_v59 = vcombine.low %v2422_v1, %v2426_v57 }
 0x786   :  { %3123 = vmatpush1.bf16.msra.mxu0 %v5290_v60  ;;  %v5389_v60 = vcombine.high %v2422_v1, %v2426_v57  ;;  %v5296_v1 = vcombine.low %v2328_v45, %v2332_v46  ;;  %v5305_v57 = vcombine.high %v2336_v42, %v2340_v54  ;;  %v2384_v45 = vld [vmem:[%s8290_s13 + $0x298] sm:$0xff] }
 0x787   :  { %3124 = vmatprep.subr.bf16.mxu0 %v5299_v61  ;;  %v2303_v61 = vld [vmem:[%s8290_s13 + $0x10] sm:$0xff]  ;;  %v2388_v46 = vld [vmem:[%s8290_s13 + $0x2b8] sm:$0xff] }
 0x788   :  { %3189 = vmatprep.subr.bf16.mxu1 %v5389_v60  ;;  %v5270_v3 = vcombine.low %v2303_v61, %v2307_v62  ;;  %v2344_v60 = vld [vmem:[%s8290_s13 + $0x158] sm:$0xff] }
 0x789   :  { %3190 = vmatpush1.bf16.msra.mxu1 %v5388_v59  ;;  %v2347_v59 = vld [vmem:[%s8290_s13 + $0x170] sm:$0xff] }
 0x78a   :  { %3125 = vmatpush1.bf16.msra.mxu0 %v5298_v0  ;;  %v5271_v0 = vcombine.high %v2303_v61, %v2307_v62  ;;  %v2348_v61 = vld [vmem:[%s8290_s13 + $0x178] sm:$0xff] }
 0x78b   :  { %3126 = vmatprep.subr.bf16.mxu0 %v5307_v2  ;;  %v2308_v2 = vld [vmem:[%s8290_s13 + $0x38] sm:$0xff] }
 0x78c   :  { %v5272_v4 = vcombine.low %v2304_v63, %v2308_v2 }
 0x78e   :  { %3127 = vmatpush1.bf16.msra.mxu0 %v5306_v5  ;;  %v5273_v5 = vcombine.high %v2304_v63, %v2308_v2  ;;  %v5304_v63 = vcombine.low %v2336_v42, %v2340_v54  ;;  %v5313_v2 = vcombine.high %v2344_v60, %v2348_v61  ;;  %v2392_v42 = vld [vmem:[%s8290_s13 + $0x2d8] sm:$0xff] }
 0x78f   :  { %3128 = vmatprep.subr.bf16.mxu0 %v5315_v47  ;;  %v2396_v54 = vld [vmem:[%s8290_s13 + $0x2f8] sm:$0xff] }
 0x790   :  { %3245 = vmatprep.subr.bf16.mxu1 %v5273_v5  ;;  %v2352_v5 = vld [vmem:[%s8290_s13 + $0x198] sm:$0xff] }
 0x792   :  { %3129 = vmatpush1.bf16.msra.mxu0 %v5314_v8 }
 0x793   :  { %3130 = vmatprep.subr.bf16.mxu0 %v5323_v9 }
 0x796   :  { %3131 = vmatpush1.bf16.msra.mxu0 %v5322_v12  ;;  %v2298_v12 = vld [vmem:[%s8283_s3 + $0x5] ss:$0 sm:$0xff] }
 0x797   :  { %3132 = vmatprep.subr.bf16.mxu0 %v5331_v13 }
 0x79a   :  { %3133 = vmatpush1.bf16.msra.mxu0 %v5330_v20  ;;  %v2045_v20 = vld [vmem:[%s8292_s2] sm:$0xff] }
 0x79b   :  { %3134 = vmatprep.subr.bf16.mxu0 %v5339_v23  ;;  %v2046_v23 = vld [vmem:[%s8292_s2 + $0x8] sm:$0xff] }
 0x79e   :  { %3135 = vmatpush1.bf16.msra.mxu0 %v5338_v26  ;;  %v2311_v26 = vld [vmem:[%s8290_s13 + $0x50] sm:$0xff] }
 0x79f   :  { %3136 = vmatprep.subr.bf16.mxu0 %v5347_v27  ;;  %v7559_v27 = vpack.c.bf16 %v2046_v23, %v2045_v20  ;;  %v5279_v33 = vcombine.high %v2311_v26, %v2315_v28  ;;  %v5278_v38 = vcombine.low %v2311_v26, %v2315_v28  ;;  %v2368_v26 = vld [vmem:[%s8290_s13 + $0x218] sm:$0xff] }
 0x7a0   :  { %v2372_v28 = vld [vmem:[%s8290_s13 + $0x238] sm:$0xff] }
 0x7a2   :  { %3137 = vmatpush1.bf16.msra.mxu0 %v5346_v30  ;;  %v2316_v30 = vld [vmem:[%s8290_s13 + $0x78] sm:$0xff] }
 0x7a3   :  { %3138 = vmatprep.subr.bf16.mxu0 %v5355_v31  ;;  %v5280_v39 = vcombine.low %v2312_v29, %v2316_v30 }
 0x7a6   :  { %3139 = vmatpush1.bf16.msra.mxu0 %v5354_v34  ;;  %v5281_v34 = vcombine.high %v2312_v29, %v2316_v30 }
 0x7a7   :  { %3140 = vmatprep.subr.bf16.mxu0 %v5363_v35  ;;  %v2323_v35 = vld [vmem:[%s8290_s13 + $0xb0] sm:$0xff] }
 0x7a8   :  { %v5286_v48 = vcombine.low %v2319_v32, %v2323_v35 }
 0x7aa   :  { %3141 = vmatpush1.bf16.msra.mxu0 %v5362_v36  ;;  %v2320_v36 = vld [vmem:[%s8290_s13 + $0x98] sm:$0xff] }
 0x7ab   :  { %3142 = vmatprep.subr.bf16.mxu0 %v5371_v41  ;;  %v5289_v41 = vcombine.high %v2320_v36, %v2324_v37  ;;  %v5288_v49 = vcombine.low %v2320_v36, %v2324_v37  ;;  %v2376_v36 = vld [vmem:[%s8290_s13 + $0x258] sm:$0xff] }
 0x7ac   :  { %v2380_v37 = vld [vmem:[%s8290_s13 + $0x278] sm:$0xff] }
 0x7ae   :  { %3143 = vmatpush1.bf16.msra.mxu0 %v5370_v40  ;;  %v5287_v40 = vcombine.high %v2319_v32, %v2323_v35  ;;  %v2379_v35 = vld [vmem:[%s8290_s13 + $0x270] sm:$0xff] }
 0x7af   :  { %3144 = vmatprep.subr.bf16.mxu0 %v5379_v50  ;;  %v5295_v50 = vcombine.high %v2327_v43, %v2331_v44  ;;  %v2383_v43 = vld [vmem:[%s8290_s13 + $0x290] sm:$0xff] }
 0x7b0   :  { %v2387_v44 = vld [vmem:[%s8290_s13 + $0x2b0] sm:$0xff] }
 0x7b2   :  { %3145 = vmatpush1.bf16.msra.mxu0 %v5378_v52  ;;  %v2335_v52 = vld [vmem:[%s8290_s13 + $0x110] sm:$0xff] }
 0x7b3   :  { %3146 = vmatprep.subr.bf16.mxu0 %v5387_v56  ;;  %v5303_v56 = vcombine.high %v2335_v52, %v2339_v53  ;;  %v5302_v62 = vcombine.low %v2335_v52, %v2339_v53  ;;  %v2391_v52 = vld [vmem:[%s8290_s13 + $0x2d0] sm:$0xff] }
 0x7b4   :  { %v2395_v53 = vld [vmem:[%s8290_s13 + $0x2f0] sm:$0xff] }
 0x7b6   :  { %3147 = vmatpush1.bf16.msra.mxu0 %v5386_v58  ;;  %v2343_v58 = vld [vmem:[%s8290_s13 + $0x150] sm:$0xff] }
 0x7b7   :  { %3202 = vmatprep.subr.bf16.mxu0 %v5271_v0  ;;  %v5311_v0 = vcombine.high %v2343_v58, %v2347_v59 }
 0x844   :  { %v2239_v47 = vpop.f32.mrb[24].mxu0 }
 0x845   :  { %v6044_v6 = vpop.f32.mrb[25].mxu0 }
 0x846   :  { %v2242_v7 = vpop.f32.mrb[26].mxu0  ;;  %v5310_v6 = vcombine.low %v2343_v58, %v2347_v59  ;;  %v2399_v58 = vld [vmem:[%s8290_s13 + $0x310] sm:$0xff] }
 0x847   :  { %v6045_v8 = vpop.f32.mrb[27].mxu0  ;;  %v2403_v59 = vld [vmem:[%s8290_s13 + $0x330] sm:$0xff] }
 0x84c   :  { %v2291_v9 = vpop.f32.mrb[28].mxu0 }
 0x84d   :  { %v2292_v10 = vadd.f32 %v2291_v9, %v2239_v47  ;;  %v6050_v11 = vpop.f32.mrb[29].mxu0  ;;  %v2356_v47 = vld [vmem:[%s8290_s13 + $0x1b8] sm:$0xff] }
 0x84e   :  { %v2294_v13 = vpop.f32.mrb[30].mxu0  ;;  %v5321_v9 = vcombine.high %v2352_v5, %v2356_v47  ;;  %v2363_v11 = vld [vmem:[%s8290_s13 + $0x1f0] sm:$0xff] }
 0x84f   :  { %v2295_v14 = vadd.f32 %v2294_v13, %v2242_v7  ;;  %v6051_v15 = vpop.f32.mrb[31].mxu0  ;;  %v2299_v24 = vadd.f32 %v2298_v12, %v2292_v10  ;;  %v5312_v7 = vcombine.low %v2344_v60, %v2348_v61  ;;  %v2359_v10 = vld [vmem:[%s8290_s13 + $0x1d0] sm:$0xff]  ;;  %v2364_v13 = vld [vmem:[%s8290_s13 + $0x1f8] sm:$0xff] }
 0x850   :  { %v5320_v15 = vcombine.low %v2352_v5, %v2356_v47  ;;  %v5327_v20 = vcombine.high %v2359_v10, %v2363_v11  ;;  %v5326_v29 = vcombine.low %v2359_v10, %v2363_v11  ;;  %v2400_v60 = vld [vmem:[%s8290_s13 + $0x318] sm:$0xff]  ;;  %v2415_v10 = vld [vmem:[%s8290_s13 + $0x390] sm:$0xff] }
 0x851   :  { %v2300_v25 = vadd.f32 %v2298_v12, %v2295_v14  ;;  %v2360_v12 = vld [vmem:[%s8290_s13 + $0x1d8] sm:$0xff]  ;;  %v2419_v11 = vld [vmem:[%s8290_s13 + $0x3b0] sm:$0xff] }
 0x852   :  { %v5329_v23 = vcombine.high %v2360_v12, %v2364_v13  ;;  %v5328_v30 = vcombine.low %v2360_v12, %v2364_v13  ;;  %v2404_v61 = vld [vmem:[%s8290_s13 + $0x338] sm:$0xff] }
 0x853   :  { %v7570_v31 = vpack.c.bf16 %v2300_v25, %v2299_v24  ;;  %v2367_v24 = vld [vmem:[%s8290_s13 + $0x210] sm:$0xff]  ;;  %v2408_v5 = vld [vmem:[%s8290_s13 + $0x358] sm:$0xff] }
 0x854   :  { %v2371_v25 = vld [vmem:[%s8290_s13 + $0x230] sm:$0xff]  ;;  %v2412_v47 = vld [vmem:[%s8290_s13 + $0x378] sm:$0xff] }
 0x855   :  { %3148 = vmatprep.mubr.bf16.mxu0 %v7570_v31  ;;  %3191 = vmatprep.mubr.bf16.mxu1 %v7570_v31  ;;  %v5335_v32 = vcombine.high %v2367_v24, %v2371_v25  ;;  %v2416_v12 = vld [vmem:[%s8290_s13 + $0x398] sm:$0xff] }
 0x856   :  { %3149 = vmatmul.mubr.bf16.vlgmr.msra.gmra.mrb[32].mxu0 %v7559_v27  ;;  %3192 = vmatmul.mubr.bf16.vlgmr.msra.gmra.mrb[36].mxu1 %v7559_v27  ;;  %v2420_v13 = vld [vmem:[%s8290_s13 + $0x3b8] sm:$0xff] }
 0x857   :  { %3203 = vmatpush1.bf16.msra.mxu0 %v5270_v3  ;;  %3246 = vmatpush1.bf16.msra.mxu1 %v5272_v4  ;;  %v2351_v3 = vld [vmem:[%s8290_s13 + $0x190] sm:$0xff] }
 0x858   :  { %3234 = vmatprep.mubr.bf16.mxu0 %v7570_v31  ;;  %3277 = vmatprep.mubr.bf16.mxu1 %v7570_v31  ;;  %v2355_v4 = vld [vmem:[%s8290_s13 + $0x1b0] sm:$0xff] }
 0x859   :  { %3204 = vmatprep.subr.bf16.mxu0 %v5279_v33  ;;  %3247 = vmatprep.subr.bf16.mxu1 %v5281_v34  ;;  %v5319_v8 = vcombine.high %v2351_v3, %v2355_v4  ;;  %v5318_v14 = vcombine.low %v2351_v3, %v2355_v4  ;;  %v5337_v33 = vcombine.high %v2368_v26, %v2372_v28  ;;  %v2375_v34 = vld [vmem:[%s8290_s13 + $0x250] sm:$0xff] }
 0x85a   :  { %v2407_v3 = vld [vmem:[%s8290_s13 + $0x350] sm:$0xff] }
 0x85b   :  { %3205 = vmatpush1.bf16.msra.mxu0 %v5278_v38  ;;  %3248 = vmatpush1.bf16.msra.mxu1 %v5280_v39  ;;  %v5334_v38 = vcombine.low %v2367_v24, %v2371_v25  ;;  %v5336_v39 = vcombine.low %v2368_v26, %v2372_v28  ;;  %v2411_v4 = vld [vmem:[%s8290_s13 + $0x370] sm:$0xff]  ;;  %v2424_v26 = vld [vmem:[%s8290_s13 + $0x3d8] sm:$0xff] }
 0x85c   :  { %3206 = vmatprep.subr.bf16.mxu0 %v5287_v40  ;;  %3249 = vmatprep.subr.bf16.mxu1 %v5289_v41  ;;  %v5343_v40 = vcombine.high %v2375_v34, %v2379_v35  ;;  %v5345_v41 = vcombine.high %v2376_v36, %v2380_v37  ;;  %v2423_v24 = vld [vmem:[%s8290_s13 + $0x3d0] sm:$0xff]  ;;  %v2428_v28 = vld [vmem:[%s8290_s13 + $0x3f8] sm:$0xff] }
 0x85d   :  { %v2427_v25 = vld [vmem:[%s8290_s13 + $0x3f0] sm:$0xff] }
 0x85f   :  { %3207 = vmatpush1.bf16.msra.mxu0 %v5286_v48  ;;  %3250 = vmatpush1.bf16.msra.mxu1 %v5288_v49  ;;  %v5342_v48 = vcombine.low %v2375_v34, %v2379_v35  ;;  %v5344_v49 = vcombine.low %v2376_v36, %v2380_v37  ;;  %v5390_v34 = vcombine.low %v2423_v24, %v2427_v25  ;;  %v6374_v36 = vld [vmem:[%s8291_s14 + $0x40] sm:$0xff]  }
 0x860   :  { %3208 = vmatprep.subr.bf16.mxu0 %v5295_v50  ;;  %3251 = vmatprep.subr.bf16.mxu1 %v5297_v51  ;;  %v5351_v50 = vcombine.high %v2383_v43, %v2387_v44  ;;  %v5353_v51 = vcombine.high %v2384_v45, %v2388_v46  ;;  %v5392_v35 = vcombine.low %v2424_v26, %v2428_v28  ;;  %v6375_v37 = vld [vmem:[%s8291_s14 + $0xc0] sm:$0xff]  }
 0x863   :  { %3209 = vmatpush1.bf16.msra.mxu0 %v5294_v55  ;;  %3252 = vmatpush1.bf16.msra.mxu1 %v5296_v1  ;;  %v5350_v55 = vcombine.low %v2383_v43, %v2387_v44  ;;  %v5352_v1 = vcombine.low %v2384_v45, %v2388_v46  ;;  %v6380_v43 = vld [vmem:[%s8291_s14 + $0x8] sm:$0xff]   ;;  %v6382_v45 = vld [vmem:[%s8291_s14 + $0x50] sm:$0xff]  }
 0x864   :  { %3210 = vmatprep.subr.bf16.mxu0 %v5303_v56  ;;  %3253 = vmatprep.subr.bf16.mxu1 %v5305_v57  ;;  %v5359_v56 = vcombine.high %v2391_v52, %v2395_v53  ;;  %v5361_v57 = vcombine.high %v2392_v42, %v2396_v54  ;;  %v6381_v44 = vld [vmem:[%s8291_s14 + $0x88] sm:$0xff]   ;;  %v6384_v46 = vld [vmem:[%s8291_s14 + $0x10] sm:$0xff]  }
 0x867   :  { %3211 = vmatpush1.bf16.msra.mxu0 %v5302_v62  ;;  %3254 = vmatpush1.bf16.msra.mxu1 %v5304_v63  ;;  %v5358_v62 = vcombine.low %v2391_v52, %v2395_v53  ;;  %v5360_v63 = vcombine.low %v2392_v42, %v2396_v54  ;;  %v6389_v52 = vld [vmem:[%s8291_s14 + $0x98] sm:$0xff]   ;;  %v6390_v53 = vld [vmem:[%s8291_s14 + $0x60] sm:$0xff]  }
 0x868   :  { %3212 = vmatprep.subr.bf16.mxu0 %v5311_v0  ;;  %3255 = vmatprep.subr.bf16.mxu1 %v5313_v2  ;;  %v5367_v0 = vcombine.high %v2399_v58, %v2403_v59  ;;  %v5369_v2 = vcombine.high %v2400_v60, %v2404_v61  ;;  %v6391_v42 = vld [vmem:[%s8291_s14 + $0xe0] sm:$0xff]  }
 0x869   :  { %v6392_v54 = vld [vmem:[%s8291_s14 + $0x20] sm:$0xff]  }
 0x86b   :  { %3213 = vmatpush1.bf16.msra.mxu0 %v5310_v6  ;;  %3256 = vmatpush1.bf16.msra.mxu1 %v5312_v7  ;;  %v5366_v6 = vcombine.low %v2399_v58, %v2403_v59  ;;  %v5368_v7 = vcombine.low %v2400_v60, %v2404_v61  ;;  %v6397_v58 = vld [vmem:[%s8291_s14 + $0xa8] sm:$0xff]   ;;  %v6398_v59 = vld [vmem:[%s8291_s14 + $0x70] sm:$0xff]  }
 0x86c   :  { %3214 = vmatprep.subr.bf16.mxu0 %v5319_v8  ;;  %3257 = vmatprep.subr.bf16.mxu1 %v5321_v9  ;;  %v5375_v8 = vcombine.high %v2407_v3, %v2411_v4  ;;  %v5377_v9 = vcombine.high %v2408_v5, %v2412_v47  ;;  %v6399_v60 = vld [vmem:[%s8291_s14 + $0xf0] sm:$0xff]  }
 0x86d   :  { %v6400_v61 = vld [vmem:[%s8291_s14 + $0x30] sm:$0xff]  }
 0x86f   :  { %3215 = vmatpush1.bf16.msra.mxu0 %v5318_v14  ;;  %3258 = vmatpush1.bf16.msra.mxu1 %v5320_v15  ;;  %v5374_v14 = vcombine.low %v2407_v3, %v2411_v4  ;;  %v5376_v15 = vcombine.low %v2408_v5, %v2412_v47  ;;  %v6405_v3 = vld [vmem:[%s8291_s14 + $0xb8] sm:$0xff]   ;;  %v6406_v4 = vld [vmem:[%s8291_s14 + $0x140] sm:$0xff]  }
 0x870   :  { %3216 = vmatprep.subr.bf16.mxu0 %v5327_v20  ;;  %3259 = vmatprep.subr.bf16.mxu1 %v5329_v23  ;;  %v5383_v20 = vcombine.high %v2415_v10, %v2419_v11  ;;  %v5385_v23 = vcombine.high %v2416_v12, %v2420_v13  ;;  %v6407_v5 = vld [vmem:[%s8291_s14 + $0x1c0] sm:$0xff]  }
 0x871   :  { %v5264_v47 = vld [vmem:[%s8283_s3 + $0x6] ss:$8 sm:$0xf] }
 0x873   :  { %3217 = vmatpush1.bf16.msra.mxu0 %v5326_v29  ;;  %3260 = vmatpush1.bf16.msra.mxu1 %v5328_v30  ;;  %v5382_v29 = vcombine.low %v2415_v10, %v2419_v11  ;;  %v5384_v30 = vcombine.low %v2416_v12, %v2420_v13 }
 0x874   :  { %3218 = vmatprep.subr.bf16.mxu0 %v5335_v32  ;;  %3261 = vmatprep.subr.bf16.mxu1 %v5337_v33  ;;  %v5391_v32 = vcombine.high %v2423_v24, %v2427_v25  ;;  %v5393_v33 = vcombine.high %v2424_v26, %v2428_v28 }
 0x877   :  { %3219 = vmatpush1.bf16.msra.mxu0 %v5334_v38  ;;  %3262 = vmatpush1.bf16.msra.mxu1 %v5336_v39  ;;  %v6376_v38 = vld [vmem:[%s8291_s14] sm:$0xff]  }
 0x878   :  { %3220 = vmatprep.subr.bf16.mxu0 %v5343_v40  ;;  %3263 = vmatprep.subr.bf16.mxu1 %v5345_v41  ;;  %v6377_v39 = vld [vmem:[%s8291_s14 + $0x80] sm:$0xff]   ;;  %v6378_v40 = vld [vmem:[%s8291_s14 + $0x48] sm:$0xff]  }
 0x879   :  { %v6379_v41 = vld [vmem:[%s8291_s14 + $0xc8] sm:$0xff]  }
 0x87b   :  { %3221 = vmatpush1.bf16.msra.mxu0 %v5342_v48  ;;  %3264 = vmatpush1.bf16.msra.mxu1 %v5344_v49  ;;  %v6385_v48 = vld [vmem:[%s8291_s14 + $0x90] sm:$0xff]   ;;  %v6386_v49 = vld [vmem:[%s8291_s14 + $0x58] sm:$0xff]  }
 0x87c   :  { %3222 = vmatprep.subr.bf16.mxu0 %v5351_v50  ;;  %3265 = vmatprep.subr.bf16.mxu1 %v5353_v51  ;;  %v6387_v50 = vld [vmem:[%s8291_s14 + $0xd8] sm:$0xff]  }
 0x87d   :  { %v6388_v51 = vld [vmem:[%s8291_s14 + $0x18] sm:$0xff]  }
 0x87f   :  { %3223 = vmatpush1.bf16.msra.mxu0 %v5350_v55  ;;  %3266 = vmatpush1.bf16.msra.mxu1 %v5352_v1  ;;  %v6393_v55 = vld [vmem:[%s8291_s14 + $0xa0] sm:$0xff]   ;;  %v6394_v1 = vld [vmem:[%s8291_s14 + $0x68] sm:$0xff]  }
 0x880   :  { %3224 = vmatprep.subr.bf16.mxu0 %v5359_v56  ;;  %3267 = vmatprep.subr.bf16.mxu1 %v5361_v57  ;;  %v6395_v56 = vld [vmem:[%s8291_s14 + $0xe8] sm:$0xff]  }
 0x881   :  { %v6396_v57 = vld [vmem:[%s8291_s14 + $0x28] sm:$0xff]  }
 0x883   :  { %3225 = vmatpush1.bf16.msra.mxu0 %v5358_v62  ;;  %3268 = vmatpush1.bf16.msra.mxu1 %v5360_v63  ;;  %v6401_v62 = vld [vmem:[%s8291_s14 + $0xb0] sm:$0xff]   ;;  %v6402_v63 = vld [vmem:[%s8291_s14 + $0x78] sm:$0xff]  }
 0x884   :  { %3226 = vmatprep.subr.bf16.mxu0 %v5367_v0  ;;  %3269 = vmatprep.subr.bf16.mxu1 %v5369_v2  ;;  %v6403_v0 = vld [vmem:[%s8291_s14 + $0xf8] sm:$0xff]  }
 0x885   :  { %v6404_v2 = vld [vmem:[%s8291_s14 + $0x38] sm:$0xff]  }
 0x887   :  { %3227 = vmatpush1.bf16.msra.mxu0 %v5366_v6  ;;  %3270 = vmatpush1.bf16.msra.mxu1 %v5368_v7  ;;  %v5265_v6 = vld [vmem:[%s8283_s3 + $0x6] ss:$8 sm:$0xf0] }
 0x888   :  { %3228 = vmatprep.subr.bf16.mxu0 %v5375_v8  ;;  %3271 = vmatprep.subr.bf16.mxu1 %v5377_v9  ;;  %v7856_v7 = vor.u32 %v5265_v6, %v5264_v47  ;;  %v6434_v47 = vld [vmem:[%s8291_s14 + $0x178] sm:$0xff]  }
 0x889   :  { %v6435_v6 = vld [vmem:[%s8291_s14 + $0x1f8] sm:$0xff]  }
 0x88a   :  { %v2439_v8 = vrot.slane %v7856_v7, %v372_v17  ;;  %v2447_v9 = vrot.slane %v7856_v7, %v380_v18  ;;  %v2443_v10 = vrot.slane %v7856_v7, %v376_v21  ;;  %v2451_v11 = vrot.slane %v7856_v7, %v384_v22 }
 0x88b   :  { %3229 = vmatpush1.bf16.msra.mxu0 %v5374_v14  ;;  %3272 = vmatpush1.bf16.msra.mxu1 %v5376_v15 }
 0x88c   :  { %3230 = vmatprep.subr.bf16.mxu0 %v5383_v20  ;;  %3273 = vmatprep.subr.bf16.mxu1 %v5385_v23 }
 0x88f   :  { %3231 = vmatpush1.bf16.msra.mxu0 %v5382_v29  ;;  %3274 = vmatpush1.bf16.msra.mxu1 %v5384_v30 }
 0x890   :  { %3232 = vmatprep.subr.bf16.mxu0 %v5391_v32  ;;  %3275 = vmatprep.subr.bf16.mxu1 %v5393_v33 }
 0x893   :  { %3233 = vmatpush1.bf16.msra.mxu0 %v5390_v34  ;;  %3276 = vmatpush1.bf16.msra.mxu1 %v5392_v35 }
 0x894   :  { %5778 = vmatprep.subr.bf16.mxu0 %v6374_v36  ;;  %5800 = vmatprep.subr.bf16.mxu1 %v6375_v37 }
 0x896   :  { %3235 = vmatmul.mubr.bf16.vlgmr.msra.gmra.mrb[36].mxu0 %v7559_v27  ;;  %3278 = vmatmul.mubr.bf16.vlgmr.msra.gmra.mrb[40].mxu1 %v7559_v27  ;;  %v6383_v27 = vld [vmem:[%s8291_s14 + $0xd0] sm:$0xff]  }
 0x897   :  { %5779 = vmatpush3.bf16.msra.mxu0 %v6376_v38  ;;  %5801 = vmatpush3.bf16.msra.mxu1 %v6377_v39 }
 0x898   :  { %5780 = vmatprep.subr.bf16.mxu0 %v6378_v40  ;;  %5802 = vmatprep.subr.bf16.mxu1 %v6379_v41 }
 0x89b   :  { %5781 = vmatpush3.bf16.msra.mxu0 %v6380_v43  ;;  %5803 = vmatpush3.bf16.msra.mxu1 %v6381_v44 }
 0x89c   :  { %5782 = vmatprep.subr.bf16.mxu0 %v6382_v45  ;;  %5804 = vmatprep.subr.bf16.mxu1 %v6383_v27  ;;  %v6408_v45 = vld [vmem:[%s8291_s14 + $0x100] sm:$0xff]  }
 0x89d   :  { %v6409_v27 = vld [vmem:[%s8291_s14 + $0x180] sm:$0xff]  }
 0x89f   :  { %5783 = vmatpush3.bf16.msra.mxu0 %v6384_v46  ;;  %5805 = vmatpush3.bf16.msra.mxu1 %v6385_v48  ;;  %v6410_v46 = vld [vmem:[%s8291_s14 + $0x148] sm:$0xff]  }
 0x8a0   :  { %5784 = vmatprep.subr.bf16.mxu0 %v6386_v49  ;;  %5806 = vmatprep.subr.bf16.mxu1 %v6387_v50  ;;  %v6411_v48 = vld [vmem:[%s8291_s14 + $0x1c8] sm:$0xff]  }
 0x8a1   :  { %v6412_v49 = vld [vmem:[%s8291_s14 + $0x108] sm:$0xff]  }
 0x8a2   :  { %v6413_v50 = vld [vmem:[%s8291_s14 + $0x188] sm:$0xff]  }
 0x8a3   :  { %5785 = vmatpush3.bf16.msra.mxu0 %v6388_v51  ;;  %5807 = vmatpush3.bf16.msra.mxu1 %v6389_v52  ;;  %v6414_v51 = vld [vmem:[%s8291_s14 + $0x150] sm:$0xff]  }
 0x8a4   :  { %5786 = vmatprep.subr.bf16.mxu0 %v6390_v53  ;;  %5808 = vmatprep.subr.bf16.mxu1 %v6391_v42  ;;  %v6415_v52 = vld [vmem:[%s8291_s14 + $0x1d0] sm:$0xff]  }
 0x8a5   :  { %v6416_v53 = vld [vmem:[%s8291_s14 + $0x110] sm:$0xff]  }
 0x8a6   :  { %v6417_v42 = vld [vmem:[%s8291_s14 + $0x190] sm:$0xff]  }
 0x8a7   :  { %5787 = vmatpush3.bf16.msra.mxu0 %v6392_v54  ;;  %5809 = vmatpush3.bf16.msra.mxu1 %v6393_v55  ;;  %v6418_v54 = vld [vmem:[%s8291_s14 + $0x158] sm:$0xff]  }
 0x8a8   :  { %5788 = vmatprep.subr.bf16.mxu0 %v6394_v1  ;;  %5810 = vmatprep.subr.bf16.mxu1 %v6395_v56  ;;  %v6419_v55 = vld [vmem:[%s8291_s14 + $0x1d8] sm:$0xff]  }
 0x8a9   :  { %v6420_v1 = vld [vmem:[%s8291_s14 + $0x118] sm:$0xff]  }
 0x8aa   :  { %v6421_v56 = vld [vmem:[%s8291_s14 + $0x198] sm:$0xff]  }
 0x8ab   :  { %5789 = vmatpush3.bf16.msra.mxu0 %v6396_v57  ;;  %5811 = vmatpush3.bf16.msra.mxu1 %v6397_v58  ;;  %v6422_v57 = vld [vmem:[%s8291_s14 + $0x160] sm:$0xff]  }
 0x8ac   :  { %5790 = vmatprep.subr.bf16.mxu0 %v6398_v59  ;;  %5812 = vmatprep.subr.bf16.mxu1 %v6399_v60  ;;  %v6423_v58 = vld [vmem:[%s8291_s14 + $0x1e0] sm:$0xff]  }
 0x8ad   :  { %v6424_v59 = vld [vmem:[%s8291_s14 + $0x120] sm:$0xff]  }
 0x8ae   :  { %v6425_v60 = vld [vmem:[%s8291_s14 + $0x1a0] sm:$0xff]  }
 0x8af   :  { %5791 = vmatpush3.bf16.msra.mxu0 %v6400_v61  ;;  %5813 = vmatpush3.bf16.msra.mxu1 %v6401_v62  ;;  %v6426_v61 = vld [vmem:[%s8291_s14 + $0x168] sm:$0xff]  }
 0x8b0   :  { %5792 = vmatprep.subr.bf16.mxu0 %v6402_v63  ;;  %5814 = vmatprep.subr.bf16.mxu1 %v6403_v0  ;;  %v6427_v62 = vld [vmem:[%s8291_s14 + $0x1e8] sm:$0xff]  }
 0x8b1   :  { %v6428_v63 = vld [vmem:[%s8291_s14 + $0x128] sm:$0xff]  }
 0x8b2   :  { %v6429_v0 = vld [vmem:[%s8291_s14 + $0x1a8] sm:$0xff]  }
 0x8b3   :  { %5793 = vmatpush3.bf16.msra.mxu0 %v6404_v2  ;;  %5815 = vmatpush3.bf16.msra.mxu1 %v6405_v3  ;;  %v6430_v2 = vld [vmem:[%s8291_s14 + $0x170] sm:$0xff]  }
 0x8b4   :  { %5822 = vmatprep.subr.bf16.mxu0 %v6406_v4  ;;  %5844 = vmatprep.subr.bf16.mxu1 %v6407_v5  ;;  %v6431_v3 = vld [vmem:[%s8291_s14 + $0x1f0] sm:$0xff]  }
 0x8b5   :  { %v6432_v4 = vld [vmem:[%s8291_s14 + $0x130] sm:$0xff]  }
 0x8b6   :  { %v6433_v5 = vld [vmem:[%s8291_s14 + $0x1b0] sm:$0xff]  }
 0x929   :  { %v3150_v12 = vpop.f32.mrb[32].mxu0  ;;  %v3193_v13 = vpop.f32.mrb[36].mxu1 }
 0x92a   :  { %v3151_v14 = vadd.f32 %v3150_v12, %v2439_v8  ;;  %v3194_v15 = vadd.f32 %v3193_v13, %v2447_v9  ;;  %v3152_v20 = vpop.f32.mrb[33].mxu0  ;;  %v3195_v23 = vpop.f32.mrb[37].mxu1  ;;  %v2458_v12 = vsub.s32 5, %v6991_v16  ;;  %v2466_v13 = vsub.s32 7, %v6991_v16 }
 0x92b   :  { %v3153_v24 = vadd.f32 %v3152_v20, %v2443_v10  ;;  %v3196_v17 = vadd.f32 %v3195_v23, %v2451_v11  ;;  %v3154_v25 = vpop.f32.mrb[34].mxu0  ;;  %v3197_v26 = vpop.f32.mrb[38].mxu1 }
 0x92c   :  { %v3290_v28 = vmax.f32 %v3194_v15, 0.0  ;;  %v3155_v18 = vadd.f32 %v3154_v25, %v2439_v8  ;;  %v3198_v29 = vadd.f32 %v3197_v26, %v2447_v9  ;;  %v3156_v30 = vpop.f32.mrb[35].mxu0  ;;  %v3199_v32 = vpop.f32.mrb[39].mxu1  ;;  %v3288_v35 = vmax.f32 %v3151_v14, 0.0  ;;  %v6436_v8 = vld [vmem:[%s8291_s14 + $0x138] sm:$0xff]  }
 0x92d   :  { %v3291_v21 = vmax.f32 %v3196_v17, 0.0  ;;  %v3157_v33 = vadd.f32 %v3156_v30, %v2443_v10  ;;  %v3200_v34 = vadd.f32 %v3199_v32, %v2451_v11  ;;  %v3289_v37 = vmax.f32 %v3153_v24, 0.0  ;;  %v6437_v9 = vld [vmem:[%s8291_s14 + $0x1b8] sm:$0xff]  }
 0x92e   :  { %v3296_v22 = vmax.f32 %v3155_v18, 0.0  ;;  %v3298_v36 = vmax.f32 %v3198_v29, 0.0  ;;  %v2454_v10 = vsub.s32 4, %v6991_v16  ;;  %v2462_v11 = vsub.s32 6, %v6991_v16 }
 0x92f   :  { %v3297_v38 = vmax.f32 %v3157_v33, 0.0  ;;  %v3299_v39 = vmax.f32 %v3200_v34, 0.0  ;;  %v2459_v20 = vrot.slane %v7856_v7, %v2458_v12  ;;  %v2467_v23 = vrot.slane %v7856_v7, %v2466_v13 }
 0x930   :  { %v3432_v40 = vpack.c.bf16 %v3296_v22, %v3288_v35  ;;  %v3434_v41 = vpack.c.bf16 %v3298_v36, %v3290_v28  ;;  %v2455_v14 = vrot.slane %v7856_v7, %v2454_v10  ;;  %v2463_v15 = vrot.slane %v7856_v7, %v2462_v11 }
 0x931   :  { %v3433_v43 = vpack.c.bf16 %v3297_v38, %v3289_v37  ;;  %v3435_v44 = vpack.c.bf16 %v3299_v39, %v3291_v21 }
 0x933   :  { %3857 = vmatprep.mubr.bf16.mxu0 %v3433_v43  ;;  %3898 = vmatprep.mubr.bf16.mxu1 %v3435_v44 }
 0x934   :  { %3858 = vmatmul.mubr.bf16.vlgmr.msra.gmra.mrb[40].mxu0 %v3432_v40  ;;  %3899 = vmatmul.mubr.bf16.vlgmr.msra.gmra.mrb[44].mxu1 %v3434_v41 }
 0x935   :  { %5823 = vmatpush3.bf16.msra.mxu0 %v6408_v45  ;;  %5845 = vmatpush3.bf16.msra.mxu1 %v6409_v27 }
 0x936   :  { %5824 = vmatprep.subr.bf16.mxu0 %v6410_v46  ;;  %5846 = vmatprep.subr.bf16.mxu1 %v6411_v48 }
 0x939   :  { %5825 = vmatpush3.bf16.msra.mxu0 %v6412_v49  ;;  %5847 = vmatpush3.bf16.msra.mxu1 %v6413_v50  ;;  %v6438_v50 = vld [vmem:[%s8293_s15] sm:$0xff]  }
 0x93a   :  { %5826 = vmatprep.subr.bf16.mxu0 %v6414_v51  ;;  %5848 = vmatprep.subr.bf16.mxu1 %v6415_v52  ;;  %v6439_v51 = vld [vmem:[%s8293_s15 + $0x8] sm:$0xff]   ;;  %v6440_v52 = vld [vmem:[%s8294_s16 + $0x40] sm:$0xff]  }
 0x93d   :  { %5827 = vmatpush3.bf16.msra.mxu0 %v6416_v53  ;;  %5849 = vmatpush3.bf16.msra.mxu1 %v6417_v42  ;;  %v6441_v53 = vld [vmem:[%s8294_s16] sm:$0xff]  }
 0x93e   :  { %5828 = vmatprep.subr.bf16.mxu0 %v6418_v54  ;;  %5850 = vmatprep.subr.bf16.mxu1 %v6419_v55  ;;  %v6442_v42 = vld [vmem:[%s8294_s16 + $0xc0] sm:$0xff]   ;;  %v6444_v54 = vld [vmem:[%s8294_s16 + $0x48] sm:$0xff]  }
 0x93f   :  { %v6445_v55 = vld [vmem:[%s8294_s16 + $0x8] sm:$0xff]  }
 0x941   :  { %5829 = vmatpush3.bf16.msra.mxu0 %v6420_v1  ;;  %5851 = vmatpush3.bf16.msra.mxu1 %v6421_v56  ;;  %v6448_v1 = vld [vmem:[%s8294_s16 + $0x50] sm:$0xff]  }
 0x942   :  { %5830 = vmatprep.subr.bf16.mxu0 %v6422_v57  ;;  %5852 = vmatprep.subr.bf16.mxu1 %v6423_v58  ;;  %v6449_v56 = vld [vmem:[%s8294_s16 + $0x10] sm:$0xff]   ;;  %v6452_v57 = vld [vmem:[%s8294_s16 + $0x58] sm:$0xff]  }
 0x943   :  { %v6453_v58 = vld [vmem:[%s8294_s16 + $0x18] sm:$0xff]  }
 0x945   :  { %5831 = vmatpush3.bf16.msra.mxu0 %v6424_v59  ;;  %5853 = vmatpush3.bf16.msra.mxu1 %v6425_v60  ;;  %v6456_v59 = vld [vmem:[%s8294_s16 + $0x60] sm:$0xff]  }
 0x946   :  { %5832 = vmatprep.subr.bf16.mxu0 %v6426_v61  ;;  %5854 = vmatprep.subr.bf16.mxu1 %v6427_v62  ;;  %v6457_v60 = vld [vmem:[%s8294_s16 + $0x20] sm:$0xff]   ;;  %v6460_v61 = vld [vmem:[%s8294_s16 + $0x68] sm:$0xff]  }
 0x947   :  { %v6461_v62 = vld [vmem:[%s8294_s16 + $0x28] sm:$0xff]  }
 0x949   :  { %5833 = vmatpush3.bf16.msra.mxu0 %v6428_v63  ;;  %5855 = vmatpush3.bf16.msra.mxu1 %v6429_v0  ;;  %v3440_v63 = vld [vmem:[%s8283_s3 + $0x7] ss:$0 sm:$0xff]  ;;  %v6464_v0 = vld [vmem:[%s8294_s16 + $0x70] sm:$0xff]  }
 0x94a   :  { %5834 = vmatprep.subr.bf16.mxu0 %v6430_v2  ;;  %5856 = vmatprep.subr.bf16.mxu1 %v6431_v3 }
 0x94d   :  { %5835 = vmatpush3.bf16.msra.mxu0 %v6432_v4  ;;  %5857 = vmatpush3.bf16.msra.mxu1 %v6433_v5 }
 0x94e   :  { %5836 = vmatprep.subr.bf16.mxu0 %v6434_v47  ;;  %5858 = vmatprep.subr.bf16.mxu1 %v6435_v6 }
 0x951   :  { %5837 = vmatpush3.bf16.msra.mxu0 %v6436_v8  ;;  %5859 = vmatpush3.bf16.msra.mxu1 %v6437_v9 }
 0x952   :  { %6052 = vmatprep.subr.bf16.mxu0 %v6527_v19  ;;  %5869 = vmatprep.subr.bf16.mxu1 %v6440_v52  ;;  %v6454_v52 = vld [vmem:[%s8294_s16 + $0xd8] sm:$0xff]  }
 0x969   :  { %v3236_v24 = vpop.f32.mrb[36].mxu0  ;;  %v3279_v17 = vpop.f32.mrb[40].mxu1 }
 0x96a   :  { %v3237_v25 = vadd.f32 %v3236_v24, %v2455_v14  ;;  %v3280_v26 = vadd.f32 %v3279_v17, %v2463_v15  ;;  %v3238_v28 = vpop.f32.mrb[37].mxu0  ;;  %v3281_v18 = vpop.f32.mrb[41].mxu1 }
 0x96b   :  { %v3239_v29 = vadd.f32 %v3238_v28, %v2459_v20  ;;  %v3282_v30 = vadd.f32 %v3281_v18, %v2467_v23  ;;  %v3240_v32 = vpop.f32.mrb[38].mxu0  ;;  %v3283_v21 = vpop.f32.mrb[42].mxu1 }
 0x96c   :  { %v3294_v33 = vmax.f32 %v3280_v26, 0.0  ;;  %v3241_v34 = vadd.f32 %v3240_v32, %v2455_v14  ;;  %v3284_v35 = vadd.f32 %v3283_v21, %v2463_v15  ;;  %v3242_v22 = vpop.f32.mrb[39].mxu0  ;;  %v3285_v36 = vpop.f32.mrb[43].mxu1  ;;  %v3292_v40 = vmax.f32 %v3237_v25, 0.0 }
 0x96d   :  { %v3295_v37 = vmax.f32 %v3282_v30, 0.0  ;;  %v3243_v38 = vadd.f32 %v3242_v22, %v2459_v20  ;;  %v3286_v39 = vadd.f32 %v3285_v36, %v2467_v23  ;;  %v3293_v43 = vmax.f32 %v3239_v29, 0.0 }
 0x96e   :  { %v3300_v7 = vmax.f32 %v3241_v34, 0.0  ;;  %v3302_v41 = vmax.f32 %v3284_v35, 0.0 }
 0x96f   :  { %v3301_v44 = vmax.f32 %v3243_v38, 0.0  ;;  %v3303_v45 = vmax.f32 %v3286_v39, 0.0 }
 0x970   :  { %v3436_v27 = vpack.c.bf16 %v3300_v7, %v3292_v40  ;;  %v3438_v46 = vpack.c.bf16 %v3302_v41, %v3294_v33 }
 0x971   :  { %v3437_v48 = vpack.c.bf16 %v3301_v44, %v3293_v43  ;;  %v3439_v49 = vpack.c.bf16 %v3303_v45, %v3295_v37 }
 0x973   :  { %3939 = vmatprep.mubr.bf16.mxu0 %v3437_v48  ;;  %3980 = vmatprep.mubr.bf16.mxu1 %v3439_v49  ;;  %v6446_v48 = vld [vmem:[%s8294_s16 + $0xc8] sm:$0xff]  }
 0x974   :  { %3940 = vmatmul.mubr.bf16.vlgmr.msra.gmra.mrb[44].mxu0 %v3436_v27  ;;  %3981 = vmatmul.mubr.bf16.vlgmr.msra.gmra.mrb[48].mxu1 %v3438_v46  ;;  %v6443_v27 = vld [vmem:[%s8294_s16 + $0x80] sm:$0xff]   ;;  %v6447_v49 = vld [vmem:[%s8294_s16 + $0x88] sm:$0xff]  }
 0x975   :  { %6056 = vmatprep.mubr.msk.bf16.mxu0 %vm6528_vm0, %v6527_v19  ;;  %6053 = vmatpush3.bf16.msra.mxu0 %v6438_v50  ;;  %v6450_v50 = vld [vmem:[%s8294_s16 + $0xd0] sm:$0xff]  }
 0x976   :  { %6054 = vmatprep.subr.bf16.mxu0 %v6527_v19  ;;  %5870 = vmatpush3.bf16.msra.mxu1 %v6441_v53  ;;  %v6455_v53 = vld [vmem:[%s8294_s16 + $0x98] sm:$0xff]  }
 0x977   :  { %5871 = vmatprep.subr.bf16.mxu1 %v6444_v54  ;;  %v6459_v54 = vld [vmem:[%s8294_s16 + $0xa0] sm:$0xff]  }
 0x979   :  { %6055 = vmatpush3.bf16.msra.mxu0 %v6439_v51  ;;  %v6451_v51 = vld [vmem:[%s8294_s16 + $0x90] sm:$0xff]  }
 0x97a   :  { %5891 = vmatprep.subr.bf16.mxu0 %v6442_v42  ;;  %5872 = vmatpush3.bf16.msra.mxu1 %v6445_v55  ;;  %v6458_v42 = vld [vmem:[%s8294_s16 + $0xe0] sm:$0xff]   ;;  %v6462_v55 = vld [vmem:[%s8294_s16 + $0xe8] sm:$0xff]  }
 0x97b   :  { %5873 = vmatprep.subr.bf16.mxu1 %v6448_v1  ;;  %v6463_v1 = vld [vmem:[%s8294_s16 + $0xa8] sm:$0xff]  }
 0x97e   :  { %5874 = vmatpush3.bf16.msra.mxu1 %v6449_v56  ;;  %v6465_v56 = vld [vmem:[%s8294_s16 + $0x30] sm:$0xff]  }
 0x97f   :  { %5875 = vmatprep.subr.bf16.mxu1 %v6452_v57  ;;  %v6466_v57 = vld [vmem:[%s8294_s16 + $0xf0] sm:$0xff]  }
 0x982   :  { %5876 = vmatpush3.bf16.msra.mxu1 %v6453_v58  ;;  %v6467_v58 = vld [vmem:[%s8294_s16 + $0xb0] sm:$0xff]  }
 0x983   :  { %5877 = vmatprep.subr.bf16.mxu1 %v6456_v59  ;;  %v6468_v59 = vld [vmem:[%s8294_s16 + $0x78] sm:$0xff]  }
 0x986   :  { %5878 = vmatpush3.bf16.msra.mxu1 %v6457_v60  ;;  %v6469_v60 = vld [vmem:[%s8294_s16 + $0x38] sm:$0xff]  }
 0x987   :  { %5879 = vmatprep.subr.bf16.mxu1 %v6460_v61  ;;  %v6470_v61 = vld [vmem:[%s8294_s16 + $0xf8] sm:$0xff]  }
 0x98a   :  { %5880 = vmatpush3.bf16.msra.mxu1 %v6461_v62  ;;  %v6471_v62 = vld [vmem:[%s8294_s16 + $0xb8] sm:$0xff]  }
 0x98b   :  { %5881 = vmatprep.subr.bf16.mxu1 %v6464_v0 }
 0x98e   :  { %5882 = vmatpush3.bf16.msra.mxu1 %v6465_v56 }
 0x98f   :  { %5883 = vmatprep.subr.bf16.mxu1 %v6468_v59 }
 0x992   :  { %5884 = vmatpush3.bf16.msra.mxu1 %v6469_v60 }
 0xa07   :  { %v5794_v2 = vpop.f32.mrb[40].mxu0  ;;  %v5816_v3 = vpop.f32.mrb[44].mxu1 }
 0xa08   :  { %v5795_v4 = vpop.f32.mrb[41].mxu0  ;;  %v5817_v5 = vpop.f32.mrb[45].mxu1 }
 0xa09   :  { %v5796_v47 = vadd.f32 %v5795_v4, %v5794_v2  ;;  %v5818_v6 = vadd.f32 %v5817_v5, %v5816_v3  ;;  %v5797_v8 = vpop.f32.mrb[42].mxu0  ;;  %v5819_v9 = vpop.f32.mrb[46].mxu1  ;;  %v6524_v4 = vld [vmem:[%s8292_s2] sm:$0xff] }
 0xa0a   :  { %v5798_v10 = vpop.f32.mrb[43].mxu0  ;;  %v5820_v11 = vpop.f32.mrb[47].mxu1 }
 0xa0b   :  { %v3860_v12 = vadd.f32 %v5796_v47, %v3440_v63  ;;  %v5799_v13 = vadd.f32 %v5798_v10, %v5797_v8  ;;  %v5821_v14 = vadd.f32 %v5820_v11, %v5819_v9  ;;  %v6525_v47 = vld [vmem:[%s8292_s2 + $0x8] sm:$0xff]  ;;  %v6473_v10 = vld [vmem:[%s8294_s16 + $0x100] sm:$0xff]  }
 0xa0c   :  { %v6474_v11 = vld [vmem:[%s8294_s16 + $0x148] sm:$0xff]  }
 0xa0d   :  { %v3901_v15 = vadd.f32 %v5818_v6, %v3860_v12  ;;  %v3863_v20 = vadd.f32 %v5799_v13, %v3440_v63  ;;  %v6472_v63 = vld [vmem:[%s8294_s16 + $0x140] sm:$0xff]   ;;  %v6475_v12 = vld [vmem:[%s8294_s16 + $0x108] sm:$0xff]   ;;  %v6476_v13 = vld [vmem:[%s8294_s16 + $0x150] sm:$0xff]  }
 0xa0e   :  { %5913 = vmatprep.subr.bf16.mxu1 %v6472_v63 }
 0xa0f   :  { %v3904_v23 = vadd.f32 %v5821_v14, %v3863_v20  ;;  %v6477_v14 = vld [vmem:[%s8294_s16 + $0x110] sm:$0xff]   ;;  %v6479_v20 = vld [vmem:[%s8294_s16 + $0x118] sm:$0xff]  }
 0xa47   :  { %v5838_v24 = vpop.f32.mrb[44].mxu0  ;;  %v5860_v17 = vpop.f32.mrb[48].mxu1 }
 0xa48   :  { %v5839_v25 = vpop.f32.mrb[45].mxu0  ;;  %v5861_v26 = vpop.f32.mrb[49].mxu1 }
 0xa49   :  { %v5840_v28 = vadd.f32 %v5839_v25, %v5838_v24  ;;  %v5862_v18 = vadd.f32 %v5861_v26, %v5860_v17  ;;  %v5841_v29 = vpop.f32.mrb[46].mxu0  ;;  %v5863_v30 = vpop.f32.mrb[50].mxu1  ;;  %v6481_v24 = vld [vmem:[%s8294_s16 + $0x120] sm:$0xff]   ;;  %v6482_v17 = vld [vmem:[%s8294_s16 + $0x168] sm:$0xff]   ;;  %v6484_v26 = vld [vmem:[%s8294_s16 + $0x170] sm:$0xff]  }
 0xa4a   :  { %v5842_v32 = vpop.f32.mrb[47].mxu0  ;;  %v5864_v21 = vpop.f32.mrb[51].mxu1  ;;  %v6483_v25 = vld [vmem:[%s8294_s16 + $0x128] sm:$0xff]  }
 0xa4b   :  { %v3942_v33 = vadd.f32 %v5840_v28, %v3901_v15  ;;  %v5843_v34 = vadd.f32 %v5842_v32, %v5841_v29  ;;  %v5865_v35 = vadd.f32 %v5864_v21, %v5863_v30  ;;  %v6478_v15 = vld [vmem:[%s8294_s16 + $0x158] sm:$0xff]   ;;  %v6485_v28 = vld [vmem:[%s8294_s16 + $0x130] sm:$0xff]   ;;  %v6488_v30 = vld [vmem:[%s8295_s17] sm:$0xff]  }
 0xa4c   :  { %v6487_v29 = vld [vmem:[%s8294_s16 + $0x138] sm:$0xff]   ;;  %v6489_v32 = vld [vmem:[%s8295_s17 + $0x40] sm:$0xff]   ;;  %v6490_v21 = vld [vmem:[%s8295_s17 + $0x8] sm:$0xff]  }
 0xa4d   :  { %v3983_v22 = vadd.f32 %v5862_v18, %v3942_v33  ;;  %v3945_v36 = vadd.f32 %v5843_v34, %v3904_v23  ;;  %v6480_v23 = vld [vmem:[%s8294_s16 + $0x160] sm:$0xff]   ;;  %v6486_v18 = vld [vmem:[%s8294_s16 + $0x178] sm:$0xff]   ;;  %v6492_v33 = vld [vmem:[%s8295_s17 + $0x10] sm:$0xff]  }
 0xa4e   :  { %v6493_v34 = vld [vmem:[%s8295_s17 + $0x50] sm:$0xff]  }
 0xa4f   :  { %v5458_v37 = vmul.f32 -1.442695, %v3983_v22  ;;  %v3986_v38 = vadd.f32 %v5865_v35, %v3945_v36  ;;  %v6494_v35 = vld [vmem:[%s8295_s17 + $0x18] sm:$0xff]   ;;  %v6496_v36 = vld [vmem:[%s8295_s17 + $0x20] sm:$0xff]  }
 0xa50   :  { %v6495_v22 = vld [vmem:[%s8295_s17 + $0x58] sm:$0xff]  }
 0xa51   :  { %6516 = vpow2.f32 %v5458_v37  ;;  %v5459_v39 = vmul.f32 -1.442695, %v3986_v38  ;;  %v6497_v37 = vld [vmem:[%s8295_s17 + $0x60] sm:$0xff]   ;;  %v6498_v38 = vld [vmem:[%s8295_s17 + $0x28] sm:$0xff]  }
 0xa53   :  { %6518 = vpow2.f32 %v5459_v39  ;;  %v6499_v39 = vld [vmem:[%s8295_s17 + $0x68] sm:$0xff]  }
 0xa5b   :  { %v6517_v40 = vpop.eup %6516 }
 0xa5c   :  { %v3995_v7 = vadd.f32 1.0, %v6517_v40  ;;  %v6500_v40 = vld [vmem:[%s8295_s17 + $0x30] sm:$0xff]  }
 0xa5d   :  { %v6519_v41 = vpop.eup %6518 }
 0xa5e   :  { %v3996_v43 = vadd.f32 1.0, %v6519_v41  ;;  %6520 = vrcp.f32 %v3995_v7  ;;  %v6501_v7 = vld [vmem:[%s8295_s17 + $0x70] sm:$0xff]   ;;  %v6502_v41 = vld [vmem:[%s8295_s17 + $0x38] sm:$0xff]  }
 0xa60   :  { %6522 = vrcp.f32 %v3996_v43  ;;  %v6503_v43 = vld [vmem:[%s8295_s17 + $0x78] sm:$0xff]  }
 0xa68   :  { %v6521_v44 = vpop.eup %6520 }
 0xa6a   :  { %v6523_v45 = vpop.eup %6522 }
 0xa6b   :  { %v4005_v46 = vpack.c.bf16 %v6523_v45, %v6521_v44 }
 0xa6d   :  { %6057 = vmatmul.mubr.msk.bf16.vlgmr.msra.gmra.mrb[48].mxu0 %vm4018_vm10, %v4005_v46 }
 0xa6e   :  { %5892 = vmatpush3.bf16.msra.mxu0 %v6443_v27 }
 0xa6f   :  { %5893 = vmatprep.subr.bf16.mxu0 %v6446_v48 }
 0xa72   :  { %5894 = vmatpush3.bf16.msra.mxu0 %v6447_v49 }
 0xa73   :  { %5895 = vmatprep.subr.bf16.mxu0 %v6450_v50 }
 0xa76   :  { %5896 = vmatpush3.bf16.msra.mxu0 %v6451_v51 }
 0xa77   :  { %5897 = vmatprep.subr.bf16.mxu0 %v6454_v52 }
 0xa7a   :  { %5898 = vmatpush3.bf16.msra.mxu0 %v6455_v53 }
 0xa7b   :  { %5899 = vmatprep.subr.bf16.mxu0 %v6458_v42 }
 0xa7e   :  { %5900 = vmatpush3.bf16.msra.mxu0 %v6459_v54 }
 0xa7f   :  { %5901 = vmatprep.subr.bf16.mxu0 %v6462_v55 }
 0xa82   :  { %5902 = vmatpush3.bf16.msra.mxu0 %v6463_v1 }
 0xa83   :  { %5903 = vmatprep.subr.bf16.mxu0 %v6466_v57 }
 0xa86   :  { %5904 = vmatpush3.bf16.msra.mxu0 %v6467_v58 }
 0xa87   :  { %5905 = vmatprep.subr.bf16.mxu0 %v6470_v61 }
 0xa8a   :  { %5906 = vmatpush3.bf16.msra.mxu0 %v6471_v62 }
 0xa8b   :  { %6060 = vmatprep.subr.bf16.mxu0 %v6527_v19 }
 0xb40   :  { %v4056_v0 = vpop.f32.mrb[48].mxu0 }
 0xb41   :  { %v6058_v2 = vpop.f32.mrb[49].mxu0  ;;  %v4063_v5 = vmul.f32 %v6524_v4, %v4056_v0 }
 0xb42   :  { %v4059_v3 = vpop.f32.mrb[50].mxu0  ;;  %v8211_v2 = vadd.s32 8, %v6991_v16 }
 0xb43   :  { %v4064_v6 = vmul.f32 %v6525_v47, %v4059_v3  ;;  %v6059_v8 = vpop.f32.mrb[51].mxu0 }
 0xb44   :  { %vm4588_vm13 = vcmp.eq.s32.totalorder %v8211_v2, 15 }
 0xb45   :  { %v4098_v9 = vpack.c.bf16 %v4064_v6, %v4063_v5  ;;  %v4065_v6 = vld [vmem:[%s8283_s3 + $0x40] ss:$0 sm:$0xff] }
 0xb47   :  { %4227 = vmatprep.mubr.bf16.mxu1 %v4098_v9  ;;  %4397 = vmatprep.mubr.bf16.mxu0 %v4098_v9 }
 0xb48   :  { %4228 = vmatmul.mubr.bf16.vlgmr.msra.gmra.mrb[52].mxu1 %v7570_v31  ;;  %4398 = vmatmul.mubr.bf16.vlgmr.msra.gmra.mrb[52].mxu0 %v7570_v31 }
 0xb49   :  { %5914 = vmatpush3.bf16.msra.mxu1 %v6473_v10  ;;  %4567 = vmatprep.mubr.bf16.mxu1 %v4098_v9 }
 0xb4a   :  { %5915 = vmatprep.subr.bf16.mxu1 %v6474_v11  ;;  %6076 = vmatprep.mubr.msk.bf16.mxu0 %vm6528_vm0, %v6527_v19 }
 0xb4b   :  { %6061 = vmatpush3.bf16.msra.mxu0 %v6488_v30  ;;  %v6509_v30 = vld [vmem:[%s8295_s17 + $0xa8] sm:$0xff]  }
 0xb4c   :  { %6062 = vmatprep.subr.bf16.mxu0 %v6527_v19 }
 0xb4d   :  { %5916 = vmatpush3.bf16.msra.mxu1 %v6475_v12 }
 0xb4e   :  { %5917 = vmatprep.subr.bf16.mxu1 %v6476_v13 }
 0xb4f   :  { %6063 = vmatpush3.bf16.msra.mxu0 %v6490_v21  ;;  %v6511_v21 = vld [vmem:[%s8295_s17 + $0xb8] sm:$0xff]  }
 0xb50   :  { %6064 = vmatprep.subr.bf16.mxu0 %v6527_v19 }
 0xb51   :  { %5918 = vmatpush3.bf16.msra.mxu1 %v6477_v14 }
 0xb52   :  { %5919 = vmatprep.subr.bf16.mxu1 %v6478_v15 }
 0xb53   :  { %6065 = vmatpush3.bf16.msra.mxu0 %v6492_v33 }
 0xb54   :  { %6066 = vmatprep.subr.bf16.mxu0 %v6527_v19 }
 0xb55   :  { %5920 = vmatpush3.bf16.msra.mxu1 %v6479_v20 }
 0xb56   :  { %5921 = vmatprep.subr.bf16.mxu1 %v6480_v23 }
 0xb57   :  { %6067 = vmatpush3.bf16.msra.mxu0 %v6494_v35 }
 0xb58   :  { %6068 = vmatprep.subr.bf16.mxu0 %v6527_v19 }
 0xb59   :  { %5922 = vmatpush3.bf16.msra.mxu1 %v6481_v24 }
 0xb5a   :  { %5923 = vmatprep.subr.bf16.mxu1 %v6482_v17  ;;  %v6504_v17 = vld [vmem:[%s8295_s17 + $0x80] sm:$0xff]  }
 0xb5b   :  { %6069 = vmatpush3.bf16.msra.mxu0 %v6496_v36 }
 0xb5c   :  { %6070 = vmatprep.subr.bf16.mxu0 %v6527_v19 }
 0xb5d   :  { %5924 = vmatpush3.bf16.msra.mxu1 %v6483_v25 }
 0xb5e   :  { %5925 = vmatprep.subr.bf16.mxu1 %v6484_v26  ;;  %v6505_v26 = vld [vmem:[%s8295_s17 + $0x88] sm:$0xff]  }
 0xb5f   :  { %6071 = vmatpush3.bf16.msra.mxu0 %v6498_v38 }
 0xb60   :  { %6072 = vmatprep.subr.bf16.mxu0 %v6527_v19 }
 0xb61   :  { %5926 = vmatpush3.bf16.msra.mxu1 %v6485_v28  ;;  %v6506_v28 = vld [vmem:[%s8295_s17 + $0x90] sm:$0xff]  }
 0xb62   :  { %5927 = vmatprep.subr.bf16.mxu1 %v6486_v18  ;;  %v6507_v18 = vld [vmem:[%s8295_s17 + $0x98] sm:$0xff]  }
 0xb63   :  { %6073 = vmatpush3.bf16.msra.mxu0 %v6500_v40 }
 0xb64   :  { %6074 = vmatprep.subr.bf16.mxu0 %v6527_v19 }
 0xb65   :  { %5928 = vmatpush3.bf16.msra.mxu1 %v6487_v29  ;;  %v6508_v29 = vld [vmem:[%s8295_s17 + $0xa0] sm:$0xff]  }
 0xb66   :  { %6080 = vmatprep.subr.bf16.mxu1 %v6527_v19 }
 0xb67   :  { %6075 = vmatpush3.bf16.msra.mxu0 %v6502_v41 }
 0xb68   :  { %4568 = vmatmul.mubr.bf16.vlgmr.msra.gmra.mrb[56].mxu1 %v7570_v31  ;;  %v6491_v31 = vld [vmem:[%s8295_s17 + $0x48] sm:$0xff]   ;;  %6100 = vmatprep.subr.bf16.mxu0 %v6527_v19 }
 0xb69   :  { %6096 = vmatprep.mubr.msk.bf16.mxu1 %vm6528_vm0, %v6527_v19  ;;  %6081 = vmatpush3.bf16.msra.mxu1 %v6489_v32  ;;  %v6510_v32 = vld [vmem:[%s8295_s17 + $0xb0] sm:$0xff]  }
 0xb6a   :  { %6082 = vmatprep.subr.bf16.mxu1 %v6527_v19 }
 0xb6d   :  { %6083 = vmatpush3.bf16.msra.mxu1 %v6491_v31 }
 0xb6e   :  { %6084 = vmatprep.subr.bf16.mxu1 %v6527_v19 }
 0xb71   :  { %6085 = vmatpush3.bf16.msra.mxu1 %v6493_v34 }
 0xb72   :  { %6086 = vmatprep.subr.bf16.mxu1 %v6527_v19 }
 0xb75   :  { %6087 = vmatpush3.bf16.msra.mxu1 %v6495_v22 }
 0xb76   :  { %6088 = vmatprep.subr.bf16.mxu1 %v6527_v19 }
 0xb79   :  { %6089 = vmatpush3.bf16.msra.mxu1 %v6497_v37 }
 0xb7a   :  { %6090 = vmatprep.subr.bf16.mxu1 %v6527_v19 }
 0xb7d   :  { %6091 = vmatpush3.bf16.msra.mxu1 %v6499_v39 }
 0xb7e   :  { %6092 = vmatprep.subr.bf16.mxu1 %v6527_v19 }
 0xb81   :  { %6093 = vmatpush3.bf16.msra.mxu1 %v6501_v7 }
 0xb82   :  { %6094 = vmatprep.subr.bf16.mxu1 %v6527_v19 }
 0xb85   :  { %6095 = vmatpush3.bf16.msra.mxu1 %v6503_v43 }
 0xc1b   :  { %v5885_v44 = vpop.f32.mrb[52].mxu1  ;;  %v5907_v45 = vpop.f32.mrb[52].mxu0 }
 0xc1c   :  { %v5886_v27 = vpop.f32.mrb[53].mxu1  ;;  %v5908_v46 = vpop.f32.mrb[53].mxu0 }
 0xc1d   :  { %v5887_v48 = vadd.f32 %v5886_v27, %v5885_v44  ;;  %v5909_v49 = vadd.f32 %v5908_v46, %v5907_v45  ;;  %v5888_v50 = vpop.f32.mrb[54].mxu1  ;;  %v5910_v51 = vpop.f32.mrb[54].mxu0 }
 0xc1e   :  { %v5889_v52 = vpop.f32.mrb[55].mxu1  ;;  %v5911_v53 = vpop.f32.mrb[55].mxu0 }
 0xc1f   :  { %v5890_v42 = vadd.f32 %v5889_v52, %v5888_v50  ;;  %v5912_v54 = vadd.f32 %v5911_v53, %v5910_v51  ;;  %v4578_v55 = vrot.slane %v5887_v48, 7  ;;  %v4606_v51 = vld [vmem:[%s8283_s3 + $0x41] ss:$0 sm:$0xff] }
 0xc21   :  { %v4579_v1 = vrot.slane %v5890_v42, 7 }
 0xc23   :  { %v4582_v56 = vsel %vm4580_vm11, %v4579_v1, %v4578_v55  ;;  %v4581_v57 = vsel %vm4580_vm11, %v4578_v55, %v4579_v1 }
 0xc24   :  { %v4583_v58 = vsel %vm1707_vm4, 0.0, %v4582_v56  ;;  %v4586_v59 = vadd.f32 %v5912_v54, %v4581_v57 }
 0xc25   :  { %v4585_v60 = vadd.f32 %v5909_v49, %v4583_v58 }
 0xc3b   :  { %v5929_v61 = vpop.f32.mrb[56].mxu1 }
 0xc3c   :  { %v5930_v62 = vpop.f32.mrb[57].mxu1 }
 0xc3d   :  { %v5931_v63 = vadd.f32 %v5930_v62, %v5929_v61  ;;  %v5932_v0 = vpop.f32.mrb[58].mxu1 }
 0xc3e   :  { %v5933_v3 = vpop.f32.mrb[59].mxu1 }
 0xc3f   :  { %v5934_v4 = vadd.f32 %v5933_v3, %v5932_v0  ;;  %v4589_v5 = vrot.slane %v5931_v63, 1 }
 0xc41   :  { %v4590_v47 = vrot.slane %v5934_v4, 1 }
 0xc43   :  { %v4592_v8 = vsel %vm4591_vm12, %v4589_v5, %v4590_v47  ;;  %v4593_v9 = vsel %vm4591_vm12, %v4590_v47, %v4589_v5 }
 0xc44   :  { %v4595_v10 = vsel %vm4588_vm13, 0.0, %v4593_v9  ;;  %v4596_v11 = vadd.f32 %v4592_v8, %v4585_v60 }
 0xc45   :  { %v4597_v12 = vadd.f32 %v4595_v10, %v4586_v59 }
 0xc46   :  { %v4598_v13 = vadd.f32 %v4596_v11, %v4065_v6 }
 0xc47   :  { %v4599_v14 = vadd.f32 %v4597_v12, %v4065_v6 }
 0xc48   :  { %vm4600_vm14 = vcmp.ge.f32.partialorder %v4598_v13, 0.0  ;;  %v4602_v15 = vmul.f32 0.1, %v4598_v13 }
 0xc49   :  { %vm4601_vm15 = vcmp.ge.f32.partialorder %v4599_v14, 0.0  ;;  %v4603_v20 = vmul.f32 0.1, %v4599_v14 }
 0xc4a   :  { %v4604_v23 = vsel %vm4600_vm14, %v4598_v13, %v4602_v15 }
 0xc4b   :  { %v4605_v24 = vsel %vm4601_vm15, %v4599_v14, %v4603_v20 }
 0xc4c   :  { %v4623_v25 = vpack.c.bf16 %v4605_v24, %v4604_v23 }
 0xc4e   :  { %6077 = vmatmul.mubr.bf16.vlgmr.msra.gmra.mrb[56].mxu0 %v4623_v25  ;;  %6097 = vmatmul.mubr.bf16.vlgmr.msra.gmra.mrb[60].mxu1 %v4623_v25 }
 0xc4f   :  { %6101 = vmatpush3.bf16.msra.mxu0 %v6504_v17  ;;  %6116 = vmatprep.mubr.msk.bf16.mxu0 %vm6528_vm0, %v6527_v19 }
 0xc50   :  { %6102 = vmatprep.subr.bf16.mxu0 %v6527_v19 }
 0xc53   :  { %6103 = vmatpush3.bf16.msra.mxu0 %v6505_v26 }
 0xc54   :  { %6104 = vmatprep.subr.bf16.mxu0 %v6527_v19 }
 0xc57   :  { %6105 = vmatpush3.bf16.msra.mxu0 %v6506_v28 }
 0xc58   :  { %6106 = vmatprep.subr.bf16.mxu0 %v6527_v19 }
 0xc5b   :  { %6107 = vmatpush3.bf16.msra.mxu0 %v6507_v18 }
 0xc5c   :  { %6108 = vmatprep.subr.bf16.mxu0 %v6527_v19 }
 0xc5f   :  { %6109 = vmatpush3.bf16.msra.mxu0 %v6508_v29 }
 0xc60   :  { %6110 = vmatprep.subr.bf16.mxu0 %v6527_v19 }
 0xc63   :  { %6111 = vmatpush3.bf16.msra.mxu0 %v6509_v30 }
 0xc64   :  { %6112 = vmatprep.subr.bf16.mxu0 %v6527_v19 }
 0xc67   :  { %6113 = vmatpush3.bf16.msra.mxu0 %v6510_v32 }
 0xc68   :  { %6114 = vmatprep.subr.bf16.mxu0 %v6527_v19 }
 0xc6b   :  { %6115 = vmatpush3.bf16.msra.mxu0 %v6511_v21 }
 0xc6e   :  { %6117 = vmatmul.mubr.bf16.vlgmr.msra.gmra.mrb[60].mxu0 %v4623_v25 }
 0xd21   :  { %v4706_v31 = vpop.f32.mrb[56].mxu0  ;;  %v4812_v33 = vpop.f32.mrb[60].mxu1 }
 0xd22   :  { %v6078_v34 = vpop.f32.mrb[57].mxu0  ;;  %v6098_v35 = vpop.f32.mrb[61].mxu1  ;;  %v4925_v37 = vrot.slane %v4706_v31, 7 }
 0xd23   :  { %v4709_v22 = vpop.f32.mrb[58].mxu0  ;;  %v4815_v36 = vpop.f32.mrb[62].mxu1 }
 0xd24   :  { %v4926_v38 = vrot.slane %v4709_v22, 7  ;;  %v6079_v39 = vpop.f32.mrb[59].mxu0  ;;  %v6099_v40 = vpop.f32.mrb[63].mxu1 }
 0xd26   :  { %v4928_v7 = vsel %vm4580_vm11, %v4926_v38, %v4925_v37  ;;  %v4927_v41 = vsel %vm4580_vm11, %v4925_v37, %v4926_v38 }
 0xd27   :  { %v4929_v19 = vsel %vm1707_vm4, 0.0, %v4928_v7  ;;  %v4932_v43 = vadd.f32 %v4927_v41, %v4815_v36 }
 0xd28   :  { %v4931_v44 = vadd.f32 %v4929_v19, %v4812_v33 }
 0xd41   :  { %v4918_v45 = vpop.f32.mrb[60].mxu0 }
 0xd42   :  { %v6118_v27 = vpop.f32.mrb[61].mxu0  ;;  %v4933_v48 = vrot.slane %v4918_v45, 1 }
 0xd43   :  { %v4921_v46 = vpop.f32.mrb[62].mxu0 }
 0xd44   :  { %v4934_v49 = vrot.slane %v4921_v46, 1  ;;  %v6119_v50 = vpop.f32.mrb[63].mxu0 }
 0xd46   :  { %v4935_v52 = vsel %vm4591_vm12, %v4933_v48, %v4934_v49  ;;  %v4936_v53 = vsel %vm4591_vm12, %v4934_v49, %v4933_v48 }
 0xd47   :  { %v4938_v42 = vsel %vm4588_vm13, 0.0, %v4936_v53  ;;  %v4939_v54 = vadd.f32 %v4935_v52, %v4931_v44 }
 0xd48   :  { %v4940_v55 = vadd.f32 %v4938_v42, %v4932_v43 }
 0xd49   :  { %v4941_v1 = vadd.f32 %v4939_v54, %v4606_v51 }
 0xd4a   :  { %v4942_v56 = vadd.f32 %v4940_v55, %v4606_v51 }
 0xd4b   :  { %vm4943_vm0 = vcmp.ge.f32.partialorder %v4941_v1, 0.0  ;;  %v4945_v57 = vmul.f32 0.1, %v4941_v1 }
 0xd4c   :  { %vm4944_vm1 = vcmp.ge.f32.partialorder %v4942_v56, 0.0  ;;  %v4946_v58 = vmul.f32 0.1, %v4942_v56 }
 0xd4d   :  { %v4947_v59 = vsel %vm4943_vm0, %v4941_v1, %v4945_v57 }
 0xd4e   :  { %v4948_v60 = vsel %vm4944_vm1, %v4942_v56, %v4946_v58  ;;  %4949 = vst [vmem:[%s8296_s18] sm:$0xff] %v4947_v59 }
 0xd4f   :  { %4950 = vst [vmem:[%s8296_s18 + $0x8] sm:$0xff] %v4948_v60 }

</bundles_post_ra>
